<compile_context>
chip_gen: v5e
topology: v5e:2x2
jax: 0.10.0
libtpu: 0.0.40
codegen_flags: <defaults>
</compile_context>

<pallas_src>
import functools

import jax
import jax.numpy as jnp
from jax import lax
from jax.experimental import pallas as pl
from jax.experimental.pallas import tpu as pltpu

EPS = 1e-5      # nn.BatchNorm2d default eps
CPAD = 128      # lane-dense padded channel count (80 -> 128)


# ---------------------------------------------------------------------------
# Fused stage kernel: conv3x3(valid) + shift + ReLU + maxpool2x2 (floor mode)
# ---------------------------------------------------------------------------
def _stage_kernel(x_ref, w_ref, shift_ref, o_ref, rbuf, *, ow, poh, pow_, cout):
    """x_ref:     (H, W, Cin)       NHWC activation of one image (VMEM tile)
       w_ref:     (3, Cin, 3*Cout)  w_ref[di][:, dj*Cout:(dj+1)*Cout] == W[di, dj]
       shift_ref: (1, Cout)         folded conv-bias + BatchNorm shift
       o_ref:     (POH, POW, Cout)  pooled output of one image
       rbuf:      (OW, Cout) f32    scratch row buffer for the column pool
    """
    shift = shift_ref[...]

    def conv_row(r):
        # One conv output row r: 3 MXU matmuls (one per kernel row); the three
        # kernel-column taps come out as lane-aligned 128-wide slabs of y.
        acc = jnp.zeros((ow, cout), jnp.float32)
        for di in range(3):
            y = jnp.dot(x_ref[r + di], w_ref[di],
                        preferred_element_type=jnp.float32)      # (W, 3*Cout)
            for dj in range(3):
                acc = acc + y[dj:dj + ow, dj * cout:(dj + 1) * cout]
        return acc + shift

    @pl.loop(0, poh)
    def _(ph):
        r0 = conv_row(2 * ph)
        r1 = conv_row(2 * ph + 1)
        # ReLU commutes with max: apply it once on the row-pooled result.
        rbuf[...] = jnp.maximum(jnp.maximum(r0, r1), 0.0)
        o_ref[ph] = jnp.maximum(rbuf[pl.ds(0, pow_, stride=2), :],
                                rbuf[pl.ds(1, pow_, stride=2), :])


def conv_bn_relu_pool(x, wcat, shift):
    """One fused SmallConv stage.  x: (N, H, W, Cin) NHWC; wcat: (3, Cin, 3*Cout);
    shift: (1, Cout).  Returns (N, (H-2)//2, (W-2)//2, Cout) float32."""
    n, h, w, cin = x.shape
    cout = shift.shape[-1]
    oh, ow = h - 2, w - 2
    poh, pow_ = oh // 2, ow // 2
    kernel = functools.partial(_stage_kernel, ow=ow, poh=poh, pow_=pow_, cout=cout)
    return pl.pallas_call(
        kernel,
        out_shape=jax.ShapeDtypeStruct((n, poh, pow_, cout), jnp.float32),
        grid_spec=pltpu.PrefetchScalarGridSpec(
            num_scalar_prefetch=0,
            grid=(n,),
            in_specs=[
                pl.BlockSpec((None, h, w, cin), lambda b: (b, 0, 0, 0)),
                pl.BlockSpec((3, cin, 3 * cout), lambda b: (0, 0, 0)),
                pl.BlockSpec((1, cout), lambda b: (0, 0)),
            ],
            out_specs=pl.BlockSpec((None, poh, pow_, cout), lambda b: (b, 0, 0, 0)),
            scratch_shapes=[pltpu.VMEM((ow, cout), jnp.float32)],
        ),
        compiler_params=pltpu.CompilerParams(dimension_semantics=("parallel",)),
    )(x, wcat, shift)


# ---------------------------------------------------------------------------
# Parameters (deterministic, synthetic — shapes match SmallConv.__init__ defaults)
# ---------------------------------------------------------------------------
def init_params(key):
    ks = jax.random.split(key, 14)
    p = {}
    p["w1"] = 0.10 * jax.random.normal(ks[0], (3, 3, 3, 80), jnp.float32)    # conv1, no bias
    p["w2"] = 0.05 * jax.random.normal(ks[1], (3, 3, 80, 80), jnp.float32)   # conv2
    p["b2"] = 0.10 * jax.random.normal(ks[2], (80,), jnp.float32)
    p["g2"] = 1.0 + 0.10 * jax.random.normal(ks[3], (80,), jnp.float32)      # bn2 gamma
    p["beta2"] = 0.10 * jax.random.normal(ks[4], (80,), jnp.float32)         # bn2 beta
    p["m2"] = 0.10 * jax.random.normal(ks[5], (80,), jnp.float32)            # bn2 running mean
    p["v2"] = 0.5 + jax.random.uniform(ks[6], (80,), jnp.float32)            # bn2 running var
    p["w3"] = 0.05 * jax.random.normal(ks[7], (3, 3, 80, 80), jnp.float32)   # conv3
    p["b3"] = 0.10 * jax.random.normal(ks[8], (80,), jnp.float32)
    p["g3"] = 1.0 + 0.10 * jax.random.normal(ks[9], (80,), jnp.float32)
    p["beta3"] = 0.10 * jax.random.normal(ks[10], (80,), jnp.float32)
    p["m3"] = 0.10 * jax.random.normal(ks[11], (80,), jnp.float32)
    p["v3"] = 0.5 + jax.random.uniform(ks[12], (80,), jnp.float32)
    p["wl"] = 0.05 * jax.random.normal(ks[13], (320, 10), jnp.float32)       # last: Linear(320, 10)
    p["bl"] = jnp.zeros((10,), jnp.float32)                                  # bias zeroed in __init__
    return p


def prepare_params(p):
    """One-time prep: fold BN scale into weights, conv bias + BN into a shift,
    zero-pad channels to 128 lanes, and lay weights out as (3, Cin, 3*Cout)."""
    def to_wcat(w):                               # (3,3,Cin,Cout) -> (3,Cin,3*Cout)
        kh, kw, cin, cout = w.shape
        return jnp.transpose(w, (0, 2, 1, 3)).reshape(kh, cin, kw * cout)

    def pad_oc(w):
        return jnp.pad(w, ((0, 0), (0, 0), (0, 0), (0, CPAD - w.shape[-1])))

    def pad_ic(w):
        return jnp.pad(w, ((0, 0), (0, 0), (0, CPAD - w.shape[-2]), (0, 0)))

    def fold_bn(w, b, g, beta, m, v):
        s = g / jnp.sqrt(v + EPS)
        return w * s[None, None, None, :], (b - m) * s + beta

    q = {}
    # stage 1: conv1 (bias=False), no BN
    q["wc1"] = to_wcat(pad_oc(p["w1"]))
    q["sh1"] = jnp.zeros((1, CPAD), jnp.float32)
    # stage 2: conv2 + bn2 (eval-mode fold)
    w2, sh2 = fold_bn(p["w2"], p["b2"], p["g2"], p["beta2"], p["m2"], p["v2"])
    q["wc2"] = to_wcat(pad_ic(pad_oc(w2)))
    q["sh2"] = jnp.pad(sh2, (0, CPAD - sh2.shape[0])).reshape(1, CPAD)
    # stage 3: conv3 + bn3
    w3, sh3 = fold_bn(p["w3"], p["b3"], p["g3"], p["beta3"], p["m3"], p["v3"])
    q["wc3"] = to_wcat(pad_ic(pad_oc(w3)))
    q["sh3"] = jnp.pad(sh3, (0, CPAD - sh3.shape[0])).reshape(1, CPAD)
    q["wl"], q["bl"] = p["wl"], p["bl"]
    return q


# ---------------------------------------------------------------------------
# Forward (Pallas) and pure-JAX reference
# ---------------------------------------------------------------------------
@jax.jit
def small_conv_forward(x_nchw, q):
    x = jnp.transpose(x_nchw, (0, 2, 3, 1))                    # NCHW -> NHWC
    y = conv_bn_relu_pool(x, q["wc1"], q["sh1"])               # (N, 15, 15, 128)
    y = conv_bn_relu_pool(y, q["wc2"], q["sh2"])               # (N,  6,  6, 128)
    y = conv_bn_relu_pool(y, q["wc3"], q["sh3"])               # (N,  2,  2, 128)
    n = y.shape[0]
    # drop the channel padding; flatten exactly like PyTorch's .view on NCHW
    feat = jnp.transpose(y[..., :80], (0, 3, 1, 2)).reshape(n, -1)   # (N, 320)
    # final Linear(320, 10): only 10 output lanes -> plain XLA dot (perf review).
    return feat @ q["wl"] + q["bl"]


def reference_forward(x_nchw, p):
    dn = ("NCHW", "OIHW", "NCHW")

    def conv(x, w_hwio, bias=None):
        w = jnp.transpose(w_hwio, (3, 2, 0, 1))  # HWIO -> OIHW
        y = lax.conv_general_dilated(x, w, (1, 1), "VALID", dimension_numbers=dn)
        if bias is not None:
            y = y + bias[None, :, None, None]
        return y

    def bn(x, g, b, m, v):
        return ((x - m[None, :, None, None]) / jnp.sqrt(v[None, :, None, None] + EPS)
                * g[None, :, None, None] + b[None, :, None, None])

    def pool(x):
        return lax.reduce_window(x, -jnp.inf, lax.max, (1, 1, 2, 2), (1, 1, 2, 2), "VALID")

    y = pool(jnp.maximum(conv(x_nchw, p["w1"]), 0.0))
    y = pool(jnp.maximum(bn(conv(y, p["w2"], p["b2"]),
                            p["g2"], p["beta2"], p["m2"], p["v2"]), 0.0))
    y = pool(jnp.maximum(bn(conv(y, p["w3"], p["b3"]),
                            p["g3"], p["beta3"], p["m3"], p["v3"]), 0.0))
    feat = y.reshape(y.shape[0], -1)
    return feat @ p["wl"] + p["bl"]


if __name__ == "__main__":
    key = jax.random.PRNGKey(0)
    kx, kp = jax.random.split(key)
    # 32x32 input so that 80 * 2 * 2 == lin_size == 320, as implied by the module.
    x = jax.random.normal(kx, (2, 3, 32, 32), jnp.float32)
    params = init_params(kp)
    prep = prepare_params(params)

    logits = jax.block_until_ready(small_conv_forward(x, prep))
    assert logits.shape == (2, 10), logits.shape

    ref = jax.block_until_ready(reference_forward(x, params))
    max_err = float(jnp.max(jnp.abs(logits - ref)))
    assert jnp.allclose(logits, ref, rtol=1e-3, atol=1e-3), max_err

    print("KERNEL_OK")
</pallas_src>

<mosaic_0001>
module attributes {stable_mosaic.version = 11 : i64} {
  func.func @_stage_kernel(%arg0: i32, %arg1: memref<1x32x32x3xf32, #tpu.memory_space<vmem>>, %arg2: memref<3x3x384xf32, #tpu.memory_space<vmem>>, %arg3: memref<1x128xf32, #tpu.memory_space<vmem>>, %arg4: memref<1x15x15x128xf32, #tpu.memory_space<vmem>>, %arg5: memref<30x128xf32, #tpu.memory_space<vmem>>) attributes {dimension_semantics = [#tpu.dimension_semantics<parallel>], iteration_bounds = array<i64: 2>, scalar_prefetch = 0 : i64, scratch_operands = 1 : i64, tpu.core_type = #tpu.core_type<tc>, window_params = [{transform_indices = @transform_0, window_bounds = array<i64: 1, 32, 32, 3>}, {pipeline_mode = #tpu.pipeline_mode<synchronous>, transform_indices = @transform_1, window_bounds = array<i64: 3, 3, 384>}, {pipeline_mode = #tpu.pipeline_mode<synchronous>, transform_indices = @transform_2, window_bounds = array<i64: 1, 128>}, {transform_indices = @transform_3, window_bounds = array<i64: 1, 15, 15, 128>}]} {
    %c0 = arith.constant 0 : index
    %c0_0 = arith.constant 0 : index
    %0 = vector.load %arg3[%c0, %c0_0] : memref<1x128xf32, #tpu.memory_space<vmem>>, vector<1x128xf32>
    %c0_i32 = arith.constant 0 : i32
    %c15_i32 = arith.constant 15 : i32
    %1 = arith.addi %c0_i32, %c15_i32 : i32
    %c1_i32 = arith.constant 1 : i32
    scf.for %arg6 = %c0_i32 to %1 step %c1_i32  : i32 {
      %c1_i32_2 = arith.constant 1 : i32
      %2 = arith.muli %arg6, %c1_i32_2 : i32
      %c0_i32_3 = arith.constant 0 : i32
      %3 = arith.addi %c0_i32_3, %2 : i32
      %c2_i32 = arith.constant 2 : i32
      %4 = arith.muli %c2_i32, %3 : i32
      %cst = arith.constant 0.000000e+00 : f32
      %5 = vector.broadcast %cst : f32 to vector<30x128xf32>
      %c0_i32_4 = arith.constant 0 : i32
      %6 = arith.addi %4, %c0_i32_4 : i32
      %c0_5 = arith.constant 0 : index
      %7 = arith.index_cast %6 : i32 to index
      %c0_6 = arith.constant 0 : index
      %c0_7 = arith.constant 0 : index
      %8 = vector.load %arg1[%c0_5, %7, %c0_6, %c0_7] : memref<1x32x32x3xf32, #tpu.memory_space<vmem>>, vector<1x1x32x3xf32>
      %9 = vector.shape_cast %8 : vector<1x1x32x3xf32> to vector<32x3xf32>
      %c0_8 = arith.constant 0 : index
      %c0_9 = arith.constant 0 : index
      %c0_10 = arith.constant 0 : index
      %10 = vector.load %arg2[%c0_8, %c0_9, %c0_10] : memref<3x3x384xf32, #tpu.memory_space<vmem>>, vector<1x3x384xf32>
      %11 = vector.shape_cast %10 : vector<1x3x384xf32> to vector<3x384xf32>
      %cst_11 = arith.constant dense<0.000000e+00> : vector<32x384xf32>
      %12 = tpu.matmul %9, %11, %cst_11 {dimension_numbers = #tpu.dot_dimension_numbers<[1], [0], [0], [1], [0, 0, 1, 1], [], []>} : vector<32x3xf32>, vector<3x384xf32>, vector<32x384xf32> -> vector<32x384xf32>
      %13 = vector.extract_strided_slice %12 {offsets = [0, 0], sizes = [30, 128], strides = [1, 1]} : vector<32x384xf32> to vector<30x128xf32>
      %14 = arith.addf %5, %13 : vector<30x128xf32>
      %15 = vector.extract_strided_slice %12 {offsets = [1, 128], sizes = [30, 128], strides = [1, 1]} : vector<32x384xf32> to vector<30x128xf32>
      %16 = arith.addf %14, %15 : vector<30x128xf32>
      %17 = vector.extract_strided_slice %12 {offsets = [2, 256], sizes = [30, 128], strides = [1, 1]} : vector<32x384xf32> to vector<30x128xf32>
      %18 = arith.addf %16, %17 : vector<30x128xf32>
      %c1_i32_12 = arith.constant 1 : i32
      %19 = arith.addi %4, %c1_i32_12 : i32
      %c0_13 = arith.constant 0 : index
      %20 = arith.index_cast %19 : i32 to index
      %c0_14 = arith.constant 0 : index
      %c0_15 = arith.constant 0 : index
      %21 = vector.load %arg1[%c0_13, %20, %c0_14, %c0_15] : memref<1x32x32x3xf32, #tpu.memory_space<vmem>>, vector<1x1x32x3xf32>
      %22 = vector.shape_cast %21 : vector<1x1x32x3xf32> to vector<32x3xf32>
      %c1 = arith.constant 1 : index
      %c0_16 = arith.constant 0 : index
      %c0_17 = arith.constant 0 : index
      %23 = vector.load %arg2[%c1, %c0_16, %c0_17] : memref<3x3x384xf32, #tpu.memory_space<vmem>>, vector<1x3x384xf32>
      %24 = vector.shape_cast %23 : vector<1x3x384xf32> to vector<3x384xf32>
      %cst_18 = arith.constant dense<0.000000e+00> : vector<32x384xf32>
      %25 = tpu.matmul %22, %24, %cst_18 {dimension_numbers = #tpu.dot_dimension_numbers<[1], [0], [0], [1], [0, 0, 1, 1], [], []>} : vector<32x3xf32>, vector<3x384xf32>, vector<32x384xf32> -> vector<32x384xf32>
      %26 = vector.extract_strided_slice %25 {offsets = [0, 0], sizes = [30, 128], strides = [1, 1]} : vector<32x384xf32> to vector<30x128xf32>
      %27 = arith.addf %18, %26 : vector<30x128xf32>
      %28 = vector.extract_strided_slice %25 {offsets = [1, 128], sizes = [30, 128], strides = [1, 1]} : vector<32x384xf32> to vector<30x128xf32>
      %29 = arith.addf %27, %28 : vector<30x128xf32>
      %30 = vector.extract_strided_slice %25 {offsets = [2, 256], sizes = [30, 128], strides = [1, 1]} : vector<32x384xf32> to vector<30x128xf32>
      %31 = arith.addf %29, %30 : vector<30x128xf32>
      %c2_i32_19 = arith.constant 2 : i32
      %32 = arith.addi %4, %c2_i32_19 : i32
      %c0_20 = arith.constant 0 : index
      %33 = arith.index_cast %32 : i32 to index
      %c0_21 = arith.constant 0 : index
      %c0_22 = arith.constant 0 : index
      %34 = vector.load %arg1[%c0_20, %33, %c0_21, %c0_22] : memref<1x32x32x3xf32, #tpu.memory_space<vmem>>, vector<1x1x32x3xf32>
      %35 = vector.shape_cast %34 : vector<1x1x32x3xf32> to vector<32x3xf32>
      %c2 = arith.constant 2 : index
      %c0_23 = arith.constant 0 : index
      %c0_24 = arith.constant 0 : index
      %36 = vector.load %arg2[%c2, %c0_23, %c0_24] : memref<3x3x384xf32, #tpu.memory_space<vmem>>, vector<1x3x384xf32>
      %37 = vector.shape_cast %36 : vector<1x3x384xf32> to vector<3x384xf32>
      %cst_25 = arith.constant dense<0.000000e+00> : vector<32x384xf32>
      %38 = tpu.matmul %35, %37, %cst_25 {dimension_numbers = #tpu.dot_dimension_numbers<[1], [0], [0], [1], [0, 0, 1, 1], [], []>} : vector<32x3xf32>, vector<3x384xf32>, vector<32x384xf32> -> vector<32x384xf32>
      %39 = vector.extract_strided_slice %38 {offsets = [0, 0], sizes = [30, 128], strides = [1, 1]} : vector<32x384xf32> to vector<30x128xf32>
      %40 = arith.addf %31, %39 : vector<30x128xf32>
      %41 = vector.extract_strided_slice %38 {offsets = [1, 128], sizes = [30, 128], strides = [1, 1]} : vector<32x384xf32> to vector<30x128xf32>
      %42 = arith.addf %40, %41 : vector<30x128xf32>
      %43 = vector.extract_strided_slice %38 {offsets = [2, 256], sizes = [30, 128], strides = [1, 1]} : vector<32x384xf32> to vector<30x128xf32>
      %44 = arith.addf %42, %43 : vector<30x128xf32>
      %45 = vector.broadcast %0 : vector<1x128xf32> to vector<30x128xf32>
      %46 = arith.addf %44, %45 : vector<30x128xf32>
      %c2_i32_26 = arith.constant 2 : i32
      %47 = arith.muli %c2_i32_26, %3 : i32
      %c1_i32_27 = arith.constant 1 : i32
      %48 = arith.addi %47, %c1_i32_27 : i32
      %cst_28 = arith.constant 0.000000e+00 : f32
      %49 = vector.broadcast %cst_28 : f32 to vector<30x128xf32>
      %c0_i32_29 = arith.constant 0 : i32
      %50 = arith.addi %48, %c0_i32_29 : i32
      %c0_30 = arith.constant 0 : index
      %51 = arith.index_cast %50 : i32 to index
      %c0_31 = arith.constant 0 : index
      %c0_32 = arith.constant 0 : index
      %52 = vector.load %arg1[%c0_30, %51, %c0_31, %c0_32] : memref<1x32x32x3xf32, #tpu.memory_space<vmem>>, vector<1x1x32x3xf32>
      %53 = vector.shape_cast %52 : vector<1x1x32x3xf32> to vector<32x3xf32>
      %c0_33 = arith.constant 0 : index
      %c0_34 = arith.constant 0 : index
      %c0_35 = arith.constant 0 : index
      %54 = vector.load %arg2[%c0_33, %c0_34, %c0_35] : memref<3x3x384xf32, #tpu.memory_space<vmem>>, vector<1x3x384xf32>
      %55 = vector.shape_cast %54 : vector<1x3x384xf32> to vector<3x384xf32>
      %cst_36 = arith.constant dense<0.000000e+00> : vector<32x384xf32>
      %56 = tpu.matmul %53, %55, %cst_36 {dimension_numbers = #tpu.dot_dimension_numbers<[1], [0], [0], [1], [0, 0, 1, 1], [], []>} : vector<32x3xf32>, vector<3x384xf32>, vector<32x384xf32> -> vector<32x384xf32>
      %57 = vector.extract_strided_slice %56 {offsets = [0, 0], sizes = [30, 128], strides = [1, 1]} : vector<32x384xf32> to vector<30x128xf32>
      %58 = arith.addf %49, %57 : vector<30x128xf32>
      %59 = vector.extract_strided_slice %56 {offsets = [1, 128], sizes = [30, 128], strides = [1, 1]} : vector<32x384xf32> to vector<30x128xf32>
      %60 = arith.addf %58, %59 : vector<30x128xf32>
      %61 = vector.extract_strided_slice %56 {offsets = [2, 256], sizes = [30, 128], strides = [1, 1]} : vector<32x384xf32> to vector<30x128xf32>
      %62 = arith.addf %60, %61 : vector<30x128xf32>
      %c1_i32_37 = arith.constant 1 : i32
      %63 = arith.addi %48, %c1_i32_37 : i32
      %c0_38 = arith.constant 0 : index
      %64 = arith.index_cast %63 : i32 to index
      %c0_39 = arith.constant 0 : index
      %c0_40 = arith.constant 0 : index
      %65 = vector.load %arg1[%c0_38, %64, %c0_39, %c0_40] : memref<1x32x32x3xf32, #tpu.memory_space<vmem>>, vector<1x1x32x3xf32>
      %66 = vector.shape_cast %65 : vector<1x1x32x3xf32> to vector<32x3xf32>
      %c1_41 = arith.constant 1 : index
      %c0_42 = arith.constant 0 : index
      %c0_43 = arith.constant 0 : index
      %67 = vector.load %arg2[%c1_41, %c0_42, %c0_43] : memref<3x3x384xf32, #tpu.memory_space<vmem>>, vector<1x3x384xf32>
      %68 = vector.shape_cast %67 : vector<1x3x384xf32> to vector<3x384xf32>
      %cst_44 = arith.constant dense<0.000000e+00> : vector<32x384xf32>
      %69 = tpu.matmul %66, %68, %cst_44 {dimension_numbers = #tpu.dot_dimension_numbers<[1], [0], [0], [1], [0, 0, 1, 1], [], []>} : vector<32x3xf32>, vector<3x384xf32>, vector<32x384xf32> -> vector<32x384xf32>
      %70 = vector.extract_strided_slice %69 {offsets = [0, 0], sizes = [30, 128], strides = [1, 1]} : vector<32x384xf32> to vector<30x128xf32>
      %71 = arith.addf %62, %70 : vector<30x128xf32>
      %72 = vector.extract_strided_slice %69 {offsets = [1, 128], sizes = [30, 128], strides = [1, 1]} : vector<32x384xf32> to vector<30x128xf32>
      %73 = arith.addf %71, %72 : vector<30x128xf32>
      %74 = vector.extract_strided_slice %69 {offsets = [2, 256], sizes = [30, 128], strides = [1, 1]} : vector<32x384xf32> to vector<30x128xf32>
      %75 = arith.addf %73, %74 : vector<30x128xf32>
      %c2_i32_45 = arith.constant 2 : i32
      %76 = arith.addi %48, %c2_i32_45 : i32
      %c0_46 = arith.constant 0 : index
      %77 = arith.index_cast %76 : i32 to index
      %c0_47 = arith.constant 0 : index
      %c0_48 = arith.constant 0 : index
      %78 = vector.load %arg1[%c0_46, %77, %c0_47, %c0_48] : memref<1x32x32x3xf32, #tpu.memory_space<vmem>>, vector<1x1x32x3xf32>
      %79 = vector.shape_cast %78 : vector<1x1x32x3xf32> to vector<32x3xf32>
      %c2_49 = arith.constant 2 : index
      %c0_50 = arith.constant 0 : index
      %c0_51 = arith.constant 0 : index
      %80 = vector.load %arg2[%c2_49, %c0_50, %c0_51] : memref<3x3x384xf32, #tpu.memory_space<vmem>>, vector<1x3x384xf32>
      %81 = vector.shape_cast %80 : vector<1x3x384xf32> to vector<3x384xf32>
      %cst_52 = arith.constant dense<0.000000e+00> : vector<32x384xf32>
      %82 = tpu.matmul %79, %81, %cst_52 {dimension_numbers = #tpu.dot_dimension_numbers<[1], [0], [0], [1], [0, 0, 1, 1], [], []>} : vector<32x3xf32>, vector<3x384xf32>, vector<32x384xf32> -> vector<32x384xf32>
      %83 = vector.extract_strided_slice %82 {offsets = [0, 0], sizes = [30, 128], strides = [1, 1]} : vector<32x384xf32> to vector<30x128xf32>
      %84 = arith.addf %75, %83 : vector<30x128xf32>
      %85 = vector.extract_strided_slice %82 {offsets = [1, 128], sizes = [30, 128], strides = [1, 1]} : vector<32x384xf32> to vector<30x128xf32>
      %86 = arith.addf %84, %85 : vector<30x128xf32>
      %87 = vector.extract_strided_slice %82 {offsets = [2, 256], sizes = [30, 128], strides = [1, 1]} : vector<32x384xf32> to vector<30x128xf32>
      %88 = arith.addf %86, %87 : vector<30x128xf32>
      %89 = vector.broadcast %0 : vector<1x128xf32> to vector<30x128xf32>
      %90 = arith.addf %88, %89 : vector<30x128xf32>
      %91 = arith.maximumf %46, %90 : vector<30x128xf32>
      %cst_53 = arith.constant 0.000000e+00 : f32
      %92 = vector.broadcast %cst_53 : f32 to vector<30x128xf32>
      %93 = arith.maximumf %91, %92 : vector<30x128xf32>
      %c0_54 = arith.constant 0 : index
      %c0_55 = arith.constant 0 : index
      %94 = vector.load %arg5[%c0_54, %c0_55] : memref<30x128xf32, #tpu.memory_space<vmem>>, vector<30x128xf32>
      tpu.vector_store %arg5[%c0_54, %c0_55], %93 {strides = array<i32>} : memref<30x128xf32, #tpu.memory_space<vmem>>, vector<30x128xf32>,
      %c0_56 = arith.constant 0 : index
      %c0_57 = arith.constant 0 : index
      %95 = tpu.strided_load %arg5[%c0_56, %c0_57] {strides = array<i32: 2, 1>} : memref<30x128xf32, #tpu.memory_space<vmem>>, vector<15x128xf32>
      %c1_58 = arith.constant 1 : index
      %c0_59 = arith.constant 0 : index
      %96 = tpu.strided_load %arg5[%c1_58, %c0_59] {strides = array<i32: 2, 1>} : memref<30x128xf32, #tpu.memory_space<vmem>>, vector<15x128xf32>
      %97 = arith.maximumf %95, %96 : vector<15x128xf32>
      %c0_60 = arith.constant 0 : index
      %98 = arith.index_cast %3 : i32 to index
      %c0_61 = arith.constant 0 : index
      %c0_62 = arith.constant 0 : index
      %99 = vector.load %arg4[%c0_60, %98, %c0_61, %c0_62] : memref<1x15x15x128xf32, #tpu.memory_space<vmem>>, vector<1x1x15x128xf32>
      %100 = vector.shape_cast %99 : vector<1x1x15x128xf32> to vector<15x128xf32>
      %101 = vector.shape_cast %97 : vector<15x128xf32> to vector<1x1x15x128xf32>
      tpu.vector_store %arg4[%c0_60, %98, %c0_61, %c0_62], %101 {strides = array<i32>} : memref<1x15x15x128xf32, #tpu.memory_space<vmem>>, vector<1x1x15x128xf32>,
    }
    %c15_i32_1 = arith.constant 15 : i32
    return
  }
  func.func @transform_0(%arg0: i32) -> (i32, i32, i32, i32) {
    %c0_i32 = arith.constant 0 : i32
    %c0_i32_0 = arith.constant 0 : i32
    %c0_i32_1 = arith.constant 0 : i32
    %c0_i32_2 = arith.constant 0 : i32
    return %arg0, %c0_i32, %c0_i32_0, %c0_i32_1 : i32, i32, i32, i32
  }
  func.func @transform_1(%arg0: i32) -> (i32, i32, i32) {
    %c0_i32 = arith.constant 0 : i32
    %c0_i32_0 = arith.constant 0 : i32
    %c0_i32_1 = arith.constant 0 : i32
    %c0_i32_2 = arith.constant 0 : i32
    return %c0_i32, %c0_i32_0, %c0_i32_1 : i32, i32, i32
  }
  func.func @transform_2(%arg0: i32) -> (i32, i32) {
    %c0_i32 = arith.constant 0 : i32
    %c0_i32_0 = arith.constant 0 : i32
    %c0_i32_1 = arith.constant 0 : i32
    return %c0_i32, %c0_i32_0 : i32, i32
  }
  func.func @transform_3(%arg0: i32) -> (i32, i32, i32, i32) {
    %c0_i32 = arith.constant 0 : i32
    %c0_i32_0 = arith.constant 0 : i32
    %c0_i32_1 = arith.constant 0 : i32
    %c0_i32_2 = arith.constant 0 : i32
    return %arg0, %c0_i32, %c0_i32_0, %c0_i32_1 : i32, i32, i32, i32
  }
}

module attributes {stable_mosaic.version = 11 : i64} {
  func.func @_stage_kernel(%arg0: i32, %arg1: memref<1x6x6x128xf32, #tpu.memory_space<vmem>>, %arg2: memref<3x128x384xf32, #tpu.memory_space<vmem>>, %arg3: memref<1x128xf32, #tpu.memory_space<vmem>>, %arg4: memref<1x2x2x128xf32, #tpu.memory_space<vmem>>, %arg5: memref<4x128xf32, #tpu.memory_space<vmem>>) attributes {dimension_semantics = [#tpu.dimension_semantics<parallel>], iteration_bounds = array<i64: 2>, scalar_prefetch = 0 : i64, scratch_operands = 1 : i64, tpu.core_type = #tpu.core_type<tc>, window_params = [{transform_indices = @transform_0, window_bounds = array<i64: 1, 6, 6, 128>}, {pipeline_mode = #tpu.pipeline_mode<synchronous>, transform_indices = @transform_1, window_bounds = array<i64: 3, 128, 384>}, {pipeline_mode = #tpu.pipeline_mode<synchronous>, transform_indices = @transform_2, window_bounds = array<i64: 1, 128>}, {transform_indices = @transform_3, window_bounds = array<i64: 1, 2, 2, 128>}]} {
    %c0 = arith.constant 0 : index
    %c0_0 = arith.constant 0 : index
    %0 = vector.load %arg3[%c0, %c0_0] : memref<1x128xf32, #tpu.memory_space<vmem>>, vector<1x128xf32>
    %c0_i32 = arith.constant 0 : i32
    %c2_i32 = arith.constant 2 : i32
    %1 = arith.addi %c0_i32, %c2_i32 : i32
    %c1_i32 = arith.constant 1 : i32
    scf.for %arg6 = %c0_i32 to %1 step %c1_i32  : i32 {
      %c1_i32_2 = arith.constant 1 : i32
      %2 = arith.muli %arg6, %c1_i32_2 : i32
      %c0_i32_3 = arith.constant 0 : i32
      %3 = arith.addi %c0_i32_3, %2 : i32
      %c2_i32_4 = arith.constant 2 : i32
      %4 = arith.muli %c2_i32_4, %3 : i32
      %cst = arith.constant 0.000000e+00 : f32
      %5 = vector.broadcast %cst : f32 to vector<4x128xf32>
      %c0_i32_5 = arith.constant 0 : i32
      %6 = arith.addi %4, %c0_i32_5 : i32
      %c0_6 = arith.constant 0 : index
      %7 = arith.index_cast %6 : i32 to index
      %c0_7 = arith.constant 0 : index
      %c0_8 = arith.constant 0 : index
      %8 = vector.load %arg1[%c0_6, %7, %c0_7, %c0_8] : memref<1x6x6x128xf32, #tpu.memory_space<vmem>>, vector<1x1x6x128xf32>
      %9 = vector.shape_cast %8 : vector<1x1x6x128xf32> to vector<6x128xf32>
      %c0_9 = arith.constant 0 : index
      %c0_10 = arith.constant 0 : index
      %c0_11 = arith.constant 0 : index
      %10 = vector.load %arg2[%c0_9, %c0_10, %c0_11] : memref<3x128x384xf32, #tpu.memory_space<vmem>>, vector<1x128x384xf32>
      %11 = vector.shape_cast %10 : vector<1x128x384xf32> to vector<128x384xf32>
      %cst_12 = arith.constant dense<0.000000e+00> : vector<6x384xf32>
      %12 = tpu.matmul %9, %11, %cst_12 {dimension_numbers = #tpu.dot_dimension_numbers<[1], [0], [0], [1], [0, 0, 1, 1], [], []>} : vector<6x128xf32>, vector<128x384xf32>, vector<6x384xf32> -> vector<6x384xf32>
      %13 = vector.extract_strided_slice %12 {offsets = [0, 0], sizes = [4, 128], strides = [1, 1]} : vector<6x384xf32> to vector<4x128xf32>
      %14 = arith.addf %5, %13 : vector<4x128xf32>
      %15 = vector.extract_strided_slice %12 {offsets = [1, 128], sizes = [4, 128], strides = [1, 1]} : vector<6x384xf32> to vector<4x128xf32>
      %16 = arith.addf %14, %15 : vector<4x128xf32>
      %17 = vector.extract_strided_slice %12 {offsets = [2, 256], sizes = [4, 128], strides = [1, 1]} : vector<6x384xf32> to vector<4x128xf32>
      %18 = arith.addf %16, %17 : vector<4x128xf32>
      %c1_i32_13 = arith.constant 1 : i32
      %19 = arith.addi %4, %c1_i32_13 : i32
      %c0_14 = arith.constant 0 : index
      %20 = arith.index_cast %19 : i32 to index
      %c0_15 = arith.constant 0 : index
      %c0_16 = arith.constant 0 : index
      %21 = vector.load %arg1[%c0_14, %20, %c0_15, %c0_16] : memref<1x6x6x128xf32, #tpu.memory_space<vmem>>, vector<1x1x6x128xf32>
      %22 = vector.shape_cast %21 : vector<1x1x6x128xf32> to vector<6x128xf32>
      %c1 = arith.constant 1 : index
      %c0_17 = arith.constant 0 : index
      %c0_18 = arith.constant 0 : index
      %23 = vector.load %arg2[%c1, %c0_17, %c0_18] : memref<3x128x384xf32, #tpu.memory_space<vmem>>, vector<1x128x384xf32>
      %24 = vector.shape_cast %23 : vector<1x128x384xf32> to vector<128x384xf32>
      %cst_19 = arith.constant dense<0.000000e+00> : vector<6x384xf32>
      %25 = tpu.matmul %22, %24, %cst_19 {dimension_numbers = #tpu.dot_dimension_numbers<[1], [0], [0], [1], [0, 0, 1, 1], [], []>} : vector<6x128xf32>, vector<128x384xf32>, vector<6x384xf32> -> vector<6x384xf32>
      %26 = vector.extract_strided_slice %25 {offsets = [0, 0], sizes = [4, 128], strides = [1, 1]} : vector<6x384xf32> to vector<4x128xf32>
      %27 = arith.addf %18, %26 : vector<4x128xf32>
      %28 = vector.extract_strided_slice %25 {offsets = [1, 128], sizes = [4, 128], strides = [1, 1]} : vector<6x384xf32> to vector<4x128xf32>
      %29 = arith.addf %27, %28 : vector<4x128xf32>
      %30 = vector.extract_strided_slice %25 {offsets = [2, 256], sizes = [4, 128], strides = [1, 1]} : vector<6x384xf32> to vector<4x128xf32>
      %31 = arith.addf %29, %30 : vector<4x128xf32>
      %c2_i32_20 = arith.constant 2 : i32
      %32 = arith.addi %4, %c2_i32_20 : i32
      %c0_21 = arith.constant 0 : index
      %33 = arith.index_cast %32 : i32 to index
      %c0_22 = arith.constant 0 : index
      %c0_23 = arith.constant 0 : index
      %34 = vector.load %arg1[%c0_21, %33, %c0_22, %c0_23] : memref<1x6x6x128xf32, #tpu.memory_space<vmem>>, vector<1x1x6x128xf32>
      %35 = vector.shape_cast %34 : vector<1x1x6x128xf32> to vector<6x128xf32>
      %c2 = arith.constant 2 : index
      %c0_24 = arith.constant 0 : index
      %c0_25 = arith.constant 0 : index
      %36 = vector.load %arg2[%c2, %c0_24, %c0_25] : memref<3x128x384xf32, #tpu.memory_space<vmem>>, vector<1x128x384xf32>
      %37 = vector.shape_cast %36 : vector<1x128x384xf32> to vector<128x384xf32>
      %cst_26 = arith.constant dense<0.000000e+00> : vector<6x384xf32>
      %38 = tpu.matmul %35, %37, %cst_26 {dimension_numbers = #tpu.dot_dimension_numbers<[1], [0], [0], [1], [0, 0, 1, 1], [], []>} : vector<6x128xf32>, vector<128x384xf32>, vector<6x384xf32> -> vector<6x384xf32>
      %39 = vector.extract_strided_slice %38 {offsets = [0, 0], sizes = [4, 128], strides = [1, 1]} : vector<6x384xf32> to vector<4x128xf32>
      %40 = arith.addf %31, %39 : vector<4x128xf32>
      %41 = vector.extract_strided_slice %38 {offsets = [1, 128], sizes = [4, 128], strides = [1, 1]} : vector<6x384xf32> to vector<4x128xf32>
      %42 = arith.addf %40, %41 : vector<4x128xf32>
      %43 = vector.extract_strided_slice %38 {offsets = [2, 256], sizes = [4, 128], strides = [1, 1]} : vector<6x384xf32> to vector<4x128xf32>
      %44 = arith.addf %42, %43 : vector<4x128xf32>
      %45 = vector.broadcast %0 : vector<1x128xf32> to vector<4x128xf32>
      %46 = arith.addf %44, %45 : vector<4x128xf32>
      %c2_i32_27 = arith.constant 2 : i32
      %47 = arith.muli %c2_i32_27, %3 : i32
      %c1_i32_28 = arith.constant 1 : i32
      %48 = arith.addi %47, %c1_i32_28 : i32
      %cst_29 = arith.constant 0.000000e+00 : f32
      %49 = vector.broadcast %cst_29 : f32 to vector<4x128xf32>
      %c0_i32_30 = arith.constant 0 : i32
      %50 = arith.addi %48, %c0_i32_30 : i32
      %c0_31 = arith.constant 0 : index
      %51 = arith.index_cast %50 : i32 to index
      %c0_32 = arith.constant 0 : index
      %c0_33 = arith.constant 0 : index
      %52 = vector.load %arg1[%c0_31, %51, %c0_32, %c0_33] : memref<1x6x6x128xf32, #tpu.memory_space<vmem>>, vector<1x1x6x128xf32>
      %53 = vector.shape_cast %52 : vector<1x1x6x128xf32> to vector<6x128xf32>
      %c0_34 = arith.constant 0 : index
      %c0_35 = arith.constant 0 : index
      %c0_36 = arith.constant 0 : index
      %54 = vector.load %arg2[%c0_34, %c0_35, %c0_36] : memref<3x128x384xf32, #tpu.memory_space<vmem>>, vector<1x128x384xf32>
      %55 = vector.shape_cast %54 : vector<1x128x384xf32> to vector<128x384xf32>
      %cst_37 = arith.constant dense<0.000000e+00> : vector<6x384xf32>
      %56 = tpu.matmul %53, %55, %cst_37 {dimension_numbers = #tpu.dot_dimension_numbers<[1], [0], [0], [1], [0, 0, 1, 1], [], []>} : vector<6x128xf32>, vector<128x384xf32>, vector<6x384xf32> -> vector<6x384xf32>
      %57 = vector.extract_strided_slice %56 {offsets = [0, 0], sizes = [4, 128], strides = [1, 1]} : vector<6x384xf32> to vector<4x128xf32>
      %58 = arith.addf %49, %57 : vector<4x128xf32>
      %59 = vector.extract_strided_slice %56 {offsets = [1, 128], sizes = [4, 128], strides = [1, 1]} : vector<6x384xf32> to vector<4x128xf32>
      %60 = arith.addf %58, %59 : vector<4x128xf32>
      %61 = vector.extract_strided_slice %56 {offsets = [2, 256], sizes = [4, 128], strides = [1, 1]} : vector<6x384xf32> to vector<4x128xf32>
      %62 = arith.addf %60, %61 : vector<4x128xf32>
      %c1_i32_38 = arith.constant 1 : i32
      %63 = arith.addi %48, %c1_i32_38 : i32
      %c0_39 = arith.constant 0 : index
      %64 = arith.index_cast %63 : i32 to index
      %c0_40 = arith.constant 0 : index
      %c0_41 = arith.constant 0 : index
      %65 = vector.load %arg1[%c0_39, %64, %c0_40, %c0_41] : memref<1x6x6x128xf32, #tpu.memory_space<vmem>>, vector<1x1x6x128xf32>
      %66 = vector.shape_cast %65 : vector<1x1x6x128xf32> to vector<6x128xf32>
      %c1_42 = arith.constant 1 : index
      %c0_43 = arith.constant 0 : index
      %c0_44 = arith.constant 0 : index
      %67 = vector.load %arg2[%c1_42, %c0_43, %c0_44] : memref<3x128x384xf32, #tpu.memory_space<vmem>>, vector<1x128x384xf32>
      %68 = vector.shape_cast %67 : vector<1x128x384xf32> to vector<128x384xf32>
      %cst_45 = arith.constant dense<0.000000e+00> : vector<6x384xf32>
      %69 = tpu.matmul %66, %68, %cst_45 {dimension_numbers = #tpu.dot_dimension_numbers<[1], [0], [0], [1], [0, 0, 1, 1], [], []>} : vector<6x128xf32>, vector<128x384xf32>, vector<6x384xf32> -> vector<6x384xf32>
      %70 = vector.extract_strided_slice %69 {offsets = [0, 0], sizes = [4, 128], strides = [1, 1]} : vector<6x384xf32> to vector<4x128xf32>
      %71 = arith.addf %62, %70 : vector<4x128xf32>
      %72 = vector.extract_strided_slice %69 {offsets = [1, 128], sizes = [4, 128], strides = [1, 1]} : vector<6x384xf32> to vector<4x128xf32>
      %73 = arith.addf %71, %72 : vector<4x128xf32>
      %74 = vector.extract_strided_slice %69 {offsets = [2, 256], sizes = [4, 128], strides = [1, 1]} : vector<6x384xf32> to vector<4x128xf32>
      %75 = arith.addf %73, %74 : vector<4x128xf32>
      %c2_i32_46 = arith.constant 2 : i32
      %76 = arith.addi %48, %c2_i32_46 : i32
      %c0_47 = arith.constant 0 : index
      %77 = arith.index_cast %76 : i32 to index
      %c0_48 = arith.constant 0 : index
      %c0_49 = arith.constant 0 : index
      %78 = vector.load %arg1[%c0_47, %77, %c0_48, %c0_49] : memref<1x6x6x128xf32, #tpu.memory_space<vmem>>, vector<1x1x6x128xf32>
      %79 = vector.shape_cast %78 : vector<1x1x6x128xf32> to vector<6x128xf32>
      %c2_50 = arith.constant 2 : index
      %c0_51 = arith.constant 0 : index
      %c0_52 = arith.constant 0 : index
      %80 = vector.load %arg2[%c2_50, %c0_51, %c0_52] : memref<3x128x384xf32, #tpu.memory_space<vmem>>, vector<1x128x384xf32>
      %81 = vector.shape_cast %80 : vector<1x128x384xf32> to vector<128x384xf32>
      %cst_53 = arith.constant dense<0.000000e+00> : vector<6x384xf32>
      %82 = tpu.matmul %79, %81, %cst_53 {dimension_numbers = #tpu.dot_dimension_numbers<[1], [0], [0], [1], [0, 0, 1, 1], [], []>} : vector<6x128xf32>, vector<128x384xf32>, vector<6x384xf32> -> vector<6x384xf32>
      %83 = vector.extract_strided_slice %82 {offsets = [0, 0], sizes = [4, 128], strides = [1, 1]} : vector<6x384xf32> to vector<4x128xf32>
      %84 = arith.addf %75, %83 : vector<4x128xf32>
      %85 = vector.extract_strided_slice %82 {offsets = [1, 128], sizes = [4, 128], strides = [1, 1]} : vector<6x384xf32> to vector<4x128xf32>
      %86 = arith.addf %84, %85 : vector<4x128xf32>
      %87 = vector.extract_strided_slice %82 {offsets = [2, 256], sizes = [4, 128], strides = [1, 1]} : vector<6x384xf32> to vector<4x128xf32>
      %88 = arith.addf %86, %87 : vector<4x128xf32>
      %89 = vector.broadcast %0 : vector<1x128xf32> to vector<4x128xf32>
      %90 = arith.addf %88, %89 : vector<4x128xf32>
      %91 = arith.maximumf %46, %90 : vector<4x128xf32>
      %cst_54 = arith.constant 0.000000e+00 : f32
      %92 = vector.broadcast %cst_54 : f32 to vector<4x128xf32>
      %93 = arith.maximumf %91, %92 : vector<4x128xf32>
      %c0_55 = arith.constant 0 : index
      %c0_56 = arith.constant 0 : index
      %94 = vector.load %arg5[%c0_55, %c0_56] : memref<4x128xf32, #tpu.memory_space<vmem>>, vector<4x128xf32>
      tpu.vector_store %arg5[%c0_55, %c0_56], %93 {strides = array<i32>} : memref<4x128xf32, #tpu.memory_space<vmem>>, vector<4x128xf32>,
      %c0_57 = arith.constant 0 : index
      %c0_58 = arith.constant 0 : index
      %95 = tpu.strided_load %arg5[%c0_57, %c0_58] {strides = array<i32: 2, 1>} : memref<4x128xf32, #tpu.memory_space<vmem>>, vector<2x128xf32>
      %c1_59 = arith.constant 1 : index
      %c0_60 = arith.constant 0 : index
      %96 = tpu.strided_load %arg5[%c1_59, %c0_60] {strides = array<i32: 2, 1>} : memref<4x128xf32, #tpu.memory_space<vmem>>, vector<2x128xf32>
      %97 = arith.maximumf %95, %96 : vector<2x128xf32>
      %c0_61 = arith.constant 0 : index
      %98 = arith.index_cast %3 : i32 to index
      %c0_62 = arith.constant 0 : index
      %c0_63 = arith.constant 0 : index
      %99 = vector.load %arg4[%c0_61, %98, %c0_62, %c0_63] : memref<1x2x2x128xf32, #tpu.memory_space<vmem>>, vector<1x1x2x128xf32>
      %100 = vector.shape_cast %99 : vector<1x1x2x128xf32> to vector<2x128xf32>
      %101 = vector.shape_cast %97 : vector<2x128xf32> to vector<1x1x2x128xf32>
      tpu.vector_store %arg4[%c0_61, %98, %c0_62, %c0_63], %101 {strides = array<i32>} : memref<1x2x2x128xf32, #tpu.memory_space<vmem>>, vector<1x1x2x128xf32>,
    }
    %c2_i32_1 = arith.constant 2 : i32
    return
  }
  func.func @transform_0(%arg0: i32) -> (i32, i32, i32, i32) {
    %c0_i32 = arith.constant 0 : i32
    %c0_i32_0 = arith.constant 0 : i32
    %c0_i32_1 = arith.constant 0 : i32
    %c0_i32_2 = arith.constant 0 : i32
    return %arg0, %c0_i32, %c0_i32_0, %c0_i32_1 : i32, i32, i32, i32
  }
  func.func @transform_1(%arg0: i32) -> (i32, i32, i32) {
    %c0_i32 = arith.constant 0 : i32
    %c0_i32_0 = arith.constant 0 : i32
    %c0_i32_1 = arith.constant 0 : i32
    %c0_i32_2 = arith.constant 0 : i32
    return %c0_i32, %c0_i32_0, %c0_i32_1 : i32, i32, i32
  }
  func.func @transform_2(%arg0: i32) -> (i32, i32) {
    %c0_i32 = arith.constant 0 : i32
    %c0_i32_0 = arith.constant 0 : i32
    %c0_i32_1 = arith.constant 0 : i32
    return %c0_i32, %c0_i32_0 : i32, i32
  }
  func.func @transform_3(%arg0: i32) -> (i32, i32, i32, i32) {
    %c0_i32 = arith.constant 0 : i32
    %c0_i32_0 = arith.constant 0 : i32
    %c0_i32_1 = arith.constant 0 : i32
    %c0_i32_2 = arith.constant 0 : i32
    return %arg0, %c0_i32, %c0_i32_0, %c0_i32_1 : i32, i32, i32, i32
  }
}

module attributes {stable_mosaic.version = 11 : i64} {
  func.func @_stage_kernel(%arg0: i32, %arg1: memref<1x15x15x128xf32, #tpu.memory_space<vmem>>, %arg2: memref<3x128x384xf32, #tpu.memory_space<vmem>>, %arg3: memref<1x128xf32, #tpu.memory_space<vmem>>, %arg4: memref<1x6x6x128xf32, #tpu.memory_space<vmem>>, %arg5: memref<13x128xf32, #tpu.memory_space<vmem>>) attributes {dimension_semantics = [#tpu.dimension_semantics<parallel>], iteration_bounds = array<i64: 2>, scalar_prefetch = 0 : i64, scratch_operands = 1 : i64, tpu.core_type = #tpu.core_type<tc>, window_params = [{transform_indices = @transform_0, window_bounds = array<i64: 1, 15, 15, 128>}, {pipeline_mode = #tpu.pipeline_mode<synchronous>, transform_indices = @transform_1, window_bounds = array<i64: 3, 128, 384>}, {pipeline_mode = #tpu.pipeline_mode<synchronous>, transform_indices = @transform_2, window_bounds = array<i64: 1, 128>}, {transform_indices = @transform_3, window_bounds = array<i64: 1, 6, 6, 128>}]} {
    %c0 = arith.constant 0 : index
    %c0_0 = arith.constant 0 : index
    %0 = vector.load %arg3[%c0, %c0_0] : memref<1x128xf32, #tpu.memory_space<vmem>>, vector<1x128xf32>
    %c0_i32 = arith.constant 0 : i32
    %c6_i32 = arith.constant 6 : i32
    %1 = arith.addi %c0_i32, %c6_i32 : i32
    %c1_i32 = arith.constant 1 : i32
    scf.for %arg6 = %c0_i32 to %1 step %c1_i32  : i32 {
      %c1_i32_2 = arith.constant 1 : i32
      %2 = arith.muli %arg6, %c1_i32_2 : i32
      %c0_i32_3 = arith.constant 0 : i32
      %3 = arith.addi %c0_i32_3, %2 : i32
      %c2_i32 = arith.constant 2 : i32
      %4 = arith.muli %c2_i32, %3 : i32
      %cst = arith.constant 0.000000e+00 : f32
      %5 = vector.broadcast %cst : f32 to vector<13x128xf32>
      %c0_i32_4 = arith.constant 0 : i32
      %6 = arith.addi %4, %c0_i32_4 : i32
      %c0_5 = arith.constant 0 : index
      %7 = arith.index_cast %6 : i32 to index
      %c0_6 = arith.constant 0 : index
      %c0_7 = arith.constant 0 : index
      %8 = vector.load %arg1[%c0_5, %7, %c0_6, %c0_7] : memref<1x15x15x128xf32, #tpu.memory_space<vmem>>, vector<1x1x15x128xf32>
      %9 = vector.shape_cast %8 : vector<1x1x15x128xf32> to vector<15x128xf32>
      %c0_8 = arith.constant 0 : index
      %c0_9 = arith.constant 0 : index
      %c0_10 = arith.constant 0 : index
      %10 = vector.load %arg2[%c0_8, %c0_9, %c0_10] : memref<3x128x384xf32, #tpu.memory_space<vmem>>, vector<1x128x384xf32>
      %11 = vector.shape_cast %10 : vector<1x128x384xf32> to vector<128x384xf32>
      %cst_11 = arith.constant dense<0.000000e+00> : vector<15x384xf32>
      %12 = tpu.matmul %9, %11, %cst_11 {dimension_numbers = #tpu.dot_dimension_numbers<[1], [0], [0], [1], [0, 0, 1, 1], [], []>} : vector<15x128xf32>, vector<128x384xf32>, vector<15x384xf32> -> vector<15x384xf32>
      %13 = vector.extract_strided_slice %12 {offsets = [0, 0], sizes = [13, 128], strides = [1, 1]} : vector<15x384xf32> to vector<13x128xf32>
      %14 = arith.addf %5, %13 : vector<13x128xf32>
      %15 = vector.extract_strided_slice %12 {offsets = [1, 128], sizes = [13, 128], strides = [1, 1]} : vector<15x384xf32> to vector<13x128xf32>
      %16 = arith.addf %14, %15 : vector<13x128xf32>
      %17 = vector.extract_strided_slice %12 {offsets = [2, 256], sizes = [13, 128], strides = [1, 1]} : vector<15x384xf32> to vector<13x128xf32>
      %18 = arith.addf %16, %17 : vector<13x128xf32>
      %c1_i32_12 = arith.constant 1 : i32
      %19 = arith.addi %4, %c1_i32_12 : i32
      %c0_13 = arith.constant 0 : index
      %20 = arith.index_cast %19 : i32 to index
      %c0_14 = arith.constant 0 : index
      %c0_15 = arith.constant 0 : index
      %21 = vector.load %arg1[%c0_13, %20, %c0_14, %c0_15] : memref<1x15x15x128xf32, #tpu.memory_space<vmem>>, vector<1x1x15x128xf32>
      %22 = vector.shape_cast %21 : vector<1x1x15x128xf32> to vector<15x128xf32>
      %c1 = arith.constant 1 : index
      %c0_16 = arith.constant 0 : index
      %c0_17 = arith.constant 0 : index
      %23 = vector.load %arg2[%c1, %c0_16, %c0_17] : memref<3x128x384xf32, #tpu.memory_space<vmem>>, vector<1x128x384xf32>
      %24 = vector.shape_cast %23 : vector<1x128x384xf32> to vector<128x384xf32>
      %cst_18 = arith.constant dense<0.000000e+00> : vector<15x384xf32>
      %25 = tpu.matmul %22, %24, %cst_18 {dimension_numbers = #tpu.dot_dimension_numbers<[1], [0], [0], [1], [0, 0, 1, 1], [], []>} : vector<15x128xf32>, vector<128x384xf32>, vector<15x384xf32> -> vector<15x384xf32>
      %26 = vector.extract_strided_slice %25 {offsets = [0, 0], sizes = [13, 128], strides = [1, 1]} : vector<15x384xf32> to vector<13x128xf32>
      %27 = arith.addf %18, %26 : vector<13x128xf32>
      %28 = vector.extract_strided_slice %25 {offsets = [1, 128], sizes = [13, 128], strides = [1, 1]} : vector<15x384xf32> to vector<13x128xf32>
      %29 = arith.addf %27, %28 : vector<13x128xf32>
      %30 = vector.extract_strided_slice %25 {offsets = [2, 256], sizes = [13, 128], strides = [1, 1]} : vector<15x384xf32> to vector<13x128xf32>
      %31 = arith.addf %29, %30 : vector<13x128xf32>
      %c2_i32_19 = arith.constant 2 : i32
      %32 = arith.addi %4, %c2_i32_19 : i32
      %c0_20 = arith.constant 0 : index
      %33 = arith.index_cast %32 : i32 to index
      %c0_21 = arith.constant 0 : index
      %c0_22 = arith.constant 0 : index
      %34 = vector.load %arg1[%c0_20, %33, %c0_21, %c0_22] : memref<1x15x15x128xf32, #tpu.memory_space<vmem>>, vector<1x1x15x128xf32>
      %35 = vector.shape_cast %34 : vector<1x1x15x128xf32> to vector<15x128xf32>
      %c2 = arith.constant 2 : index
      %c0_23 = arith.constant 0 : index
      %c0_24 = arith.constant 0 : index
      %36 = vector.load %arg2[%c2, %c0_23, %c0_24] : memref<3x128x384xf32, #tpu.memory_space<vmem>>, vector<1x128x384xf32>
      %37 = vector.shape_cast %36 : vector<1x128x384xf32> to vector<128x384xf32>
      %cst_25 = arith.constant dense<0.000000e+00> : vector<15x384xf32>
      %38 = tpu.matmul %35, %37, %cst_25 {dimension_numbers = #tpu.dot_dimension_numbers<[1], [0], [0], [1], [0, 0, 1, 1], [], []>} : vector<15x128xf32>, vector<128x384xf32>, vector<15x384xf32> -> vector<15x384xf32>
      %39 = vector.extract_strided_slice %38 {offsets = [0, 0], sizes = [13, 128], strides = [1, 1]} : vector<15x384xf32> to vector<13x128xf32>
      %40 = arith.addf %31, %39 : vector<13x128xf32>
      %41 = vector.extract_strided_slice %38 {offsets = [1, 128], sizes = [13, 128], strides = [1, 1]} : vector<15x384xf32> to vector<13x128xf32>
      %42 = arith.addf %40, %41 : vector<13x128xf32>
      %43 = vector.extract_strided_slice %38 {offsets = [2, 256], sizes = [13, 128], strides = [1, 1]} : vector<15x384xf32> to vector<13x128xf32>
      %44 = arith.addf %42, %43 : vector<13x128xf32>
      %45 = vector.broadcast %0 : vector<1x128xf32> to vector<13x128xf32>
      %46 = arith.addf %44, %45 : vector<13x128xf32>
      %c2_i32_26 = arith.constant 2 : i32
      %47 = arith.muli %c2_i32_26, %3 : i32
      %c1_i32_27 = arith.constant 1 : i32
      %48 = arith.addi %47, %c1_i32_27 : i32
      %cst_28 = arith.constant 0.000000e+00 : f32
      %49 = vector.broadcast %cst_28 : f32 to vector<13x128xf32>
      %c0_i32_29 = arith.constant 0 : i32
      %50 = arith.addi %48, %c0_i32_29 : i32
      %c0_30 = arith.constant 0 : index
      %51 = arith.index_cast %50 : i32 to index
      %c0_31 = arith.constant 0 : index
      %c0_32 = arith.constant 0 : index
      %52 = vector.load %arg1[%c0_30, %51, %c0_31, %c0_32] : memref<1x15x15x128xf32, #tpu.memory_space<vmem>>, vector<1x1x15x128xf32>
      %53 = vector.shape_cast %52 : vector<1x1x15x128xf32> to vector<15x128xf32>
      %c0_33 = arith.constant 0 : index
      %c0_34 = arith.constant 0 : index
      %c0_35 = arith.constant 0 : index
      %54 = vector.load %arg2[%c0_33, %c0_34, %c0_35] : memref<3x128x384xf32, #tpu.memory_space<vmem>>, vector<1x128x384xf32>
      %55 = vector.shape_cast %54 : vector<1x128x384xf32> to vector<128x384xf32>
      %cst_36 = arith.constant dense<0.000000e+00> : vector<15x384xf32>
      %56 = tpu.matmul %53, %55, %cst_36 {dimension_numbers = #tpu.dot_dimension_numbers<[1], [0], [0], [1], [0, 0, 1, 1], [], []>} : vector<15x128xf32>, vector<128x384xf32>, vector<15x384xf32> -> vector<15x384xf32>
      %57 = vector.extract_strided_slice %56 {offsets = [0, 0], sizes = [13, 128], strides = [1, 1]} : vector<15x384xf32> to vector<13x128xf32>
      %58 = arith.addf %49, %57 : vector<13x128xf32>
      %59 = vector.extract_strided_slice %56 {offsets = [1, 128], sizes = [13, 128], strides = [1, 1]} : vector<15x384xf32> to vector<13x128xf32>
      %60 = arith.addf %58, %59 : vector<13x128xf32>
      %61 = vector.extract_strided_slice %56 {offsets = [2, 256], sizes = [13, 128], strides = [1, 1]} : vector<15x384xf32> to vector<13x128xf32>
      %62 = arith.addf %60, %61 : vector<13x128xf32>
      %c1_i32_37 = arith.constant 1 : i32
      %63 = arith.addi %48, %c1_i32_37 : i32
      %c0_38 = arith.constant 0 : index
      %64 = arith.index_cast %63 : i32 to index
      %c0_39 = arith.constant 0 : index
      %c0_40 = arith.constant 0 : index
      %65 = vector.load %arg1[%c0_38, %64, %c0_39, %c0_40] : memref<1x15x15x128xf32, #tpu.memory_space<vmem>>, vector<1x1x15x128xf32>
      %66 = vector.shape_cast %65 : vector<1x1x15x128xf32> to vector<15x128xf32>
      %c1_41 = arith.constant 1 : index
      %c0_42 = arith.constant 0 : index
      %c0_43 = arith.constant 0 : index
      %67 = vector.load %arg2[%c1_41, %c0_42, %c0_43] : memref<3x128x384xf32, #tpu.memory_space<vmem>>, vector<1x128x384xf32>
      %68 = vector.shape_cast %67 : vector<1x128x384xf32> to vector<128x384xf32>
      %cst_44 = arith.constant dense<0.000000e+00> : vector<15x384xf32>
      %69 = tpu.matmul %66, %68, %cst_44 {dimension_numbers = #tpu.dot_dimension_numbers<[1], [0], [0], [1], [0, 0, 1, 1], [], []>} : vector<15x128xf32>, vector<128x384xf32>, vector<15x384xf32> -> vector<15x384xf32>
      %70 = vector.extract_strided_slice %69 {offsets = [0, 0], sizes = [13, 128], strides = [1, 1]} : vector<15x384xf32> to vector<13x128xf32>
      %71 = arith.addf %62, %70 : vector<13x128xf32>
      %72 = vector.extract_strided_slice %69 {offsets = [1, 128], sizes = [13, 128], strides = [1, 1]} : vector<15x384xf32> to vector<13x128xf32>
      %73 = arith.addf %71, %72 : vector<13x128xf32>
      %74 = vector.extract_strided_slice %69 {offsets = [2, 256], sizes = [13, 128], strides = [1, 1]} : vector<15x384xf32> to vector<13x128xf32>
      %75 = arith.addf %73, %74 : vector<13x128xf32>
      %c2_i32_45 = arith.constant 2 : i32
      %76 = arith.addi %48, %c2_i32_45 : i32
      %c0_46 = arith.constant 0 : index
      %77 = arith.index_cast %76 : i32 to index
      %c0_47 = arith.constant 0 : index
      %c0_48 = arith.constant 0 : index
      %78 = vector.load %arg1[%c0_46, %77, %c0_47, %c0_48] : memref<1x15x15x128xf32, #tpu.memory_space<vmem>>, vector<1x1x15x128xf32>
      %79 = vector.shape_cast %78 : vector<1x1x15x128xf32> to vector<15x128xf32>
      %c2_49 = arith.constant 2 : index
      %c0_50 = arith.constant 0 : index
      %c0_51 = arith.constant 0 : index
      %80 = vector.load %arg2[%c2_49, %c0_50, %c0_51] : memref<3x128x384xf32, #tpu.memory_space<vmem>>, vector<1x128x384xf32>
      %81 = vector.shape_cast %80 : vector<1x128x384xf32> to vector<128x384xf32>
      %cst_52 = arith.constant dense<0.000000e+00> : vector<15x384xf32>
      %82 = tpu.matmul %79, %81, %cst_52 {dimension_numbers = #tpu.dot_dimension_numbers<[1], [0], [0], [1], [0, 0, 1, 1], [], []>} : vector<15x128xf32>, vector<128x384xf32>, vector<15x384xf32> -> vector<15x384xf32>
      %83 = vector.extract_strided_slice %82 {offsets = [0, 0], sizes = [13, 128], strides = [1, 1]} : vector<15x384xf32> to vector<13x128xf32>
      %84 = arith.addf %75, %83 : vector<13x128xf32>
      %85 = vector.extract_strided_slice %82 {offsets = [1, 128], sizes = [13, 128], strides = [1, 1]} : vector<15x384xf32> to vector<13x128xf32>
      %86 = arith.addf %84, %85 : vector<13x128xf32>
      %87 = vector.extract_strided_slice %82 {offsets = [2, 256], sizes = [13, 128], strides = [1, 1]} : vector<15x384xf32> to vector<13x128xf32>
      %88 = arith.addf %86, %87 : vector<13x128xf32>
      %89 = vector.broadcast %0 : vector<1x128xf32> to vector<13x128xf32>
      %90 = arith.addf %88, %89 : vector<13x128xf32>
      %91 = arith.maximumf %46, %90 : vector<13x128xf32>
      %cst_53 = arith.constant 0.000000e+00 : f32
      %92 = vector.broadcast %cst_53 : f32 to vector<13x128xf32>
      %93 = arith.maximumf %91, %92 : vector<13x128xf32>
      %c0_54 = arith.constant 0 : index
      %c0_55 = arith.constant 0 : index
      %94 = vector.load %arg5[%c0_54, %c0_55] : memref<13x128xf32, #tpu.memory_space<vmem>>, vector<13x128xf32>
      tpu.vector_store %arg5[%c0_54, %c0_55], %93 {strides = array<i32>} : memref<13x128xf32, #tpu.memory_space<vmem>>, vector<13x128xf32>,
      %c0_56 = arith.constant 0 : index
      %c0_57 = arith.constant 0 : index
      %95 = tpu.strided_load %arg5[%c0_56, %c0_57] {strides = array<i32: 2, 1>} : memref<13x128xf32, #tpu.memory_space<vmem>>, vector<6x128xf32>
      %c1_58 = arith.constant 1 : index
      %c0_59 = arith.constant 0 : index
      %96 = tpu.strided_load %arg5[%c1_58, %c0_59] {strides = array<i32: 2, 1>} : memref<13x128xf32, #tpu.memory_space<vmem>>, vector<6x128xf32>
      %97 = arith.maximumf %95, %96 : vector<6x128xf32>
      %c0_60 = arith.constant 0 : index
      %98 = arith.index_cast %3 : i32 to index
      %c0_61 = arith.constant 0 : index
      %c0_62 = arith.constant 0 : index
      %99 = vector.load %arg4[%c0_60, %98, %c0_61, %c0_62] : memref<1x6x6x128xf32, #tpu.memory_space<vmem>>, vector<1x1x6x128xf32>
      %100 = vector.shape_cast %99 : vector<1x1x6x128xf32> to vector<6x128xf32>
      %101 = vector.shape_cast %97 : vector<6x128xf32> to vector<1x1x6x128xf32>
      tpu.vector_store %arg4[%c0_60, %98, %c0_61, %c0_62], %101 {strides = array<i32>} : memref<1x6x6x128xf32, #tpu.memory_space<vmem>>, vector<1x1x6x128xf32>,
    }
    %c6_i32_1 = arith.constant 6 : i32
    return
  }
  func.func @transform_0(%arg0: i32) -> (i32, i32, i32, i32) {
    %c0_i32 = arith.constant 0 : i32
    %c0_i32_0 = arith.constant 0 : i32
    %c0_i32_1 = arith.constant 0 : i32
    %c0_i32_2 = arith.constant 0 : i32
    return %arg0, %c0_i32, %c0_i32_0, %c0_i32_1 : i32, i32, i32, i32
  }
  func.func @transform_1(%arg0: i32) -> (i32, i32, i32) {
    %c0_i32 = arith.constant 0 : i32
    %c0_i32_0 = arith.constant 0 : i32
    %c0_i32_1 = arith.constant 0 : i32
    %c0_i32_2 = arith.constant 0 : i32
    return %c0_i32, %c0_i32_0, %c0_i32_1 : i32, i32, i32
  }
  func.func @transform_2(%arg0: i32) -> (i32, i32) {
    %c0_i32 = arith.constant 0 : i32
    %c0_i32_0 = arith.constant 0 : i32
    %c0_i32_1 = arith.constant 0 : i32
    return %c0_i32, %c0_i32_0 : i32, i32
  }
  func.func @transform_3(%arg0: i32) -> (i32, i32, i32, i32) {
    %c0_i32 = arith.constant 0 : i32
    %c0_i32_0 = arith.constant 0 : i32
    %c0_i32_1 = arith.constant 0 : i32
    %c0_i32_2 = arith.constant 0 : i32
    return %arg0, %c0_i32, %c0_i32_0, %c0_i32_1 : i32, i32, i32, i32
  }
}

</mosaic_0001>

<bundles_post_ra>
// kernel: small_conv_forward.4
= control target key start
LH: loop header
LB: loop body
LE: loop exit
PB: predicated region body
PF: predicated region fallthrough
CT: control target
= control target key end

     0   :  { %s1186_s12 = smov 0   ;;  %s2334_s0 = inlined_call_operand.vmem [shape: f32[2,15,15,128], index: 0, kind: input, shape index: {}]   ;;  %s2335_s1 = inlined_call_operand.vmem [shape: f32[3,128,384], index: 1, kind: input, shape index: {}]   ;;  %s2336_s2 = inlined_call_operand.vmem [shape: f32[1,128], index: 2, kind: input, shape index: {}]   ;;  %s2337_s3 = inlined_call_operand.vmem [shape: f32[2,6,6,128], index: 3, kind: output, shape index: {}]  }
   0x1 LB: > { %s976_s13 = sadd.s32 4294967295, %s1160_s12   ;;  %p980_p0 = scmp.ge.s32.totalorder %s1160_s12, 1  ;;  %s1160_s12 = sphi %s1186_s12, %s13_s12  }
   0x2   : > { %p137_p1 = scmp.lt.s32.totalorder %s1160_s12, 3 }
   0x4   : > { %p138_p2 = pnand %p980_p0, %p137_p1 }
   0x5   : > { %p161_p3 = scmp.lt.s32.totalorder (!%p138_p2), %s976_s13, 1  ;;  %s1209_s24 = smov (!%p138_p2), 0  }
   0x6   : > { %141 = sbr.rel (%p138_p2) target bundleno = 353 (0x161), region = 32 }
   0xb   : > { %v1197_v0 = vld [vmem:[%s2336_s2] sm:$0x1]  ;;  %s2571_s13 = smov (!%p161_p3, %s976_s13), 1 }
   0xc   : > { %2426 = vst [vmem:[#allocation3_spill] sm:$0xff] %v1197_v0  ;;  %s1132_s16 = smul.u32 240, %s2571_s13 }
   0xd   : > { %s1133_s17 = smul.u32 48, %s2571_s13 }
   0xe   : > { %s1202_s20 = scalar_lea.vmem %s2334_s0, %s1132_s16 }
   0xf   : > { %s1207_s23 = scalar_lea.vmem %s2337_s3, %s1133_s17 }
  0x10 LB: >> { %v1217_v1 = vld [vmem:[%s2335_s1 + $0x168] sm:$0xff]  ;;  %v1222_v2 = vld [vmem:[%s2335_s1 + $0x178] sm:$0xff]  ;;  %v1234_v4 = vld [vmem:[%s2335_s1 + $0x150] sm:$0xff]  ;;  %s1096_s5 = sshll.u32 %s1164_s24, 5  ;;  %vm304_vm0 = vcmask 1046528   ;;  %vm314_vm1 = vcmask 1045504   ;;  %s1164_s24 = sphi %s1209_s24, %s177_s24  }
  0x11   : >> { %v1227_v3 = vld [vmem:[%s2335_s1 + $0x2e8] sm:$0xff]  ;;  %231 = vmatpush.msra.mxu0 %v1217_v1  ;;  %277 = vmatpush.msra.mxu2 %v1222_v2  ;;  %v1239_v5 = vld [vmem:[%s2335_s1 + $0x170] sm:$0xff]  ;;  %v1244_v6 = vld [vmem:[%s2335_s1 + $0x160] sm:$0xff]  ;;  %s1750_s19 = scalar_lea.vmem %s1202_s20, %s1096_s5 }
  0x12   : >> { %376 = vmatpush.msra.mxu3 %v1227_v3  ;;  %254 = vmatpush.msra.mxu1 %v1239_v5  ;;  %v1251_v7 = vld [vmem:[%s2335_s1 + $0x2d0] sm:$0xff]  ;;  %v1256_v8 = vld [vmem:[%s2335_s1 + $0x138] sm:$0xff]  ;;  %v1268_v10 = vld [vmem:[%s2335_s1 + $0x148] sm:$0xff] }
  0x13   : >> { %2427 = vst [vmem:[#allocation4_spill] sm:$0xff] %v1251_v7  ;;  %v1261_v9 = vld [vmem:[%s2335_s1 + $0x158] sm:$0xff]  ;;  %232 = vmatpush.msra.mxu0 %v1234_v4  ;;  %278 = vmatpush.msra.mxu2 %v1244_v6  ;;  %v1280_v12 = vld [vmem:[%s2335_s1 + $0x120] sm:$0xff]  ;;  %v1290_v14 = vld [vmem:[%s2335_s1 + $0x130] sm:$0xff] }
  0x14   : >> { %v1273_v11 = vld [vmem:[%s2335_s1 + $0x2b8] sm:$0xff]  ;;  %377 = vmatpush.msra.mxu3 %v1251_v7  ;;  %255 = vmatpush.msra.mxu1 %v1261_v9  ;;  %v1285_v13 = vld [vmem:[%s2335_s1 + $0x140] sm:$0xff]  ;;  %v1302_v16 = vld [vmem:[%s2335_s1 + $0x128] sm:$0xff] }
  0x15   : >> { %2428 = vst [vmem:[#allocation5_spill] sm:$0xff] %v1273_v11  ;;  %233 = vmatpush.msra.mxu0 %v1256_v8  ;;  %279 = vmatpush.msra.mxu2 %v1268_v10  ;;  %v1297_v15 = vld [vmem:[%s2335_s1 + $0x2a0] sm:$0xff]  ;;  %v1309_v17 = vld [vmem:[%s2335_s1 + $0x108] sm:$0xff]  ;;  %v1314_v18 = vld [vmem:[%s2335_s1 + $0x118] sm:$0xff] }
  0x16   : >> { %2429 = vst [vmem:[#allocation6_spill] sm:$0xff] %v1297_v15  ;;  %378 = vmatpush.msra.mxu3 %v1273_v11  ;;  %256 = vmatpush.msra.mxu1 %v1285_v13  ;;  %v1321_v19 = vld [vmem:[%s2335_s1 + $0x288] sm:$0xff]  ;;  %v1326_v20 = vld [vmem:[%s2335_s1 + $0x110] sm:$0xff]  ;;  %v1338_v22 = vld [vmem:[%s2335_s1 + $0x100] sm:$0xff] }
  0x17   : >> { %234 = vmatpush.msra.mxu0 %v1280_v12  ;;  %280 = vmatpush.msra.mxu2 %v1290_v14  ;;  %2430 = vst [vmem:[#allocation7_spill] sm:$0xff] %v1321_v19  ;;  %v1333_v21 = vld [vmem:[%s2335_s1 + $0xf0] sm:$0xff]  ;;  %v1350_v24 = vld [vmem:[%s2335_s1 + $0xf8] sm:$0xff]  ;;  %v1362_v26 = vld [vmem:[%s2335_s1 + $0xe8] sm:$0xff] }
  0x18   : >> { %379 = vmatpush.msra.mxu3 %v1297_v15  ;;  %257 = vmatpush.msra.mxu1 %v1302_v16  ;;  %v1345_v23 = vld [vmem:[%s2335_s1 + $0x270] sm:$0xff]  ;;  %v1357_v25 = vld [vmem:[%s2335_s1 + $0xd8] sm:$0xff]  ;;  %v1374_v28 = vld [vmem:[%s2335_s1 + $0xe0] sm:$0xff] }
  0x19   : >> { %235 = vmatpush.msra.mxu0 %v1309_v17  ;;  %281 = vmatpush.msra.mxu2 %v1314_v18  ;;  %2431 = vst [vmem:[#allocation8_spill] sm:$0xff] %v1345_v23  ;;  %v1369_v27 = vld [vmem:[%s2335_s1 + $0x258] sm:$0xff]  ;;  %v1381_v29 = vld [vmem:[%s2335_s1 + $0xc0] sm:$0xff]  ;;  %v1386_v30 = vld [vmem:[%s2335_s1 + $0xd0] sm:$0xff] }
  0x1a   : >> { %380 = vmatpush.msra.mxu3 %v1321_v19  ;;  %258 = vmatpush.msra.mxu1 %v1326_v20  ;;  %2432 = vst [vmem:[#allocation9_spill] sm:$0xff] %v1369_v27  ;;  %v1393_v31 = vld [vmem:[%s2335_s1 + $0x240] sm:$0xff]  ;;  %v1398_v32 = vld [vmem:[%s2335_s1 + $0xc8] sm:$0xff]  ;;  %v1410_v34 = vld [vmem:[%s2335_s1 + $0xb8] sm:$0xff] }
  0x1b   : >> { %236 = vmatpush.msra.mxu0 %v1333_v21  ;;  %282 = vmatpush.msra.mxu2 %v1338_v22  ;;  %2433 = vst [vmem:[#allocation10_spill] sm:$0xff] %v1393_v31  ;;  %v1405_v33 = vld [vmem:[%s2335_s1 + $0xa8] sm:$0xff]  ;;  %v1422_v36 = vld [vmem:[%s2335_s1 + $0xb0] sm:$0xff]  ;;  %v1434_v38 = vld [vmem:[%s2335_s1 + $0xa0] sm:$0xff] }
  0x1c   : >> { %381 = vmatpush.msra.mxu3 %v1345_v23  ;;  %259 = vmatpush.msra.mxu1 %v1350_v24  ;;  %v1417_v35 = vld [vmem:[%s2335_s1 + $0x228] sm:$0xff]  ;;  %v1429_v37 = vld [vmem:[%s2335_s1 + $0x90] sm:$0xff]  ;;  %v1446_v40 = vld [vmem:[%s2335_s1 + $0x98] sm:$0xff] }
  0x1d   : >> { %237 = vmatpush.msra.mxu0 %v1357_v25  ;;  %283 = vmatpush.msra.mxu2 %v1362_v26  ;;  %2434 = vst [vmem:[#allocation11_spill] sm:$0xff] %v1417_v35  ;;  %v1441_v39 = vld [vmem:[%s2335_s1 + $0x210] sm:$0xff]  ;;  %v1453_v41 = vld [vmem:[%s2335_s1 + $0x78] sm:$0xff]  ;;  %v1458_v42 = vld [vmem:[%s2335_s1 + $0x88] sm:$0xff] }
  0x1e   : >> { %382 = vmatpush.msra.mxu3 %v1369_v27  ;;  %260 = vmatpush.msra.mxu1 %v1374_v28  ;;  %2435 = vst [vmem:[#allocation12_spill] sm:$0xff] %v1441_v39  ;;  %v1465_v43 = vld [vmem:[%s2335_s1 + $0x1f8] sm:$0xff]  ;;  %v1470_v44 = vld [vmem:[%s2335_s1 + $0x80] sm:$0xff]  ;;  %v1482_v46 = vld [vmem:[%s2335_s1 + $0x70] sm:$0xff] }
  0x1f   : >> { %238 = vmatpush.msra.mxu0 %v1381_v29  ;;  %284 = vmatpush.msra.mxu2 %v1386_v30  ;;  %2436 = vst [vmem:[#allocation13_spill] sm:$0xff] %v1465_v43  ;;  %v1477_v45 = vld [vmem:[%s2335_s1 + $0x60] sm:$0xff]  ;;  %v1494_v48 = vld [vmem:[%s2335_s1 + $0x68] sm:$0xff]  ;;  %v1506_v50 = vld [vmem:[%s2335_s1 + $0x58] sm:$0xff] }
  0x20   : >> { %383 = vmatpush.msra.mxu3 %v1393_v31  ;;  %261 = vmatpush.msra.mxu1 %v1398_v32  ;;  %v1489_v47 = vld [vmem:[%s2335_s1 + $0x1e0] sm:$0xff]  ;;  %v1501_v49 = vld [vmem:[%s2335_s1 + $0x48] sm:$0xff]  ;;  %v1518_v52 = vld [vmem:[%s2335_s1 + $0x50] sm:$0xff] }
  0x21   : >> { %239 = vmatpush.msra.mxu0 %v1405_v33  ;;  %285 = vmatpush.msra.mxu2 %v1410_v34  ;;  %2437 = vst [vmem:[#allocation14_spill] sm:$0xff] %v1489_v47  ;;  %v1513_v51 = vld [vmem:[%s2335_s1 + $0x1c8] sm:$0xff]  ;;  %v1525_v53 = vld [vmem:[%s2335_s1 + $0x30] sm:$0xff]  ;;  %v1530_v54 = vld [vmem:[%s2335_s1 + $0x40] sm:$0xff] }
  0x22   : >> { %384 = vmatpush.msra.mxu3 %v1417_v35  ;;  %262 = vmatpush.msra.mxu1 %v1422_v36  ;;  %2438 = vst [vmem:[#allocation15_spill] sm:$0xff] %v1513_v51  ;;  %v1537_v55 = vld [vmem:[%s2335_s1 + $0x1b0] sm:$0xff]  ;;  %v1542_v56 = vld [vmem:[%s2335_s1 + $0x38] sm:$0xff]  ;;  %v1554_v58 = vld [vmem:[%s2335_s1 + $0x28] sm:$0xff] }
  0x23   : >> { %240 = vmatpush.msra.mxu0 %v1429_v37  ;;  %286 = vmatpush.msra.mxu2 %v1434_v38  ;;  %2439 = vst [vmem:[#allocation16_spill] sm:$0xff] %v1537_v55  ;;  %v1549_v57 = vld [vmem:[%s2335_s1 + $0x18] sm:$0xff]  ;;  %v1566_v60 = vld [vmem:[%s2335_s1 + $0x20] sm:$0xff]  ;;  %v1578_v62 = vld [vmem:[%s2335_s1 + $0x10] sm:$0xff] }
  0x24   : >> { %385 = vmatpush.msra.mxu3 %v1441_v39  ;;  %263 = vmatpush.msra.mxu1 %v1446_v40  ;;  %v1561_v59 = vld [vmem:[%s2335_s1 + $0x198] sm:$0xff]  ;;  %v1573_v61 = vld [vmem:[%s2335_s1] sm:$0xff]  ;;  %v1590_v0 = vld [vmem:[%s2335_s1 + $0x2f0] sm:$0xff] }
  0x25   : >> { %241 = vmatpush.msra.mxu0 %v1453_v41  ;;  %287 = vmatpush.msra.mxu2 %v1458_v42  ;;  %2440 = vst [vmem:[#allocation17_spill] sm:$0xff] %v1561_v59  ;;  %v1585_v63 = vld [vmem:[%s2335_s1 + $0x180] sm:$0xff]  ;;  %v1626_v39 = vld [vmem:[%s2335_s1 + $0x450] sm:$0xff]  ;;  %v1662_v23 = vld [vmem:[%s2335_s1 + $0x2a8] sm:$0xff] }
  0x26   : >> { %386 = vmatpush.msra.mxu3 %v1465_v43  ;;  %264 = vmatpush.msra.mxu1 %v1470_v44  ;;  %2441 = vst [vmem:[#allocation18_spill] sm:$0xff] %v1585_v63  ;;  %v1621_v43 = vld [vmem:[%s2335_s1 + $0x2f8] sm:$0xff]  ;;  %v1638_v35 = vld [vmem:[%s2335_s1 + $0x2c0] sm:$0xff]  ;;  %v1669_v19 = vld [vmem:[%s2335_s1 + $0x2c8] sm:$0xff] }
  0x27   : >> { %242 = vmatpush.msra.mxu0 %v1477_v45  ;;  %288 = vmatpush.msra.mxu2 %v1482_v46  ;;  %2444 = vst [vmem:[#allocation21_spill] sm:$0xff] %v1626_v39  ;;  %v1645_v31 = vld [vmem:[%s2335_s1 + $0x2e0] sm:$0xff]  ;;  %v1686_v11 = vld [vmem:[%s2335_s1 + $0x290] sm:$0xff] }
  0x28   : >> { %387 = vmatpush.msra.mxu3 %v1489_v47  ;;  %265 = vmatpush.msra.mxu1 %v1494_v48  ;;  %v1614_v47 = vld [vmem:[%s2335_s1 + $0x2d8] sm:$0xff]  ;;  %2446 = vst [vmem:[#allocation23_spill] sm:$0xff] %v1638_v35  ;;  %v1657_v27 = vld [vmem:[%s2335_s1 + $0x440] sm:$0xff]  ;;  %v1723_v7 = vld [vmem:[%s2335_s1 + $0x3f0] sm:$0xff] }
  0x29   : >> { %243 = vmatpush.msra.mxu0 %v1501_v49  ;;  %289 = vmatpush.msra.mxu2 %v1506_v50  ;;  %2443 = vst [vmem:[#allocation20_spill] sm:$0xff] %v1614_v47  ;;  %v1674_v15 = vld [vmem:[%s2335_s1 + $0x420] sm:$0xff] }
  0x2a   : >> { %388 = vmatpush.msra.mxu3 %v1513_v51  ;;  %266 = vmatpush.msra.mxu1 %v1518_v52  ;;  %v1602_v51 = vld [vmem:[%s2335_s1 + $0x470] sm:$0xff]  ;;  %2448 = vst [vmem:[#allocation25_spill] sm:$0xff] %v1657_v27 }
  0x2b   : >> { %244 = vmatpush.msra.mxu0 %v1525_v53  ;;  %290 = vmatpush.msra.mxu2 %v1530_v54  ;;  %2442 = vst [vmem:[#allocation19_spill] sm:$0xff] %v1602_v51 }
  0x2c   : >> { %389 = vmatpush.msra.mxu3 %v1537_v55  ;;  %267 = vmatpush.msra.mxu1 %v1542_v56  ;;  %v1597_v55 = vld [vmem:[%s2335_s1 + $0x468] sm:$0xff]  ;;  %2449 = vst [vmem:[#allocation26_spill] sm:$0xff] %v1662_v23 }
  0x2d   : >> { %245 = vmatpush.msra.mxu0 %v1549_v57  ;;  %291 = vmatpush.msra.mxu2 %v1554_v58  ;;  %2450 = vst [vmem:[#allocation27_spill] sm:$0xff] %v1669_v19 }
  0x2e   : >> { %390 = vmatpush.msra.mxu3 %v1561_v59  ;;  %268 = vmatpush.msra.mxu1 %v1566_v60  ;;  %v1609_v59 = vld [vmem:[%s2335_s1 + $0x8] sm:$0xff]  ;;  %2451 = vst [vmem:[#allocation28_spill] sm:$0xff] %v1674_v15 }
  0x2f   : >> { %246 = vmatpush.msra.mxu0 %v1573_v61  ;;  %292 = vmatpush.msra.mxu2 %v1578_v62  ;;  %2453 = vst [vmem:[#allocation30_spill] sm:$0xff] %v1686_v11 }
  0x30   : >> { %391 = vmatpush.msra.mxu3 %v1585_v63  ;;  %v1633_v63 = vld [vmem:[%s2335_s1 + $0x458] sm:$0xff]  ;;  %269 = vmatpush.msra.mxu1 %v1609_v59  ;;  %2459 = vst [vmem:[#allocation36_spill] sm:$0xff] %v1723_v7 }
  0x31   : >> { %399 = vmatpush.msrb.mxu0 %v1590_v0  ;;  %519 = vmatpush.msrb.mxu2 %v1597_v55  ;;  %2445 = vst [vmem:[#allocation22_spill] sm:$0xff] %v1633_v63 }
  0x32   : >> { %542 = vmatpush.msrb.mxu3 %v1602_v51  ;;  %v1650_v51 = vld [vmem:[%s2335_s1 + $0x438] sm:$0xff]  ;;  %422 = vmatpush.msrb.mxu1 %v1621_v43 }
  0x33   : >> { %400 = vmatpush.msrb.mxu0 %v1614_v47  ;;  %2447 = vst [vmem:[#allocation24_spill] sm:$0xff] %v1650_v51  ;;  %520 = vmatpush.msrb.mxu2 %v1626_v39  ;;  %v1787_v39 = vld [vmem:[%s1750_s19 + $0x10] sm:$0xff] }
  0x34   : >> { %543 = vmatpush.msrb.mxu3 %v1633_v63  ;;  %423 = vmatpush.msrb.mxu1 %v1645_v31  ;;  %v1681_v63 = vld [vmem:[%s2335_s1 + $0x428] sm:$0xff]  ;;  %v1893_v47 = vld [vmem:[%s2335_s1 + $0x1d0] sm:$0xff] }
  0x35   : >> { %401 = vmatpush.msrb.mxu0 %v1638_v35  ;;  %521 = vmatpush.msrb.mxu2 %v1650_v51  ;;  %2452 = vst [vmem:[#allocation29_spill] sm:$0xff] %v1681_v63  ;;  %v1693_v35 = vld [vmem:[%s2335_s1 + $0x2b0] sm:$0xff]  ;;  %v1698_v51 = vld [vmem:[%s2335_s1 + $0x408] sm:$0xff] }
  0x36   : >> { %544 = vmatpush.msrb.mxu3 %v1657_v27  ;;  %2454 = vst [vmem:[#allocation31_spill] sm:$0xff] %v1693_v35  ;;  %424 = vmatpush.msrb.mxu1 %v1669_v19  ;;  %v1705_v27 = vld [vmem:[%s2335_s1 + $0x410] sm:$0xff] }
  0x37   : >> { %402 = vmatpush.msrb.mxu0 %v1662_v23  ;;  %2455 = vst [vmem:[#allocation32_spill] sm:$0xff] %v1698_v51  ;;  %522 = vmatpush.msrb.mxu2 %v1674_v15  ;;  %v1710_v23 = vld [vmem:[%s2335_s1 + $0x278] sm:$0xff]  ;;  %v1792_v19 = vld [vmem:[%s2335_s1 + $0x230] sm:$0xff] }
  0x38   : >> { %2456 = vst [vmem:[#allocation33_spill] sm:$0xff] %v1705_v27  ;;  %545 = vmatpush.msrb.mxu3 %v1681_v63  ;;  %v1718_v15 = vld [vmem:[%s2335_s1 + $0x298] sm:$0xff]  ;;  %425 = vmatpush.msrb.mxu1 %v1693_v35  ;;  %v1742_v35 = vld [vmem:[%s2335_s1 + $0x280] sm:$0xff] }
  0x39   : >> { %2457 = vst [vmem:[#allocation34_spill] sm:$0xff] %v1710_v23  ;;  %403 = vmatpush.msrb.mxu0 %v1686_v11  ;;  %523 = vmatpush.msrb.mxu2 %v1698_v51  ;;  %v1730_v63 = vld [vmem:[%s2335_s1 + $0x3f8] sm:$0xff]  ;;  %v1735_v11 = vld [vmem:[%s2335_s1 + $0x260] sm:$0xff] }
  0x3a   : >> { %2458 = vst [vmem:[#allocation35_spill] sm:$0xff] %v1718_v15  ;;  %546 = vmatpush.msrb.mxu3 %v1705_v27  ;;  %v1747_v51 = vld [vmem:[%s2335_s1 + $0x3d8] sm:$0xff]  ;;  %426 = vmatpush.msrb.mxu1 %v1718_v15  ;;  %v1757_v27 = vld [vmem:[%s2335_s1 + $0x3e0] sm:$0xff]  ;;  %v1769_v15 = vld [vmem:[%s2335_s1 + $0x268] sm:$0xff] }
  0x3b   : >> { %2460 = vst [vmem:[#allocation37_spill] sm:$0xff] %v1730_v63  ;;  %404 = vmatpush.msrb.mxu0 %v1710_v23  ;;  %524 = vmatpush.msrb.mxu2 %v1723_v7  ;;  %v1762_v23 = vld [vmem:[%s2335_s1 + $0x248] sm:$0xff]  ;;  %v1774_v7 = vld [vmem:[%s2335_s1 + $0x3c0] sm:$0xff] }
  0x3c   : >> { %2461 = vst [vmem:[#allocation38_spill] sm:$0xff] %v1735_v11  ;;  %547 = vmatpush.msrb.mxu3 %v1730_v63  ;;  %427 = vmatpush.msrb.mxu1 %v1742_v35  ;;  %v1781_v63 = vld [vmem:[%s2335_s1 + $0x3c8] sm:$0xff] }
  0x3d   : >> { %2462 = vst [vmem:[#allocation39_spill] sm:$0xff] %v1742_v35  ;;  %405 = vmatpush.msrb.mxu0 %v1735_v11  ;;  %525 = vmatpush.msrb.mxu2 %v1747_v51  ;;  %v181_v11 = vld [vmem:[%s1750_s19] sm:$0xff] }
  0x3e   : >> { %2463 = vst [vmem:[#allocation40_spill] sm:$0xff] %v1747_v51  ;;  %548 = vmatpush.msrb.mxu3 %v1757_v27  ;;  %428 = vmatpush.msrb.mxu1 %v1769_v15  ;;  %v1799_v51 = vld [vmem:[%s2335_s1 + $0x250] sm:$0xff]  ;;  %v1840_v35 = vld [vmem:[%s2335_s1 + $0x200] sm:$0xff] }
  0x3f   : >> { %2464 = vst [vmem:[#allocation41_spill] sm:$0xff] %v1757_v27  ;;  %406 = vmatpush.msrb.mxu0 %v1762_v23  ;;  %526 = vmatpush.msrb.mxu2 %v1774_v7  ;;  %v1804_v27 = vld [vmem:[%s2335_s1 + $0x3a8] sm:$0xff] }
  0x40   : >> { %2465 = vst [vmem:[#allocation42_spill] sm:$0xff] %v1762_v23  ;;  %549 = vmatpush.msrb.mxu3 %v1781_v63  ;;  %247 = vmatmul.f32.vlgmr.msra.gmra.mxu0 %v181_v11  ;;  %v1810_v23 = vld [vmem:[%s2335_s1 + $0x3b0] sm:$0xff] }
  0x41   : >> { %2466 = vst [vmem:[#allocation43_spill] sm:$0xff] %v1769_v15  ;;  %392 = vmatmul.f32.vlgmr.msra.gmra.mxu3 %v1787_v39  ;;  %407 = vmatpush.msrb.mxu0 %v1792_v19  ;;  %v1822_v15 = vld [vmem:[%s2335_s1 + $0x238] sm:$0xff] }
  0x42   : >> { %2467 = vst [vmem:[#allocation44_spill] sm:$0xff] %v1774_v7  ;;  %v1817_v7 = vld [vmem:[%s2335_s1 + $0x218] sm:$0xff]  ;;  %429 = vmatpush.msrb.mxu1 %v1799_v51  ;;  %527 = vmatpush.msrb.mxu2 %v1804_v27 }
  0x43   : >> { %2468 = vst [vmem:[#allocation45_spill] sm:$0xff] %v1781_v63  ;;  %v1829_v63 = vld [vmem:[%s2335_s1 + $0x390] sm:$0xff]  ;;  %550 = vmatpush.msrb.mxu3 %v1810_v23  ;;  %270 = vmatmul.f32.vlgmr.msra.gmra.mxu1 %v181_v11 }
  0x44   : >> { %2469 = vst [vmem:[#allocation46_spill] sm:$0xff] %v1792_v19  ;;  %v1834_v19 = vld [vmem:[%s2335_s1 + $0x398] sm:$0xff]  ;;  %408 = vmatpush.msrb.mxu0 %v1817_v7  ;;  %430 = vmatpush.msrb.mxu1 %v1822_v15 }
  0x45   : >> { %2470 = vst [vmem:[#allocation47_spill] sm:$0xff] %v1799_v51  ;;  %528 = vmatpush.msrb.mxu2 %v1829_v63  ;;  %551 = vmatpush.msrb.mxu3 %v1834_v19  ;;  %v1870_v51 = vld [vmem:[%s2335_s1 + $0x208] sm:$0xff] }
  0x46   : >> { %2471 = vst [vmem:[#allocation48_spill] sm:$0xff] %v1804_v27  ;;  %v1847_v27 = vld [vmem:[%s2335_s1 + $0x220] sm:$0xff]  ;;  %293 = vmatmul.f32.vlgmr.msra.gmra.mxu2 %v181_v11  ;;  %409 = vmatpush.msrb.mxu0 %v1840_v35  ;;  %v1882_v11 = vld [vmem:[%s2335_s1 + $0x368] sm:$0xff] }
  0x47   : >> { %2472 = vst [vmem:[#allocation49_spill] sm:$0xff] %v1810_v23  ;;  %v1852_v23 = vld [vmem:[%s2335_s1 + $0x378] sm:$0xff]  ;;  %431 = vmatpush.msrb.mxu1 %v1847_v27 }
  0x48   : >> { %2473 = vst [vmem:[#allocation50_spill] sm:$0xff] %v1817_v7  ;;  %v1859_v7 = vld [vmem:[%s2335_s1 + $0x380] sm:$0xff]  ;;  %529 = vmatpush.msrb.mxu2 %v1852_v23 }
  0x49   : >> { %2474 = vst [vmem:[#allocation51_spill] sm:$0xff] %v1822_v15  ;;  %v1864_v15 = vld [vmem:[%s2335_s1 + $0x1e8] sm:$0xff]  ;;  %552 = vmatpush.msrb.mxu3 %v1859_v7  ;;  %432 = vmatpush.msrb.mxu1 %v1870_v51 }
  0x4a   : >> { %2475 = vst [vmem:[#allocation52_spill] sm:$0xff] %v1829_v63  ;;  %410 = vmatpush.msrb.mxu0 %v1864_v15  ;;  %v1888_v63 = vld [vmem:[%s1750_s19 + $0x18] sm:$0x7f] }
  0x4b   : >> { %2476 = vst [vmem:[#allocation53_spill] sm:$0xff] %v1834_v19  ;;  %v1875_v19 = vld [vmem:[%s2335_s1 + $0x360] sm:$0xff]  ;;  %553 = vmatpush.msrb.mxu3 %v1882_v11 }
  0x4c   : >> { %2477 = vst [vmem:[#allocation54_spill] sm:$0xff] %v1840_v35  ;;  %v182_v35 = vld [vmem:[%s1750_s19 + $0x8] sm:$0x7f]  ;;  %530 = vmatpush.msrb.mxu2 %v1875_v19  ;;  %395 = vmatmul.f32.gmra.mxu3 %v1888_v63 }
  0x4d   : >> { %2478 = vst [vmem:[#allocation55_spill] sm:$0xff] %v1847_v27  ;;  %250 = vmatmul.f32.gmra.mxu0 %v182_v35  ;;  %273 = vmatmul.f32.gmra.mxu1 %v182_v35  ;;  %v1941_v27 = vld [vmem:[%s2335_s1 + $0x1a0] sm:$0xff] }
  0x4e   : >> { %2479 = vst [vmem:[#allocation56_spill] sm:$0xff] %v1852_v23  ;;  %v1900_v23 = vld [vmem:[%s2335_s1 + $0x1f0] sm:$0xff]  ;;  %411 = vmatpush.msrb.mxu0 %v1893_v47  ;;  %296 = vmatmul.f32.gmra.mxu2 %v182_v35  ;;  %v1983_v35 = vld [vmem:[%s2335_s1 + $0x308] sm:$0xff] }
  0x4f   : >> { %2480 = vst [vmem:[#allocation57_spill] sm:$0xff] %v1859_v7  ;;  %v1905_v7 = vld [vmem:[%s2335_s1 + $0x348] sm:$0xff]  ;;  %433 = vmatpush.msrb.mxu1 %v1900_v23 }
  0x50   : >> { %2481 = vst [vmem:[#allocation58_spill] sm:$0xff] %v1864_v15  ;;  %v1911_v15 = vld [vmem:[%s2335_s1 + $0x350] sm:$0xff]  ;;  %531 = vmatpush.msrb.mxu2 %v1905_v7 }
  0x51   : >> { %2482 = vst [vmem:[#allocation59_spill] sm:$0xff] %v1870_v51  ;;  %v1923_v51 = vld [vmem:[%s2335_s1 + $0x1d8] sm:$0xff]  ;;  %554 = vmatpush.msrb.mxu3 %v1911_v15 }
  0x52   : >> { %2483 = vst [vmem:[#allocation60_spill] sm:$0xff] %v1875_v19  ;;  %v1918_v19 = vld [vmem:[%s2335_s1 + $0x1b8] sm:$0xff]  ;;  %434 = vmatpush.msrb.mxu1 %v1923_v51 }
  0x53   : >> { %2484 = vst [vmem:[#allocation61_spill] sm:$0xff] %v1882_v11  ;;  %v1930_v11 = vld [vmem:[%s2335_s1 + $0x330] sm:$0xff]  ;;  %412 = vmatpush.msrb.mxu0 %v1918_v19 }
  0x54   : >> { %2485 = vst [vmem:[#allocation62_spill] sm:$0xff] %v1893_v47  ;;  %v1935_v47 = vld [vmem:[%s2335_s1 + $0x338] sm:$0xff]  ;;  %532 = vmatpush.msrb.mxu2 %v1930_v11 }
  0x55   : >> { %2486 = vst [vmem:[#allocation63_spill] sm:$0xff] %v1900_v23  ;;  %555 = vmatpush.msrb.mxu3 %v1935_v47  ;;  %413 = vmatpush.msrb.mxu0 %v1941_v27  ;;  %v1971_v23 = vld [vmem:[%s2335_s1 + $0x1a8] sm:$0xff] }
  0x56   : >> { %2487 = vst [vmem:[#allocation64_spill] sm:$0xff] %v1905_v7  ;;  %v1948_v7 = vld [vmem:[%s2335_s1 + $0x1c0] sm:$0xff] }
  0x57   : >> { %2488 = vst [vmem:[#allocation65_spill] sm:$0xff] %v1911_v15  ;;  %v1953_v15 = vld [vmem:[%s2335_s1 + $0x318] sm:$0xff]  ;;  %435 = vmatpush.msrb.mxu1 %v1948_v7 }
  0x58   : >> { %2489 = vst [vmem:[#allocation66_spill] sm:$0xff] %v1918_v19  ;;  %v1960_v19 = vld [vmem:[%s2335_s1 + $0x320] sm:$0xff]  ;;  %533 = vmatpush.msrb.mxu2 %v1953_v15 }
  0x59   : >> { %2490 = vst [vmem:[#allocation67_spill] sm:$0xff] %v1923_v51  ;;  %v1965_v51 = vld [vmem:[%s2335_s1 + $0x188] sm:$0xff]  ;;  %556 = vmatpush.msrb.mxu3 %v1960_v19  ;;  %436 = vmatpush.msrb.mxu1 %v1971_v23 }
  0x5a   : >> { %2491 = vst [vmem:[#allocation68_spill] sm:$0xff] %v1930_v11  ;;  %414 = vmatpush.msrb.mxu0 %v1965_v51  ;;  %v1993_v11 = vld [vmem:[%s2335_s1 + $0x478] sm:$0xff] }
  0x5b   : >> { %2492 = vst [vmem:[#allocation69_spill] sm:$0xff] %v1935_v47  ;;  %v1976_v47 = vld [vmem:[%s2335_s1 + $0x300] sm:$0xff]  ;;  %557 = vmatpush.msrb.mxu3 %v1983_v35  ;;  %415 = vmatmul.f32.vlgmr.msrb.gmra.mxu0 %v1787_v39 }
  0x5c   : >> { %2493 = vst [vmem:[#allocation70_spill] sm:$0xff] %v1941_v27  ;;  %v1988_v27 = vld [vmem:[%s1750_s19 + $0x20] sm:$0xff]  ;;  %534 = vmatpush.msrb.mxu2 %v1976_v47  ;;  %565 = vmatpush.msra.mxu0 %v1993_v11 }
  0x5d   : >> { %2494 = vst [vmem:[#allocation71_spill] sm:$0xff] %v1953_v15  ;;  %v2000_v15 = vld [vmem:[%s2335_s1 + $0x190] sm:$0xff]  ;;  %558 = vmatmul.f32.vlgmr.msrb.gmra.mxu3 %v1988_v27  ;;  %535 = vmatmul.f32.vlgmr.msrb.gmra.mxu2 %v1988_v27 }
  0x5e   : >> { %2495 = vst [vmem:[#allocation72_spill] sm:$0xff] %v1960_v19  ;;  %v2007_v19 = vld [vmem:[%s2335_s1 + $0x460] sm:$0xff]  ;;  %636 = vmatpush.msra.mxu2 %v1239_v5  ;;  %437 = vmatpush.msrb.mxu1 %v2000_v15  ;;  %v2039_v5 = vld [vmem:[%s2335_s1 + $0x418] sm:$0xff] }
  0x5f   : >> { %2496 = vst [vmem:[#allocation73_spill] sm:$0xff] %v1983_v35  ;;  %v2016_v35 = vld [vmem:[%s2335_s1 + $0x448] sm:$0xff]  ;;  %438 = vmatmul.f32.vlgmr.msrb.gmra.mxu1 %v1787_v39  ;;  %566 = vmatpush.msra.mxu0 %v2007_v19 }
  0x60   : >> { %2497 = vst [vmem:[#allocation74_spill] sm:$0xff] %v1993_v11  ;;  %613 = vmatpush.msra.mxu1 %v1217_v1  ;;  %637 = vmatpush.msra.mxu2 %v1261_v9  ;;  %v2025_v11 = vld [vmem:[%s2335_s1 + $0x430] sm:$0xff]  ;;  %v2034_v1 = vld [vmem:[%s1750_s19 + $0x28] sm:$0x7f]  ;;  %v2086_v9 = vld [vmem:[%s2335_s1 + $0x3a0] sm:$0xff] }
  0x61   : >> { %659 = vmatpush.msra.mxu3 %v1222_v2  ;;  %567 = vmatpush.msra.mxu0 %v2016_v35  ;;  %v2050_v2 = vld [vmem:[%s2335_s1 + $0x400] sm:$0xff] }
  0x62   : >> { %614 = vmatpush.msra.mxu1 %v1234_v4  ;;  %638 = vmatpush.msra.mxu2 %v1285_v13  ;;  %v2059_v4 = vld [vmem:[%s2335_s1 + $0x3e8] sm:$0xff]  ;;  %v2113_v13 = vld [vmem:[%s2335_s1 + $0x358] sm:$0xff] }
  0x63   : >> { %660 = vmatpush.msra.mxu3 %v1244_v6  ;;  %568 = vmatpush.msra.mxu0 %v2025_v11  ;;  %v2068_v6 = vld [vmem:[%s2335_s1 + $0x3d0] sm:$0xff] }
  0x64   : >> { %615 = vmatpush.msra.mxu1 %v1256_v8  ;;  %639 = vmatpush.msra.mxu2 %v1302_v16  ;;  %v2077_v8 = vld [vmem:[%s2335_s1 + $0x3b8] sm:$0xff]  ;;  %v2131_v16 = vld [vmem:[%s2335_s1 + $0x328] sm:$0xff] }
  0x65   : >> { %661 = vmatpush.msra.mxu3 %v1268_v10  ;;  %418 = vmatmul.f32.gmra.mxu0 %v1888_v63  ;;  %v2095_v10 = vld [vmem:[%s2335_s1 + $0x388] sm:$0xff] }
  0x66   : >> { %561 = vmatmul.f32.gmra.mxu3 %v2034_v1  ;;  %569 = vmatpush.msra.mxu0 %v2039_v5 }
  0x67   : >> { %616 = vmatpush.msra.mxu1 %v1280_v12  ;;  %640 = vmatpush.msra.mxu2 %v1326_v20  ;;  %v2104_v12 = vld [vmem:[%s2335_s1 + $0x370] sm:$0xff] }
  0x68   : >> { %662 = vmatpush.msra.mxu3 %v1290_v14  ;;  %441 = vmatmul.f32.gmra.mxu1 %v1888_v63  ;;  %v2122_v14 = vld [vmem:[%s2335_s1 + $0x340] sm:$0xff]  ;;  %v2499_v20 = vld [vmem:[#allocation27_spill] sm:$0xff] }
  0x69   : >> { %570 = vmatpush.msra.mxu0 %v2050_v2  ;;  %617 = vmatpush.msra.mxu1 %v1309_v17  ;;  %v2140_v17 = vld [vmem:[%s2335_s1 + $0x310] sm:$0xff] }
  0x6a   : >> { %641 = vmatpush.msra.mxu2 %v1350_v24  ;;  %663 = vmatpush.msra.mxu3 %v1314_v18  ;;  %v2498_v18 = vld [vmem:[#allocation20_spill] sm:$0xff]  ;;  %v2502_v24 = vld [vmem:[#allocation23_spill] sm:$0xff] }
  0x6b   : >> { %571 = vmatpush.msra.mxu0 %v2059_v4  ;;  %618 = vmatpush.msra.mxu1 %v1333_v21  ;;  %v2500_v21 = vld [vmem:[#allocation21_spill] sm:$0xff] }
  0x6c   : >> { %642 = vmatpush.msra.mxu2 %v1374_v28  ;;  %664 = vmatpush.msra.mxu3 %v1338_v22  ;;  %v2501_v22 = vld [vmem:[#allocation4_spill] sm:$0xff]  ;;  %v2506_v28 = vld [vmem:[#allocation26_spill] sm:$0xff] }
  0x6d   : >> { %572 = vmatpush.msra.mxu0 %v2068_v6  ;;  %619 = vmatpush.msra.mxu1 %v1357_v25  ;;  %v2503_v25 = vld [vmem:[#allocation31_spill] sm:$0xff] }
  0x6e   : >> { %643 = vmatpush.msra.mxu2 %v1398_v32  ;;  %665 = vmatpush.msra.mxu3 %v1362_v26  ;;  %v2504_v26 = vld [vmem:[#allocation24_spill] sm:$0xff]  ;;  %v2511_v32 = vld [vmem:[#allocation39_spill] sm:$0xff] }
  0x6f   : >> { %573 = vmatpush.msra.mxu0 %v2077_v8  ;;  %620 = vmatpush.msra.mxu1 %v1381_v29  ;;  %v2508_v29 = vld [vmem:[#allocation28_spill] sm:$0xff] }
  0x70   : >> { %644 = vmatpush.msra.mxu2 %v1422_v36  ;;  %666 = vmatpush.msra.mxu3 %v1386_v30  ;;  %v2509_v30 = vld [vmem:[#allocation30_spill] sm:$0xff]  ;;  %v2514_v36 = vld [vmem:[#allocation7_spill] sm:$0xff] }
  0x71   : >> { %574 = vmatpush.msra.mxu0 %v2086_v9  ;;  %621 = vmatpush.msra.mxu1 %v1405_v33  ;;  %v2512_v33 = vld [vmem:[#allocation32_spill] sm:$0xff] }
  0x72   : >> { %645 = vmatpush.msra.mxu2 %v1446_v40  ;;  %667 = vmatpush.msra.mxu3 %v1410_v34  ;;  %v2513_v34 = vld [vmem:[#allocation34_spill] sm:$0xff] }
  0x73   : >> { %575 = vmatpush.msra.mxu0 %v2095_v10  ;;  %622 = vmatpush.msra.mxu1 %v1429_v37  ;;  %v2515_v37 = vld [vmem:[#allocation43_spill] sm:$0xff]  ;;  %v2517_v40 = vld [vmem:[#allocation38_spill] sm:$0xff] }
  0x74   : >> { %646 = vmatpush.msra.mxu2 %v1470_v44  ;;  %668 = vmatpush.msra.mxu3 %v1434_v38  ;;  %v2516_v38 = vld [vmem:[#allocation36_spill] sm:$0xff]  ;;  %v2521_v44 = vld [vmem:[#allocation42_spill] sm:$0xff] }
  0x75   : >> { %576 = vmatpush.msra.mxu0 %v2104_v12  ;;  %623 = vmatpush.msra.mxu1 %v1453_v41  ;;  %v2518_v41 = vld [vmem:[#allocation47_spill] sm:$0xff] }
  0x76   : >> { %647 = vmatpush.msra.mxu2 %v1494_v48  ;;  %669 = vmatpush.msra.mxu3 %v1458_v42  ;;  %v2519_v42 = vld [vmem:[#allocation40_spill] sm:$0xff]  ;;  %v2524_v48 = vld [vmem:[#allocation9_spill] sm:$0xff] }
  0x77   : >> { %577 = vmatpush.msra.mxu0 %v2113_v13  ;;  %624 = vmatpush.msra.mxu1 %v1477_v45  ;;  %v2522_v45 = vld [vmem:[#allocation51_spill] sm:$0xff] }
  0x78   : >> { %648 = vmatpush.msra.mxu2 %v1518_v52  ;;  %670 = vmatpush.msra.mxu3 %v1482_v46  ;;  %v2523_v46 = vld [vmem:[#allocation44_spill] sm:$0xff] }
  0x79   : >> { %578 = vmatpush.msra.mxu0 %v2122_v14  ;;  %625 = vmatpush.msra.mxu1 %v1501_v49  ;;  %v2525_v49 = vld [vmem:[#allocation46_spill] sm:$0xff]  ;;  %v2527_v52 = vld [vmem:[#allocation48_spill] sm:$0xff] }
  0x7a   : >> { %649 = vmatpush.msra.mxu2 %v1542_v56  ;;  %671 = vmatpush.msra.mxu3 %v1506_v50  ;;  %v2526_v50 = vld [vmem:[#allocation55_spill] sm:$0xff]  ;;  %v2531_v56 = vld [vmem:[#allocation52_spill] sm:$0xff] }
  0x7b   : >> { %579 = vmatpush.msra.mxu0 %v2131_v16  ;;  %626 = vmatpush.msra.mxu1 %v1525_v53  ;;  %v2528_v53 = vld [vmem:[#allocation10_spill] sm:$0xff] }
  0x7c   : >> { %650 = vmatpush.msra.mxu2 %v1566_v60  ;;  %672 = vmatpush.msra.mxu3 %v1530_v54  ;;  %v2529_v54 = vld [vmem:[#allocation50_spill] sm:$0xff]  ;;  %v2535_v60 = vld [vmem:[#allocation56_spill] sm:$0xff] }
  0x7d   : >> { %580 = vmatpush.msra.mxu0 %v2140_v17  ;;  %627 = vmatpush.msra.mxu1 %v1549_v57  ;;  %v2532_v57 = vld [vmem:[#allocation11_spill] sm:$0xff] }
  0x7e   : >> { %651 = vmatpush.msra.mxu2 %v1609_v59  ;;  %673 = vmatpush.msra.mxu3 %v1554_v58  ;;  %v2533_v58 = vld [vmem:[#allocation54_spill] sm:$0xff]  ;;  %v2534_v59 = vld [vmem:[#allocation63_spill] sm:$0xff] }
  0x7f   : >> { %538 = vmatmul.f32.gmra.mxu2 %v2034_v1  ;;  %581 = vmatmul.f32.vlgmr.msra.gmra.mxu0 %v1988_v27 }
  0x80   : >> { %748 = vmatpush.msrb.mxu2 %v1621_v43  ;;  %628 = vmatpush.msra.mxu1 %v1573_v61  ;;  %v2520_v43 = vld [vmem:[#allocation8_spill] sm:$0xff] }
  0x81   : >> { %674 = vmatpush.msra.mxu3 %v1578_v62  ;;  %702 = vmatpush.msrb.mxu0 %v1227_v3  ;;  %v2507_v3 = vld [vmem:[#allocation35_spill] sm:$0xff]  ;;  %v2536_v61 = vld [vmem:[#allocation12_spill] sm:$0xff]  ;;  %v2537_v62 = vld [vmem:[#allocation58_spill] sm:$0xff] }
  0x82   : >> { %725 = vmatpush.msrb.mxu1 %v1590_v0  ;;  %749 = vmatpush.msrb.mxu2 %v1645_v31  ;;  %v2505_v0 = vld [vmem:[#allocation5_spill] sm:$0xff]  ;;  %v2510_v31 = vld [vmem:[#allocation6_spill] sm:$0xff] }
  0x83   : >> { %796 = vmatpush.msrb.mxu3 %v1597_v55  ;;  %703 = vmatpush.msrb.mxu0 %v2501_v22  ;;  %v2530_v55 = vld [vmem:[#allocation59_spill] sm:$0xff]  ;;  %v2541_v22 = vld [vmem:[#allocation62_spill] sm:$0xff] }
  0x84   : >> { %726 = vmatpush.msrb.mxu1 %v2498_v18  ;;  %750 = vmatpush.msrb.mxu2 %v2499_v20  ;;  %v2538_v18 = vld [vmem:[#allocation67_spill] sm:$0xff]  ;;  %v2539_v20 = vld [vmem:[#allocation60_spill] sm:$0xff] }
  0x85   : >> { %797 = vmatpush.msrb.mxu3 %v2500_v21  ;;  %704 = vmatpush.msrb.mxu0 %v2505_v0  ;;  %v2540_v21 = vld [vmem:[#allocation13_spill] sm:$0xff]  ;;  %v2546_v0 = vld [vmem:[#allocation15_spill] sm:$0xff] }
  0x86   : >> { %727 = vmatpush.msrb.mxu1 %v2502_v24  ;;  %751 = vmatpush.msrb.mxu2 %v2503_v25  ;;  %v2542_v24 = vld [vmem:[#allocation64_spill] sm:$0xff]  ;;  %v2543_v25 = vld [vmem:[#allocation14_spill] sm:$0xff] }
  0x87   : >> { %798 = vmatpush.msrb.mxu3 %v2504_v26  ;;  %584 = vmatmul.f32.gmra.mxu0 %v2034_v1  ;;  %v2545_v26 = vld [vmem:[#allocation68_spill] sm:$0xff] }
  0x88   : >> { %728 = vmatpush.msrb.mxu1 %v2506_v28  ;;  %752 = vmatpush.msrb.mxu2 %v2507_v3  ;;  %v2547_v28 = vld [vmem:[#allocation70_spill] sm:$0xff]  ;;  %v2548_v3 = vld [vmem:[#allocation71_spill] sm:$0xff] }
  0x89   : >> { %799 = vmatpush.msrb.mxu3 %v2508_v29  ;;  %705 = vmatpush.msrb.mxu0 %v2510_v31  ;;  %v2550_v29 = vld [vmem:[#allocation16_spill] sm:$0xff]  ;;  %v2555_v31 = vld [vmem:[#allocation18_spill] sm:$0xff] }
  0x8a   : >> { %729 = vmatpush.msrb.mxu1 %v2509_v30  ;;  %753 = vmatpush.msrb.mxu2 %v2511_v32  ;;  %v2553_v30 = vld [vmem:[#allocation17_spill] sm:$0xff]  ;;  %v1091_v32 = vld [vmem:[%s1750_s19 + $0x30] sm:$0xff] }
  0x8b   : >> { %800 = vmatpush.msrb.mxu3 %v2512_v33  ;;  %706 = vmatpush.msrb.mxu0 %v2514_v36  ;;  %v2558_v33 = vld [vmem:[#allocation37_spill] sm:$0xff]  ;;  %v1092_v36 = vld [vmem:[%s1750_s19 + $0x38] sm:$0x7f]  ;;  %s1093_s19 = sshll.u32 %s1164_s24, 3  ;;  %s177_s24 = sadd.s32 1, %s1164_s24  }
  0x8c   : >> { %730 = vmatpush.msrb.mxu1 %v2513_v34  ;;  %754 = vmatpush.msrb.mxu2 %v2515_v37  ;;  %v2559_v34 = vld [vmem:[#allocation41_spill] sm:$0xff]  ;;  %s898_s17 = scalar_lea.vmem %s1207_s23, %s1093_s19  ;;  %p174_p4 = scmp.ge.s32.totalorder %s177_s24, 6  }
  0x8d   : >> { %801 = vmatpush.msrb.mxu3 %v2516_v38  ;;  %652 = vmatmul.f32.vlgmr.msra.gmra.mxu2 %v1787_v39 }
  0x8e   : >> { %731 = vmatpush.msrb.mxu1 %v2517_v40  ;;  %755 = vmatpush.msrb.mxu2 %v2518_v41 }
  0x8f   : >> { %802 = vmatpush.msrb.mxu3 %v2519_v42  ;;  %707 = vmatpush.msrb.mxu0 %v2520_v43 }
  0x90   : >> { %732 = vmatpush.msrb.mxu1 %v2521_v44  ;;  %756 = vmatpush.msrb.mxu2 %v2522_v45 }
  0x91   : >> { %803 = vmatpush.msrb.mxu3 %v2523_v46  ;;  %629 = vmatmul.f32.vlgmr.msra.gmra.mxu1 %v1787_v39 }
  0x92   : >> { %708 = vmatpush.msrb.mxu0 %v2524_v48  ;;  %733 = vmatpush.msrb.mxu1 %v2525_v49 }
  0x93   : >> { %757 = vmatpush.msrb.mxu2 %v2526_v50  ;;  %804 = vmatpush.msrb.mxu3 %v2527_v52 }
  0x94   : >> { %709 = vmatpush.msrb.mxu0 %v2528_v53  ;;  %734 = vmatpush.msrb.mxu1 %v2529_v54 }
  0x95   : >> { %758 = vmatpush.msrb.mxu2 %v2530_v55  ;;  %805 = vmatpush.msrb.mxu3 %v2531_v56 }
  0x96   : >> { %710 = vmatpush.msrb.mxu0 %v2532_v57  ;;  %735 = vmatpush.msrb.mxu1 %v2533_v58 }
  0x97   : >> { %759 = vmatpush.msrb.mxu2 %v2534_v59  ;;  %806 = vmatpush.msrb.mxu3 %v2535_v60 }
  0x98   : >> { %655 = vmatmul.f32.gmra.mxu2 %v1888_v63  ;;  %675 = vmatmul.f32.vlgmr.msra.gmra.mxu3 %v1787_v39  ;;  %v2544_v39 = vld [vmem:[#allocation66_spill] sm:$0xff] }
  0x99   : >> { %711 = vmatpush.msrb.mxu0 %v2536_v61  ;;  %736 = vmatpush.msrb.mxu1 %v2537_v62 }
  0x9a   : >> { %760 = vmatpush.msrb.mxu2 %v2538_v18  ;;  %807 = vmatpush.msrb.mxu3 %v2539_v20 }
  0x9b   : >> { %632 = vmatmul.f32.gmra.mxu1 %v1888_v63  ;;  %712 = vmatpush.msrb.mxu0 %v2540_v21 }
  0x9c   : >> { %737 = vmatpush.msrb.mxu1 %v2541_v22  ;;  %761 = vmatpush.msrb.mxu2 %v1948_v7  ;;  %v2549_v7 = vld [vmem:[#allocation19_spill] sm:$0xff] }
  0x9d   : >> { %808 = vmatpush.msrb.mxu3 %v2542_v24  ;;  %713 = vmatpush.msrb.mxu0 %v2543_v25 }
  0x9e   : >> { %738 = vmatpush.msrb.mxu1 %v2544_v39  ;;  %762 = vmatpush.msrb.mxu2 %v1971_v23  ;;  %v2551_v23 = vld [vmem:[#allocation22_spill] sm:$0xff] }
  0x9f   : >> { %809 = vmatpush.msrb.mxu3 %v2545_v26  ;;  %714 = vmatpush.msrb.mxu0 %v2546_v0 }
  0xa0   : >> { %739 = vmatpush.msrb.mxu1 %v2547_v28  ;;  %763 = vmatpush.msrb.mxu2 %v2000_v15  ;;  %v2552_v15 = vld [vmem:[#allocation74_spill] sm:$0xff] }
  0xa1   : >> { %810 = vmatpush.msrb.mxu3 %v2548_v3  ;;  %764 = vmatmul.f32.vlgmr.msrb.gmra.mxu2 %v1988_v27 }
  0xa2   : >> { %678 = vmatmul.f32.gmra.mxu3 %v1888_v63  ;;  %1100 = vmatpush.msra.mxu2 %v2549_v7  ;;  %v2554_v63 = vld [vmem:[#allocation25_spill] sm:$0xff] }
  0xa3   : >> { %715 = vmatpush.msrb.mxu0 %v2550_v29  ;;  %740 = vmatpush.msrb.mxu1 %v1965_v51  ;;  %v2557_v51 = vld [vmem:[#allocation33_spill] sm:$0xff] }
  0xa4   : >> { %811 = vmatpush.msrb.mxu3 %v1976_v47  ;;  %741 = vmatmul.f32.vlgmr.msrb.gmra.mxu1 %v1988_v27  ;;  %v2556_v47 = vld [vmem:[#allocation29_spill] sm:$0xff] }
  0xa5   : >> { %1101 = vmatpush.msra.mxu2 %v2551_v23  ;;  %716 = vmatpush.msrb.mxu0 %v2553_v30 }
  0xa6   : >> { %1116 = vmatpush.msra.mxu3 %v2552_v15  ;;  %842 = vmatpush.msra.mxu1 %v2552_v15 }
  0xa7   : >> { %1102 = vmatpush.msra.mxu2 %v2554_v63  ;;  %717 = vmatpush.msrb.mxu0 %v2555_v31 }
  0xa8   : >> { %1117 = vmatpush.msra.mxu3 %v2007_v19  ;;  %843 = vmatpush.msra.mxu1 %v2007_v19  ;;  %v2560_v19 = vld [vmem:[#allocation45_spill] sm:$0xff] }
  0xa9   : >> { %819 = vmatpush.msra.mxu0 %v2549_v7  ;;  %1103 = vmatpush.msra.mxu2 %v2556_v47 }
  0xaa   : >> { %1118 = vmatpush.msra.mxu3 %v2016_v35  ;;  %767 = vmatmul.f32.gmra.mxu2 %v2034_v1 }
  0xab   : >> { %820 = vmatpush.msra.mxu0 %v2551_v23  ;;  %1104 = vmatpush.msra.mxu2 %v2557_v51 }
  0xac   : >> { %1119 = vmatpush.msra.mxu3 %v2025_v11  ;;  %744 = vmatmul.f32.gmra.mxu1 %v2034_v1 }
  0xad   : >> { %821 = vmatpush.msra.mxu0 %v2554_v63  ;;  %1105 = vmatpush.msra.mxu2 %v2558_v33 }
  0xae   : >> { %1120 = vmatpush.msra.mxu3 %v2039_v5  ;;  %718 = vmatmul.f32.vlgmr.msrb.gmra.mxu0 %v1988_v27  ;;  %v2561_v27 = vld [vmem:[#allocation49_spill] sm:$0xff] }
  0xaf   : >> { %812 = vmatmul.f32.vlgmr.msrb.gmra.mxu3 %v1091_v32  ;;  %822 = vmatpush.msra.mxu0 %v2556_v47 }
  0xb0   : >> { %1106 = vmatpush.msra.mxu2 %v2559_v34  ;;  %844 = vmatpush.msra.mxu1 %v2016_v35  ;;  %v2562_v35 = vld [vmem:[#allocation53_spill] sm:$0xff] }
  0xb1   : >> { %1121 = vmatpush.msra.mxu3 %v2050_v2  ;;  %823 = vmatpush.msra.mxu0 %v2557_v51 }
  0xb2   : >> { %1107 = vmatpush.msra.mxu2 %v2560_v19  ;;  %845 = vmatpush.msra.mxu1 %v2025_v11  ;;  %v2563_v11 = vld [vmem:[#allocation57_spill] sm:$0xff] }
  0xb3   : >> { %1122 = vmatpush.msra.mxu3 %v2059_v4  ;;  %824 = vmatpush.msra.mxu0 %v2558_v33 }
  0xb4   : >> { %1108 = vmatpush.msra.mxu2 %v2561_v27  ;;  %846 = vmatpush.msra.mxu1 %v2039_v5  ;;  %v2564_v5 = vld [vmem:[#allocation61_spill] sm:$0xff] }
  0xb5   : >> { %1123 = vmatpush.msra.mxu3 %v2068_v6  ;;  %825 = vmatpush.msra.mxu0 %v2559_v34 }
  0xb6   : >> { %1109 = vmatpush.msra.mxu2 %v2562_v35  ;;  %847 = vmatpush.msra.mxu1 %v2050_v2  ;;  %v2566_v2 = vld [vmem:[#allocation69_spill] sm:$0xff] }
  0xb7   : >> { %1124 = vmatpush.msra.mxu3 %v2077_v8  ;;  %721 = vmatmul.f32.gmra.mxu0 %v2034_v1  ;;  %v2565_v1 = vld [vmem:[#allocation65_spill] sm:$0xff] }
  0xb8   : >> { %815 = vmatmul.f32.gmra.mxu3 %v1092_v36  ;;  %826 = vmatpush.msra.mxu0 %v2560_v19 }
  0xb9   : >> { %1110 = vmatpush.msra.mxu2 %v2563_v11  ;;  %848 = vmatpush.msra.mxu1 %v2059_v4  ;;  %v2567_v4 = vld [vmem:[#allocation72_spill] sm:$0xff] }
  0xba   : >> { %1125 = vmatpush.msra.mxu3 %v2086_v9  ;;  %827 = vmatpush.msra.mxu0 %v2561_v27 }
  0xbb   : >> { %1111 = vmatpush.msra.mxu2 %v2564_v5  ;;  %849 = vmatpush.msra.mxu1 %v2068_v6  ;;  %v2568_v6 = vld [vmem:[#allocation73_spill] sm:$0xff] }
  0xbc   : >> { %1126 = vmatpush.msra.mxu3 %v2095_v10  ;;  %828 = vmatpush.msra.mxu0 %v2562_v35 }
  0xbd   : >> { %1112 = vmatpush.msra.mxu2 %v2565_v1  ;;  %850 = vmatpush.msra.mxu1 %v2077_v8 }
  0xbe   : >> { %1127 = vmatpush.msra.mxu3 %v2104_v12  ;;  %829 = vmatpush.msra.mxu0 %v2563_v11 }
  0xbf   : >> { %1113 = vmatpush.msra.mxu2 %v2566_v2  ;;  %851 = vmatpush.msra.mxu1 %v2086_v9  ;;  %v248_v9 = vpop.f32.mrf.mxu0 }
  0xc0   : >> { %1128 = vmatpush.msra.mxu3 %v2113_v13  ;;  %830 = vmatpush.msra.mxu0 %v2564_v5  ;;  %v271_v8 = vpop.f32.mrf.mxu1 }
  0xc1   : >> { %1114 = vmatpush.msra.mxu2 %v2567_v4  ;;  %852 = vmatpush.msra.mxu1 %v2095_v10  ;;  %v305_v55 = vrot.slane %v271_v8, 1 }
  0xc2   : >> { %1129 = vmatpush.msra.mxu3 %v2122_v14  ;;  %831 = vmatpush.msra.mxu0 %v2565_v1 }
  0xc3   : >> { %1115 = vmatpush.msra.mxu2 %v2568_v6  ;;  %853 = vmatpush.msra.mxu1 %v2104_v12 }
  0xc4   : >> { %1130 = vmatpush.msra.mxu3 %v2131_v16  ;;  %838 = vmatmul.f32.vlgmr.msra.gmra.mxu2 %v1092_v36  ;;  %v393_v12 = vpop.f32.mrf.mxu3 }
  0xc5   : >> { %832 = vmatpush.msra.mxu0 %v2566_v2  ;;  %854 = vmatpush.msra.mxu1 %v2113_v13 }
  0xc6   : >> { %1131 = vmatpush.msra.mxu3 %v2140_v17 }
  0xc7   : >> { %861 = vmatmul.f32.vlgmr.msra.gmra.mxu3 %v1092_v36  ;;  %833 = vmatpush.msra.mxu0 %v2567_v4 }
  0xc8   : >> { %855 = vmatpush.msra.mxu1 %v2122_v14 }
  0xc9   : >> { %834 = vmatpush.msra.mxu0 %v2568_v6  ;;  %v294_v10 = vpop.f32.mrf.mxu2 }
  0xca   : >> { %856 = vmatpush.msra.mxu1 %v2131_v16  ;;  %835 = vmatmul.f32.vlgmr.msra.gmra.mxu0 %v1091_v32  ;;  %v274_v13 = vpop.f32.mrf.mxu1  ;;  %v251_v37 = vpop.f32.mrf.mxu0  ;;  %v315_v59 = vrot.slane %v294_v10, 2 }
  0xcb   : >> { %v306_v56 = vrot.slane %v274_v13, 1 }
  0xcc   : >> { %857 = vmatpush.msra.mxu1 %v2140_v17 }
  0xcd   : >> { %858 = vmatmul.f32.vlgmr.msra.gmra.mxu1 %v1091_v32  ;;  %v311_v57 = vadd.f32 %v306_v56, %v251_v37  ;;  %v307_v58 = vsel %vm304_vm0, %v305_v55, %v306_v56 }
  0xce   : >> { %v310_v22 = vadd.f32 %v307_v58, %v248_v9 }
  0xcf   : >> { %v396_v40 = vpop.f32.mrf.mxu3 }
  0xd1   : >> { %v297_v38 = vpop.f32.mrf.mxu2 }
  0xd2   : >> { %v316_v60 = vrot.slane %v297_v38, 2 }
  0xd4   : >> { %v321_v24 = vadd.f32 %v316_v60, %v311_v57  ;;  %v317_v39 = vsel %vm314_vm1, %v315_v59, %v316_v60 }
  0xd5   : >> { %v320_v7 = vadd.f32 %v317_v39, %v310_v22 }
  0xd6   : >> { %v446_v29 = vadd.f32 %v396_v40, %v321_v24 }
  0xd7   : >> { %v445_v32 = vadd.f32 %v393_v12, %v320_v7 }
  0xd8   : >> { %v416_v42 = vpop.f32.mrf.mxu0 }
  0xd9   : >> { %v449_v23 = vrot.slane %v416_v42, 1 }
  0xdc   : >> { %v439_v41 = vpop.f32.mrf.mxu1 }
  0xdd   : >> { %v458_v19 = vrot.slane %v439_v41, 2 }
  0xe0   : >> { %v2298_v43 = vpop.f32.mrf.mxu2  ;;  %v2300_v14 = vpop.f32.mrf.mxu3 }
  0xe1   : >> { %v592_v42 = vrot.slane %v2300_v14, 1 }
  0xe2   : >> { %v419_v16 = vpop.f32.mrf.mxu0 }
  0xe3   : >> { %v450_v15 = vrot.slane %v419_v16, 1 }
  0xe5   : >> { %v442_v44 = vpop.f32.mrf.mxu1  ;;  %v455_v51 = vadd.f32 %v450_v15, %v446_v29  ;;  %v451_v27 = vsel %vm304_vm0, %v449_v23, %v450_v15 }
  0xe6   : >> { %v459_v36 = vrot.slane %v442_v44, 2  ;;  %v454_v4 = vadd.f32 %v451_v27, %v445_v32 }
  0xe8   : >> { %v464_v6 = vadd.f32 %v459_v36, %v455_v51  ;;  %v460_v8 = vsel %vm314_vm1, %v458_v19, %v459_v36 }
  0xe9   : >> { %v2302_v17 = vpop.f32.mrf.mxu3  ;;  %v463_v38 = vadd.f32 %v460_v8, %v454_v4 }
  0xea   : >> { %v593_v44 = vrot.slane %v2302_v17, 1 }
  0xec   : >> { %v594_v57 = vsel %vm304_vm0, %v592_v42, %v593_v44 }
  0xfc   : >> { %v2304_v48 = vpop.f32.mrf.mxu0 }
 0x102   : >> { %v539_v45 = vpop.f32.mrf.mxu2 }
 0x103   : >> { %v589_v40 = vadd.f32 %v539_v45, %v464_v6 }
 0x104   : >> { %v2306_v53 = vpop.f32.mrf.mxu0 }
 0x105   : >> { %v598_v55 = vadd.f32 %v593_v44, %v589_v40 }
 0x10e   : >> { %v630_v46 = vpop.f32.mrf.mxu1 }
 0x110   : >> { %v653_v49 = vpop.f32.mrf.mxu2 }
 0x111   : >> { %v686_v20 = vrot.slane %v653_v49, 1  ;;  %v601_v49 = vrot.slane %v2304_v48, 2 }
 0x118   : >> { %v633_v50 = vpop.f32.mrf.mxu1 }
 0x11b   : >> { %v676_v52 = vpop.f32.mrf.mxu3  ;;  %v656_v54 = vpop.f32.mrf.mxu2 }
 0x11c   : >> { %v687_v21 = vrot.slane %v656_v54, 1  ;;  %v695_v28 = vrot.slane %v676_v52, 2  ;;  %v588_v54 = vadd.f32 %v2298_v43, %v463_v38 }
 0x11e   : >> { %v688_v26 = vsel %vm304_vm0, %v686_v20, %v687_v21  ;;  %v692_v0 = vadd.f32 %v687_v21, %v633_v50  ;;  %v602_v50 = vrot.slane %v2306_v53, 2 }
 0x11f   : >> { %v691_v30 = vadd.f32 %v688_v26, %v630_v46 }
 0x120   : >> { %v603_v14 = vsel %vm314_vm1, %v601_v49, %v602_v50 }
 0x121   : >> { %v742_v61 = vpop.f32.mrf.mxu1 }
 0x122   : >> { %v775_v5 = vrot.slane %v742_v61, 1  ;;  %v597_v61 = vadd.f32 %v594_v57, %v588_v54 }
 0x124   : >> { %v765_v25 = vpop.f32.mrf.mxu2  ;;  %v606_v39 = vadd.f32 %v603_v14, %v597_v61 }
 0x125   : >> { %v679_v62 = vpop.f32.mrf.mxu3  ;;  %v784_v9 = vrot.slane %v765_v25, 2 }
 0x126   : >> { %v696_v3 = vrot.slane %v679_v62, 2  ;;  %v607_v62 = vadd.f32 %v602_v50, %v598_v55 }
 0x128   : >> { %v697_v31 = vsel %vm314_vm1, %v695_v28, %v696_v3  ;;  %v701_v47 = vadd.f32 %v696_v3, %v692_v0 }
 0x129   : >> { %v745_v33 = vpop.f32.mrf.mxu1  ;;  %v700_v35 = vadd.f32 %v697_v31, %v691_v30 }
 0x12a   : >> { %v776_v1 = vrot.slane %v745_v33, 1 }
 0x12b   : >> { %v719_v18 = vpop.f32.mrf.mxu0 }
 0x12c   : >> { %v771_v13 = vadd.f32 %v719_v18, %v700_v35  ;;  %v777_v12 = vsel %vm304_vm0, %v775_v5, %v776_v1  ;;  %v2569_v18 = vld [vmem:[#allocation3_spill] sm:$0xff] }
 0x12d   : >> { %v768_v11 = vpop.f32.mrf.mxu2  ;;  %v609_v48 = vperm.slane %v2569_v18, 0 }
 0x12e   : >> { %v785_v10 = vrot.slane %v768_v11, 2  ;;  %v780_v46 = vadd.f32 %v777_v12, %v771_v13 }
 0x12f   : >> { %v612_v7 = vadd.f32 %v609_v48, %v607_v62  ;;  %v611_v23 = vadd.f32 %v609_v48, %v606_v39 }
 0x130   : >> { %v786_v16 = vsel %vm314_vm1, %v784_v9, %v785_v10 }
 0x131   : >> { %v789_v56 = vadd.f32 %v786_v16, %v780_v46 }
 0x132   : >> { %v813_v63 = vpop.f32.mrf.mxu3 }
 0x133   : >> { %v865_v20 = vadd.f32 %v813_v63, %v789_v56 }
 0x134   : >> { %v722_v34 = vpop.f32.mrf.mxu0 }
 0x135   : >> { %v772_v2 = vadd.f32 %v722_v34, %v701_v47 }
 0x137   : >> { %v781_v37 = vadd.f32 %v776_v1, %v772_v2 }
 0x139   : >> { %v790_v52 = vadd.f32 %v785_v10, %v781_v37 }
 0x13b   : >> { %v816_v41 = vpop.f32.mrf.mxu3 }
 0x13c   : >> { %v866_v17 = vadd.f32 %v816_v41, %v790_v52 }
 0x147   : >> { %v836_v45 = vpop.f32.mrf.mxu0  ;;  %v839_v59 = vpop.f32.mrf.mxu2 }
 0x148   : >> { %v869_v58 = vrot.slane %v836_v45, 1  ;;  %v870_v60 = vrot.slane %v839_v59, 1 }
 0x14a   : >> { %v859_v53 = vpop.f32.mrf.mxu1  ;;  %v862_v21 = vpop.f32.mrf.mxu3  ;;  %v871_v43 = vsel %vm304_vm0, %v869_v58, %v870_v60  ;;  %v875_v22 = vadd.f32 %v870_v60, %v866_v17 }
 0x14b   : >> { %v878_v24 = vrot.slane %v859_v53, 2  ;;  %v879_v25 = vrot.slane %v862_v21, 2  ;;  %v874_v26 = vadd.f32 %v871_v43, %v865_v20 }
 0x14d   : >> { %v880_v0 = vsel %vm314_vm1, %v878_v24, %v879_v25  ;;  %v884_v28 = vadd.f32 %v879_v25, %v875_v22 }
 0x14e   : >> { %v883_v3 = vadd.f32 %v880_v0, %v874_v26 }
 0x14f   : >> { %v886_v29 = vadd.f32 %v884_v28, %v609_v48 }
 0x150   : >> { %v885_v15 = vadd.f32 %v883_v3, %v609_v48 }
 0x151   : >> { %v888_v30 = vmax.f32 %v612_v7, %v886_v29 }
 0x152   : >> { %v887_v63 = vmax.f32 %v611_v23, %v885_v15 }
 0x153   : >> { %v890_v31 = vmax.f32 %v888_v30, 0.0 }
 0x154   : >> { %v889_v47 = vmax.f32 %v887_v63, 0.0 }
 0x155   : >> { %892 = vst [vmem:[#allocation2 + $0x8] sm:$0x1f] %v890_v31 }
 0x156   : >> { %891 = vst [vmem:[#allocation2] sm:$0xff] %v889_v47 }
 0x15c   : > { %176 = sbr.rel (!%p174_p4) target bundleno = 16 (0x10), region = 77 }
 0x15d   : >> { %v893_v51 = vld [vmem:[#allocation2] ss:$2 sm:$0x3f]  ;;  %v895_v32 = vld [vmem:[#allocation2 + $0x1] ss:$2 sm:$0x3f] }
 0x15e   : >> { %v896_v33 = vmax.f32 %v893_v51, %v895_v32 }
 0x160   : >> { %899 = vst [vmem:[%s898_s17] sm:$0x3f] %v896_v33 }
 0x161 PF: > { %s13_s12 = sadd.s32 1, %s1160_s12  }
 0x162   : > { %p10_p5 = scmp.ge.s32.totalorder %s13_s12, 4  }
 0x164   :  { %12 = sbr.rel (!%p10_p5) target bundleno = 1 (0x1), region = 88 }

// kernel: small_conv_forward.5
= control target key start
LH: loop header
LB: loop body
LE: loop exit
PB: predicated region body
PF: predicated region fallthrough
CT: control target
= control target key end

     0   :  { %8 = vsyncpa [#allocation4], 0  ;;  %s1004_s12 = smov 0   ;;  %s1644_s0 = inlined_call_operand.vmem [shape: f32[2,6,6,128], index: 0, kind: input, shape index: {}]   ;;  %s1645_s1 = inlined_call_operand.hbm [shape: f32[3,128,384], index: 1, kind: input, shape index: {}]   ;;  %s1646_s2 = inlined_call_operand.vmem [shape: f32[1,128], index: 2, kind: input, shape index: {}]   ;;  %s1647_s3 = inlined_call_operand.vmem [shape: f32[2,2,2,128], index: 3, kind: output, shape index: {}]  }
   0x1 LB: > { %s124_s15 = sshll.u32 %s1645_s1, 4  ;;  %s873_s16 = sadd.s32 4294967295, %s975_s12   ;;  %s975_s12 = sphi %s1004_s12, %s14_s12   ;;  %s125_s15 = int_to_ptr.hbm [resolvable:$true] %s124_s15 }
   0x2   : > { %p875_p0 = scmp.ge.s32.totalorder %s975_s12, 1  ;;  %p113_p1 = scmp.lt.s32.totalorder %s975_s12, 3 }
   0x3   : > { %p910_p2 = scmp.eq.s32.totalorder %s873_s16, 0  ;;  %s981_s17 = smov [#allocation3]  }
   0x4   : > { %p114_p3 = pnand %p875_p0, %p113_p1  ;;  %s126_s18 = sshll.u32 %s981_s17, 4  ;;  %s127_s18 = int_to_ptr.vmem [resolvable:$true] %s126_s18 }
   0x5   : > { %s982_s19 = smov 384   ;;  %s983_s20 = smov 24  }
   0x6   : > { %p906_p4 = pneg %p114_p3  ;;  %153 = sbr.rel (%p114_p3) target bundleno = 340 (0x154), region = 32 }
   0x8   : > { %p907_p5 = pnand %p910_p2, %p906_p4 }
   0xa   : > { %909 = dma.hbm_to_vmem [thread:$0]  (!%p907_p5), %s125_s15, 18432, %s127_s18, [#allocation4], %s982_s19, %s982_s19, %s983_s20  }
   0xb   : > { %970 = dma.done.wait (%p910_p2), [#allocation4], 18432  }
   0xc   : > { %972 = vsyncadd (%p910_p2), [#allocation4], 4294948864  ;;  %p178_p6 = scmp.lt.s32.totalorder %s873_s16, 1  ;;  %v1028_v0 = vld [vmem:[%s1646_s2] sm:$0x1]  ;;  %s1030_s4 = smov 0  }
   0xd   : > { %1718 = vst [vmem:[#allocation6_spill] sm:$0xff] %v1028_v0 }
   0xe   : > { %s1861_s16 = smov (!%p178_p6, %s873_s16), 1 }
   0xf   : > { %s901_s21 = smul.u32 48, %s1861_s16  ;;  %s896_s22 = sshll.u32 %s1861_s16, 2 }
  0x10   : > { %s1018_s25 = scalar_lea.vmem %s1647_s3, %s896_s22 }
  0x11   : > { %s1023_s28 = scalar_lea.vmem %s1644_s0, %s901_s21 }
  0x12 LB: >> { %v1035_v1 = vld [vmem:[#allocation3 + $0x168] sm:$0xff]  ;;  %v1037_v2 = vld [vmem:[#allocation3 + $0x150] sm:$0xff]  ;;  %v1043_v4 = vld [vmem:[#allocation3 + $0x178] sm:$0xff]  ;;  %s897_s5 = sshll.u32 %s979_s4, 4  ;;  %s883_s7 = sshll.u32 %s979_s4, 1  ;;  %s979_s4 = sphi %s1030_s4, %s194_s4  }
  0x13   : >> { %v1039_v3 = vld [vmem:[#allocation3 + $0x170] sm:$0xff]  ;;  %247 = vmatpush.msra.mxu0 %v1035_v1  ;;  %v1045_v5 = vld [vmem:[#allocation3 + $0x158] sm:$0xff]  ;;  %287 = vmatpush.msra.mxu2 %v1043_v4  ;;  %v1050_v7 = vld [vmem:[#allocation3 + $0x160] sm:$0xff]  ;;  %s1352_s6 = scalar_lea.vmem %s1023_s28, %s897_s5  ;;  %s783_s8 = scalar_lea.vmem %s1018_s25, %s883_s7 }
  0x14   : >> { %267 = vmatpush.msra.mxu1 %v1039_v3  ;;  %v1048_v6 = vld [vmem:[#allocation3 + $0x138] sm:$0xff]  ;;  %v1052_v8 = vld [vmem:[#allocation3 + $0x2e8] sm:$0xff]  ;;  %v1056_v9 = vld [vmem:[#allocation3 + $0x140] sm:$0xff]  ;;  %s194_s4 = sadd.s32 1, %s979_s4  }
  0x15   : >> { %248 = vmatpush.msra.mxu0 %v1037_v2  ;;  %v1058_v10 = vld [vmem:[#allocation3 + $0x148] sm:$0xff]  ;;  %v1060_v11 = vld [vmem:[#allocation3 + $0x2d0] sm:$0xff]  ;;  %288 = vmatpush.msra.mxu2 %v1050_v7  ;;  %v1064_v12 = vld [vmem:[#allocation3 + $0x120] sm:$0xff]  ;;  %p191_p7 = scmp.ge.s32.totalorder %s194_s4, 2  }
  0x16   : >> { %268 = vmatpush.msra.mxu1 %v1045_v5  ;;  %369 = vmatpush.msra.mxu3 %v1052_v8  ;;  %v1066_v13 = vld [vmem:[#allocation3 + $0x128] sm:$0xff]  ;;  %v1070_v14 = vld [vmem:[#allocation3 + $0x130] sm:$0xff]  ;;  %v1072_v15 = vld [vmem:[#allocation3 + $0x2b8] sm:$0xff] }
  0x17   : >> { %249 = vmatpush.msra.mxu0 %v1048_v6  ;;  %1719 = vst [vmem:[#allocation7_spill] sm:$0xff] %v1072_v15  ;;  %289 = vmatpush.msra.mxu2 %v1058_v10  ;;  %v1076_v16 = vld [vmem:[#allocation3 + $0x108] sm:$0xff]  ;;  %v1078_v17 = vld [vmem:[#allocation3 + $0x110] sm:$0xff]  ;;  %v1082_v18 = vld [vmem:[#allocation3 + $0x118] sm:$0xff] }
  0x18   : >> { %269 = vmatpush.msra.mxu1 %v1056_v9  ;;  %370 = vmatpush.msra.mxu3 %v1060_v11  ;;  %v1084_v19 = vld [vmem:[#allocation3 + $0x2a0] sm:$0xff]  ;;  %v1088_v20 = vld [vmem:[#allocation3 + $0xf0] sm:$0xff]  ;;  %v1090_v21 = vld [vmem:[#allocation3 + $0xf8] sm:$0xff] }
  0x19   : >> { %250 = vmatpush.msra.mxu0 %v1064_v12  ;;  %1720 = vst [vmem:[#allocation8_spill] sm:$0xff] %v1084_v19  ;;  %290 = vmatpush.msra.mxu2 %v1070_v14  ;;  %v1094_v22 = vld [vmem:[#allocation3 + $0x100] sm:$0xff]  ;;  %v1096_v23 = vld [vmem:[#allocation3 + $0x288] sm:$0xff]  ;;  %v1100_v24 = vld [vmem:[#allocation3 + $0xd8] sm:$0xff] }
  0x1a   : >> { %270 = vmatpush.msra.mxu1 %v1066_v13  ;;  %371 = vmatpush.msra.mxu3 %v1072_v15  ;;  %1721 = vst [vmem:[#allocation9_spill] sm:$0xff] %v1096_v23  ;;  %v1102_v25 = vld [vmem:[#allocation3 + $0xe0] sm:$0xff]  ;;  %v1106_v26 = vld [vmem:[#allocation3 + $0xe8] sm:$0xff]  ;;  %v1108_v27 = vld [vmem:[#allocation3 + $0x270] sm:$0xff] }
  0x1b   : >> { %251 = vmatpush.msra.mxu0 %v1076_v16  ;;  %291 = vmatpush.msra.mxu2 %v1082_v18  ;;  %1722 = vst [vmem:[#allocation10_spill] sm:$0xff] %v1108_v27  ;;  %v1112_v28 = vld [vmem:[#allocation3 + $0xc0] sm:$0xff]  ;;  %v1114_v29 = vld [vmem:[#allocation3 + $0xc8] sm:$0xff]  ;;  %v1118_v30 = vld [vmem:[#allocation3 + $0xd0] sm:$0xff] }
  0x1c   : >> { %271 = vmatpush.msra.mxu1 %v1078_v17  ;;  %372 = vmatpush.msra.mxu3 %v1084_v19  ;;  %v1120_v31 = vld [vmem:[#allocation3 + $0x258] sm:$0xff]  ;;  %v1124_v32 = vld [vmem:[#allocation3 + $0xa8] sm:$0xff]  ;;  %v1126_v33 = vld [vmem:[#allocation3 + $0xb0] sm:$0xff] }
  0x1d   : >> { %252 = vmatpush.msra.mxu0 %v1088_v20  ;;  %292 = vmatpush.msra.mxu2 %v1094_v22  ;;  %1723 = vst [vmem:[#allocation11_spill] sm:$0xff] %v1120_v31  ;;  %v1130_v34 = vld [vmem:[#allocation3 + $0xb8] sm:$0xff]  ;;  %v1132_v35 = vld [vmem:[#allocation3 + $0x240] sm:$0xff]  ;;  %v1136_v36 = vld [vmem:[#allocation3 + $0x90] sm:$0xff] }
  0x1e   : >> { %272 = vmatpush.msra.mxu1 %v1090_v21  ;;  %373 = vmatpush.msra.mxu3 %v1096_v23  ;;  %1724 = vst [vmem:[#allocation12_spill] sm:$0xff] %v1132_v35  ;;  %v1138_v37 = vld [vmem:[#allocation3 + $0x98] sm:$0xff]  ;;  %v1142_v38 = vld [vmem:[#allocation3 + $0xa0] sm:$0xff]  ;;  %v1144_v39 = vld [vmem:[#allocation3 + $0x228] sm:$0xff] }
  0x1f   : >> { %253 = vmatpush.msra.mxu0 %v1100_v24  ;;  %293 = vmatpush.msra.mxu2 %v1106_v26  ;;  %1725 = vst [vmem:[#allocation13_spill] sm:$0xff] %v1144_v39  ;;  %v1148_v40 = vld [vmem:[#allocation3 + $0x78] sm:$0xff]  ;;  %v1150_v41 = vld [vmem:[#allocation3 + $0x80] sm:$0xff]  ;;  %v1154_v42 = vld [vmem:[#allocation3 + $0x88] sm:$0xff] }
  0x20   : >> { %273 = vmatpush.msra.mxu1 %v1102_v25  ;;  %374 = vmatpush.msra.mxu3 %v1108_v27  ;;  %v1156_v43 = vld [vmem:[#allocation3 + $0x210] sm:$0xff]  ;;  %v1160_v44 = vld [vmem:[#allocation3 + $0x60] sm:$0xff]  ;;  %v1162_v45 = vld [vmem:[#allocation3 + $0x68] sm:$0xff] }
  0x21   : >> { %254 = vmatpush.msra.mxu0 %v1112_v28  ;;  %294 = vmatpush.msra.mxu2 %v1118_v30  ;;  %1726 = vst [vmem:[#allocation14_spill] sm:$0xff] %v1156_v43  ;;  %v1166_v46 = vld [vmem:[#allocation3 + $0x70] sm:$0xff]  ;;  %v1168_v47 = vld [vmem:[#allocation3 + $0x1f8] sm:$0xff]  ;;  %v1172_v48 = vld [vmem:[#allocation3 + $0x48] sm:$0xff] }
  0x22   : >> { %274 = vmatpush.msra.mxu1 %v1114_v29  ;;  %375 = vmatpush.msra.mxu3 %v1120_v31  ;;  %1727 = vst [vmem:[#allocation15_spill] sm:$0xff] %v1168_v47  ;;  %v1174_v49 = vld [vmem:[#allocation3 + $0x50] sm:$0xff]  ;;  %v1178_v50 = vld [vmem:[#allocation3 + $0x58] sm:$0xff]  ;;  %v1180_v51 = vld [vmem:[#allocation3 + $0x1e0] sm:$0xff] }
  0x23   : >> { %255 = vmatpush.msra.mxu0 %v1124_v32  ;;  %295 = vmatpush.msra.mxu2 %v1130_v34  ;;  %1728 = vst [vmem:[#allocation16_spill] sm:$0xff] %v1180_v51  ;;  %v1184_v52 = vld [vmem:[#allocation3 + $0x30] sm:$0xff]  ;;  %v1186_v53 = vld [vmem:[#allocation3 + $0x38] sm:$0xff]  ;;  %v1190_v54 = vld [vmem:[#allocation3 + $0x40] sm:$0xff] }
  0x24   : >> { %275 = vmatpush.msra.mxu1 %v1126_v33  ;;  %376 = vmatpush.msra.mxu3 %v1132_v35  ;;  %v1192_v55 = vld [vmem:[#allocation3 + $0x1c8] sm:$0xff]  ;;  %v1196_v56 = vld [vmem:[#allocation3 + $0x18] sm:$0xff]  ;;  %v1198_v57 = vld [vmem:[#allocation3 + $0x20] sm:$0xff] }
  0x25   : >> { %256 = vmatpush.msra.mxu0 %v1136_v36  ;;  %296 = vmatpush.msra.mxu2 %v1142_v38  ;;  %1729 = vst [vmem:[#allocation17_spill] sm:$0xff] %v1192_v55  ;;  %v1202_v58 = vld [vmem:[#allocation3 + $0x28] sm:$0xff]  ;;  %v1204_v59 = vld [vmem:[#allocation3 + $0x1b0] sm:$0xff]  ;;  %v1208_v60 = vld [vmem:[#allocation3] sm:$0xff] }
  0x26   : >> { %276 = vmatpush.msra.mxu1 %v1138_v37  ;;  %377 = vmatpush.msra.mxu3 %v1144_v39  ;;  %1730 = vst [vmem:[#allocation18_spill] sm:$0xff] %v1204_v59  ;;  %v1210_v61 = vld [vmem:[#allocation3 + $0x8] sm:$0xff]  ;;  %v1214_v62 = vld [vmem:[#allocation3 + $0x2f0] sm:$0xff]  ;;  %v1220_v0 = vld [vmem:[#allocation3 + $0x198] sm:$0xff] }
  0x27   : >> { %257 = vmatpush.msra.mxu0 %v1148_v40  ;;  %297 = vmatpush.msra.mxu2 %v1154_v42  ;;  %v1216_v63 = vld [vmem:[#allocation3 + $0x10] sm:$0xff]  ;;  %1732 = vst [vmem:[#allocation20_spill] sm:$0xff] %v1220_v0  ;;  %v1234_v39 = vld [vmem:[#allocation3 + $0x2e0] sm:$0xff]  ;;  %v1246_v27 = vld [vmem:[#allocation3 + $0x2c8] sm:$0xff] }
  0x28   : >> { %277 = vmatpush.msra.mxu1 %v1150_v41  ;;  %378 = vmatpush.msra.mxu3 %v1156_v43  ;;  %1731 = vst [vmem:[#allocation19_spill] sm:$0xff] %v1216_v63  ;;  %v1232_v43 = vld [vmem:[#allocation3 + $0x180] sm:$0xff]  ;;  %v1240_v35 = vld [vmem:[#allocation3 + $0x450] sm:$0xff]  ;;  %v1250_v23 = vld [vmem:[#allocation3 + $0x2a8] sm:$0xff] }
  0x29   : >> { %258 = vmatpush.msra.mxu0 %v1160_v44  ;;  %298 = vmatpush.msra.mxu2 %v1166_v46  ;;  %1734 = vst [vmem:[#allocation22_spill] sm:$0xff] %v1232_v43  ;;  %v1244_v31 = vld [vmem:[#allocation3 + $0x470] sm:$0xff]  ;;  %v1256_v19 = vld [vmem:[#allocation3 + $0x458] sm:$0xff] }
  0x2a   : >> { %278 = vmatpush.msra.mxu1 %v1162_v45  ;;  %379 = vmatpush.msra.mxu3 %v1168_v47  ;;  %v1228_v47 = vld [vmem:[#allocation3 + $0x468] sm:$0xff]  ;;  %1735 = vst [vmem:[#allocation23_spill] sm:$0xff] %v1234_v39  ;;  %v1415_v15 = vld [vmem:[#allocation3 + $0x190] sm:$0xff] }
  0x2b   : >> { %259 = vmatpush.msra.mxu0 %v1172_v48  ;;  %299 = vmatpush.msra.mxu2 %v1178_v50  ;;  %1733 = vst [vmem:[#allocation21_spill] sm:$0xff] %v1228_v47 }
  0x2c   : >> { %279 = vmatpush.msra.mxu1 %v1174_v49  ;;  %380 = vmatpush.msra.mxu3 %v1180_v51  ;;  %v1222_v51 = vld [vmem:[#allocation3 + $0x2f8] sm:$0xff]  ;;  %1737 = vst [vmem:[#allocation25_spill] sm:$0xff] %v1240_v35 }
  0x2d   : >> { %260 = vmatpush.msra.mxu0 %v1184_v52  ;;  %300 = vmatpush.msra.mxu2 %v1190_v54  ;;  %1738 = vst [vmem:[#allocation26_spill] sm:$0xff] %v1244_v31 }
  0x2e   : >> { %280 = vmatpush.msra.mxu1 %v1186_v53  ;;  %381 = vmatpush.msra.mxu3 %v1192_v55  ;;  %v1226_v55 = vld [vmem:[#allocation3 + $0x2d8] sm:$0xff]  ;;  %1739 = vst [vmem:[#allocation27_spill] sm:$0xff] %v1246_v27 }
  0x2f   : >> { %261 = vmatpush.msra.mxu0 %v1196_v56  ;;  %301 = vmatpush.msra.mxu2 %v1202_v58  ;;  %1740 = vst [vmem:[#allocation28_spill] sm:$0xff] %v1250_v23 }
  0x30   : >> { %281 = vmatpush.msra.mxu1 %v1198_v57  ;;  %382 = vmatpush.msra.mxu3 %v1204_v59  ;;  %v1238_v59 = vld [vmem:[#allocation3 + $0x2c0] sm:$0xff]  ;;  %1742 = vst [vmem:[#allocation30_spill] sm:$0xff] %v1256_v19 }
  0x31   : >> { %262 = vmatpush.msra.mxu0 %v1208_v60  ;;  %302 = vmatpush.msra.mxu2 %v1216_v63  ;;  %1736 = vst [vmem:[#allocation24_spill] sm:$0xff] %v1238_v59  ;;  %v1258_v63 = vld [vmem:[#allocation3 + $0x2b0] sm:$0xff] }
  0x32   : >> { %282 = vmatpush.msra.mxu1 %v1210_v61  ;;  %383 = vmatpush.msra.mxu3 %v1220_v0  ;;  %v1252_v0 = vld [vmem:[#allocation3 + $0x438] sm:$0xff]  ;;  %1743 = vst [vmem:[#allocation31_spill] sm:$0xff] %v1258_v63 }
  0x33   : >> { %389 = vmatpush.msrb.mxu0 %v1214_v62  ;;  %491 = vmatpush.msrb.mxu2 %v1228_v47  ;;  %1741 = vst [vmem:[#allocation29_spill] sm:$0xff] %v1252_v0  ;;  %v1262_v47 = vld [vmem:[#allocation3 + $0x290] sm:$0xff] }
  0x34   : >> { %409 = vmatpush.msrb.mxu1 %v1222_v51  ;;  %384 = vmatpush.msra.mxu3 %v1232_v43  ;;  %1744 = vst [vmem:[#allocation32_spill] sm:$0xff] %v1262_v47  ;;  %v1264_v43 = vld [vmem:[#allocation3 + $0x420] sm:$0xff] }
  0x35   : >> { %390 = vmatpush.msrb.mxu0 %v1226_v55  ;;  %492 = vmatpush.msrb.mxu2 %v1240_v35  ;;  %1745 = vst [vmem:[#allocation33_spill] sm:$0xff] %v1264_v43  ;;  %v1274_v35 = vld [vmem:[#allocation3 + $0x278] sm:$0xff] }
  0x36   : >> { %410 = vmatpush.msrb.mxu1 %v1234_v39  ;;  %511 = vmatpush.msrb.mxu3 %v1244_v31  ;;  %v1268_v39 = vld [vmem:[#allocation3 + $0x440] sm:$0xff]  ;;  %1748 = vst [vmem:[#allocation36_spill] sm:$0xff] %v1274_v35  ;;  %v1276_v31 = vld [vmem:[#allocation3 + $0x408] sm:$0xff] }
  0x37   : >> { %391 = vmatpush.msrb.mxu0 %v1238_v59  ;;  %493 = vmatpush.msrb.mxu2 %v1252_v0  ;;  %1746 = vst [vmem:[#allocation34_spill] sm:$0xff] %v1268_v39  ;;  %v1270_v59 = vld [vmem:[#allocation3 + $0x298] sm:$0xff]  ;;  %v1286_v0 = vld [vmem:[#allocation3 + $0x260] sm:$0xff] }
  0x38   : >> { %411 = vmatpush.msrb.mxu1 %v1246_v27  ;;  %1747 = vst [vmem:[#allocation35_spill] sm:$0xff] %v1270_v59  ;;  %512 = vmatpush.msrb.mxu3 %v1256_v19  ;;  %v1280_v27 = vld [vmem:[#allocation3 + $0x428] sm:$0xff]  ;;  %v1288_v19 = vld [vmem:[#allocation3 + $0x3f0] sm:$0xff] }
  0x39   : >> { %392 = vmatpush.msrb.mxu0 %v1250_v23  ;;  %1749 = vst [vmem:[#allocation37_spill] sm:$0xff] %v1276_v31  ;;  %494 = vmatpush.msrb.mxu2 %v1264_v43  ;;  %v1282_v23 = vld [vmem:[#allocation3 + $0x280] sm:$0xff]  ;;  %v1298_v43 = vld [vmem:[#allocation3 + $0x248] sm:$0xff] }
  0x3a   : >> { %412 = vmatpush.msrb.mxu1 %v1258_v63  ;;  %1750 = vst [vmem:[#allocation38_spill] sm:$0xff] %v1280_v27  ;;  %513 = vmatpush.msrb.mxu3 %v1268_v39  ;;  %v1292_v63 = vld [vmem:[#allocation3 + $0x410] sm:$0xff]  ;;  %v1300_v39 = vld [vmem:[#allocation3 + $0x3d8] sm:$0xff] }
  0x3b   : >> { %393 = vmatpush.msrb.mxu0 %v1262_v47  ;;  %1751 = vst [vmem:[#allocation39_spill] sm:$0xff] %v1282_v23  ;;  %495 = vmatpush.msrb.mxu2 %v1276_v31  ;;  %v1294_v47 = vld [vmem:[#allocation3 + $0x268] sm:$0xff]  ;;  %v1312_v31 = vld [vmem:[#allocation3 + $0x3c0] sm:$0xff] }
  0x3c   : >> { %413 = vmatpush.msrb.mxu1 %v1270_v59  ;;  %1752 = vst [vmem:[#allocation40_spill] sm:$0xff] %v1286_v0  ;;  %514 = vmatpush.msrb.mxu3 %v1280_v27  ;;  %v1304_v59 = vld [vmem:[#allocation3 + $0x3f8] sm:$0xff]  ;;  %v1310_v27 = vld [vmem:[#allocation3 + $0x230] sm:$0xff] }
  0x3d   : >> { %1753 = vst [vmem:[#allocation41_spill] sm:$0xff] %v1288_v19  ;;  %394 = vmatpush.msrb.mxu0 %v1274_v35  ;;  %496 = vmatpush.msrb.mxu2 %v1288_v19  ;;  %v1306_v35 = vld [vmem:[#allocation3 + $0x250] sm:$0xff]  ;;  %v1318_v19 = vld [vmem:[#allocation3 + $0x238] sm:$0xff] }
  0x3e   : >> { %1754 = vst [vmem:[#allocation42_spill] sm:$0xff] %v1292_v63  ;;  %414 = vmatpush.msrb.mxu1 %v1282_v23  ;;  %515 = vmatpush.msrb.mxu3 %v1292_v63  ;;  %v1322_v63 = vld [vmem:[#allocation3 + $0x218] sm:$0xff]  ;;  %v1324_v23 = vld [vmem:[#allocation3 + $0x3a8] sm:$0xff] }
  0x3f   : >> { %1755 = vst [vmem:[#allocation43_spill] sm:$0xff] %v1294_v47  ;;  %395 = vmatpush.msrb.mxu0 %v1286_v0  ;;  %497 = vmatpush.msrb.mxu2 %v1300_v39  ;;  %v1316_v0 = vld [vmem:[#allocation3 + $0x3e0] sm:$0xff] }
  0x40   : >> { %1756 = vst [vmem:[#allocation44_spill] sm:$0xff] %v1298_v43  ;;  %415 = vmatpush.msrb.mxu1 %v1294_v47  ;;  %516 = vmatpush.msrb.mxu3 %v1304_v59  ;;  %v1347_v47 = vld [vmem:[#allocation3 + $0x1e8] sm:$0xff] }
  0x41   : >> { %1757 = vst [vmem:[#allocation45_spill] sm:$0xff] %v1300_v39  ;;  %396 = vmatpush.msrb.mxu0 %v1298_v43  ;;  %498 = vmatpush.msrb.mxu2 %v1312_v31  ;;  %v1328_v43 = vld [vmem:[#allocation3 + $0x3c8] sm:$0xff]  ;;  %v1330_v39 = vld [vmem:[#allocation3 + $0x220] sm:$0xff] }
  0x42   : >> { %1758 = vst [vmem:[#allocation46_spill] sm:$0xff] %v1304_v59  ;;  %416 = vmatpush.msrb.mxu1 %v1306_v35  ;;  %517 = vmatpush.msrb.mxu3 %v1316_v0  ;;  %v1335_v59 = vld [vmem:[#allocation3 + $0x200] sm:$0xff] }
  0x43   : >> { %1759 = vst [vmem:[#allocation47_spill] sm:$0xff] %v1306_v35  ;;  %397 = vmatpush.msrb.mxu0 %v1310_v27  ;;  %v1337_v35 = vld [vmem:[#allocation3 + $0x390] sm:$0xff]  ;;  %499 = vmatpush.msrb.mxu2 %v1324_v23 }
  0x44   : >> { %1760 = vst [vmem:[#allocation48_spill] sm:$0xff] %v1310_v27  ;;  %417 = vmatpush.msrb.mxu1 %v1318_v19  ;;  %v1341_v27 = vld [vmem:[#allocation3 + $0x3b0] sm:$0xff]  ;;  %518 = vmatpush.msrb.mxu3 %v1328_v43 }
  0x45   : >> { %1761 = vst [vmem:[#allocation49_spill] sm:$0xff] %v1312_v31  ;;  %398 = vmatpush.msrb.mxu0 %v1322_v63  ;;  %v1343_v31 = vld [vmem:[#allocation3 + $0x208] sm:$0xff]  ;;  %500 = vmatpush.msrb.mxu2 %v1337_v35 }
  0x46   : >> { %1762 = vst [vmem:[#allocation50_spill] sm:$0xff] %v1316_v0  ;;  %418 = vmatpush.msrb.mxu1 %v1330_v39  ;;  %v1349_v0 = vld [vmem:[#allocation3 + $0x378] sm:$0xff]  ;;  %519 = vmatpush.msrb.mxu3 %v1341_v27 }
  0x47   : >> { %1763 = vst [vmem:[#allocation51_spill] sm:$0xff] %v1318_v19  ;;  %399 = vmatpush.msrb.mxu0 %v1335_v59  ;;  %501 = vmatpush.msrb.mxu2 %v1349_v0  ;;  %v1373_v19 = vld [vmem:[#allocation3 + $0x1b8] sm:$0xff] }
  0x48   : >> { %1764 = vst [vmem:[#allocation52_spill] sm:$0xff] %v1322_v63  ;;  %v1358_v63 = vld [vmem:[#allocation3 + $0x1f0] sm:$0xff]  ;;  %419 = vmatpush.msrb.mxu1 %v1343_v31 }
  0x49   : >> { %1765 = vst [vmem:[#allocation53_spill] sm:$0xff] %v1324_v23  ;;  %v1356_v23 = vld [vmem:[#allocation3 + $0x398] sm:$0xff]  ;;  %400 = vmatpush.msrb.mxu0 %v1347_v47 }
  0x4a   : >> { %1766 = vst [vmem:[#allocation54_spill] sm:$0xff] %v1328_v43  ;;  %v1362_v43 = vld [vmem:[#allocation3 + $0x1d0] sm:$0xff]  ;;  %520 = vmatpush.msrb.mxu3 %v1356_v23  ;;  %420 = vmatpush.msrb.mxu1 %v1358_v63 }
  0x4b   : >> { %1767 = vst [vmem:[#allocation55_spill] sm:$0xff] %v1330_v39  ;;  %v1364_v39 = vld [vmem:[#allocation3 + $0x360] sm:$0xff]  ;;  %401 = vmatpush.msrb.mxu0 %v1362_v43 }
  0x4c   : >> { %1768 = vst [vmem:[#allocation56_spill] sm:$0xff] %v1335_v59  ;;  %v1368_v59 = vld [vmem:[#allocation3 + $0x380] sm:$0xff]  ;;  %502 = vmatpush.msrb.mxu2 %v1364_v39 }
  0x4d   : >> { %1769 = vst [vmem:[#allocation57_spill] sm:$0xff] %v1337_v35  ;;  %v198_v35 = vld [vmem:[%s1352_s6] sm:$0x3f]  ;;  %521 = vmatpush.msrb.mxu3 %v1368_v59  ;;  %402 = vmatpush.msrb.mxu0 %v1373_v19 }
  0x4e   : >> { %1770 = vst [vmem:[#allocation58_spill] sm:$0xff] %v1341_v27  ;;  %v1375_v27 = vld [vmem:[#allocation3 + $0x1d8] sm:$0xff]  ;;  %303 = vmatmul.f32.vlgmr.msra.gmra.mxu2 %v198_v35  ;;  %263 = vmatmul.f32.vlgmr.msra.gmra.mxu0 %v198_v35 }
  0x4f   : >> { %1771 = vst [vmem:[#allocation59_spill] sm:$0xff] %v1343_v31  ;;  %v1379_v31 = vld [vmem:[#allocation3 + $0x348] sm:$0xff]  ;;  %421 = vmatpush.msrb.mxu1 %v1375_v27 }
  0x50   : >> { %1772 = vst [vmem:[#allocation60_spill] sm:$0xff] %v1347_v47  ;;  %v1381_v47 = vld [vmem:[#allocation3 + $0x368] sm:$0xff]  ;;  %503 = vmatpush.msrb.mxu2 %v1379_v31  ;;  %283 = vmatmul.f32.vlgmr.msra.gmra.mxu1 %v198_v35 }
  0x51   : >> { %1773 = vst [vmem:[#allocation61_spill] sm:$0xff] %v1349_v0  ;;  %v1385_v0 = vld [vmem:[%s1352_s6 + $0x8] sm:$0x3f]  ;;  %522 = vmatpush.msrb.mxu3 %v1381_v47 }
  0x52   : >> { %1774 = vst [vmem:[#allocation62_spill] sm:$0xff] %v1356_v23  ;;  %v1389_v23 = vld [vmem:[#allocation3 + $0x1a0] sm:$0xff]  ;;  %385 = vmatmul.f32.vlgmr.msra.gmra.mxu3 %v1385_v0  ;;  %v1429_v35 = vld [vmem:[#allocation3 + $0x308] sm:$0xff] }
  0x53   : >> { %1775 = vst [vmem:[#allocation63_spill] sm:$0xff] %v1358_v63  ;;  %v1391_v63 = vld [vmem:[#allocation3 + $0x1c0] sm:$0xff]  ;;  %403 = vmatpush.msrb.mxu0 %v1389_v23 }
  0x54   : >> { %1776 = vst [vmem:[#allocation64_spill] sm:$0xff] %v1362_v43  ;;  %v1397_v43 = vld [vmem:[#allocation3 + $0x350] sm:$0xff]  ;;  %422 = vmatpush.msrb.mxu1 %v1391_v63 }
  0x55   : >> { %1777 = vst [vmem:[#allocation65_spill] sm:$0xff] %v1364_v39  ;;  %v1395_v39 = vld [vmem:[#allocation3 + $0x330] sm:$0xff]  ;;  %523 = vmatpush.msrb.mxu3 %v1397_v43 }
  0x56   : >> { %1778 = vst [vmem:[#allocation66_spill] sm:$0xff] %v1368_v59  ;;  %v1400_v59 = vld [vmem:[#allocation3 + $0x188] sm:$0xff]  ;;  %504 = vmatpush.msrb.mxu2 %v1395_v39 }
  0x57   : >> { %1779 = vst [vmem:[#allocation67_spill] sm:$0xff] %v1373_v19  ;;  %v1404_v19 = vld [vmem:[#allocation3 + $0x1a8] sm:$0xff]  ;;  %404 = vmatpush.msrb.mxu0 %v1400_v59 }
  0x58   : >> { %1780 = vst [vmem:[#allocation68_spill] sm:$0xff] %v1375_v27  ;;  %v1406_v27 = vld [vmem:[#allocation3 + $0x318] sm:$0xff]  ;;  %423 = vmatpush.msrb.mxu1 %v1404_v19  ;;  %405 = vmatmul.f32.vlgmr.msrb.gmra.mxu0 %v1385_v0 }
  0x59   : >> { %1781 = vst [vmem:[#allocation69_spill] sm:$0xff] %v1379_v31  ;;  %v1412_v31 = vld [vmem:[#allocation3 + $0x478] sm:$0xff]  ;;  %505 = vmatpush.msrb.mxu2 %v1406_v27 }
  0x5a   : >> { %1782 = vst [vmem:[#allocation70_spill] sm:$0xff] %v1381_v47  ;;  %v1410_v47 = vld [vmem:[#allocation3 + $0x338] sm:$0xff]  ;;  %531 = vmatpush.msra.mxu0 %v1412_v31  ;;  %424 = vmatpush.msrb.mxu1 %v1415_v15 }
  0x5b   : >> { %1783 = vst [vmem:[#allocation71_spill] sm:$0xff] %v1389_v23  ;;  %v1417_v23 = vld [vmem:[#allocation3 + $0x300] sm:$0xff]  ;;  %524 = vmatpush.msrb.mxu3 %v1410_v47  ;;  %425 = vmatmul.f32.vlgmr.msrb.gmra.mxu1 %v1385_v0 }
  0x5c   : >> { %1784 = vst [vmem:[#allocation72_spill] sm:$0xff] %v1391_v63  ;;  %v1421_v63 = vld [vmem:[#allocation3 + $0x320] sm:$0xff]  ;;  %506 = vmatpush.msrb.mxu2 %v1417_v23  ;;  %564 = vmatpush.msra.mxu1 %v1035_v1  ;;  %v1450_v1 = vld [vmem:[#allocation3 + $0x418] sm:$0xff] }
  0x5d   : >> { %1785 = vst [vmem:[#allocation73_spill] sm:$0xff] %v1395_v39  ;;  %v1423_v39 = vld [vmem:[#allocation3 + $0x460] sm:$0xff]  ;;  %525 = vmatpush.msrb.mxu3 %v1421_v63 }
  0x5e   : >> { %1786 = vst [vmem:[#allocation74_spill] sm:$0xff] %v1397_v43  ;;  %532 = vmatpush.msra.mxu0 %v1423_v39  ;;  %v1434_v43 = vld [vmem:[%s1352_s6 + $0x10] sm:$0x3f]  ;;  %584 = vmatpush.msra.mxu2 %v1039_v3  ;;  %v1456_v3 = vld [vmem:[#allocation3 + $0x400] sm:$0xff] }
  0x5f   : >> { %1787 = vst [vmem:[#allocation75_spill] sm:$0xff] %v1406_v27  ;;  %v1438_v27 = vld [vmem:[#allocation3 + $0x448] sm:$0xff]  ;;  %526 = vmatpush.msrb.mxu3 %v1429_v35  ;;  %507 = vmatmul.f32.vlgmr.msrb.gmra.mxu2 %v1434_v43 }
  0x60   : >> { %1788 = vst [vmem:[#allocation76_spill] sm:$0xff] %v1410_v47  ;;  %527 = vmatmul.f32.vlgmr.msrb.gmra.mxu3 %v1434_v43  ;;  %v1444_v47 = vld [vmem:[#allocation3 + $0x430] sm:$0xff]  ;;  %533 = vmatpush.msra.mxu0 %v1438_v27 }
  0x61   : >> { %565 = vmatpush.msra.mxu1 %v1037_v2  ;;  %585 = vmatpush.msra.mxu2 %v1045_v5  ;;  %v1462_v2 = vld [vmem:[#allocation3 + $0x3e8] sm:$0xff]  ;;  %v1474_v5 = vld [vmem:[#allocation3 + $0x3b8] sm:$0xff] }
  0x62   : >> { %534 = vmatpush.msra.mxu0 %v1444_v47  ;;  %604 = vmatpush.msra.mxu3 %v1043_v4  ;;  %v1468_v4 = vld [vmem:[#allocation3 + $0x3d0] sm:$0xff] }
  0x63   : >> { %566 = vmatpush.msra.mxu1 %v1048_v6  ;;  %586 = vmatpush.msra.mxu2 %v1056_v9  ;;  %v1480_v6 = vld [vmem:[#allocation3 + $0x3a0] sm:$0xff]  ;;  %v1492_v9 = vld [vmem:[#allocation3 + $0x370] sm:$0xff] }
  0x64   : >> { %535 = vmatpush.msra.mxu0 %v1450_v1  ;;  %605 = vmatpush.msra.mxu3 %v1050_v7  ;;  %v1486_v7 = vld [vmem:[#allocation3 + $0x388] sm:$0xff] }
  0x65   : >> { %567 = vmatpush.msra.mxu1 %v1064_v12  ;;  %587 = vmatpush.msra.mxu2 %v1066_v13  ;;  %v1504_v12 = vld [vmem:[#allocation3 + $0x340] sm:$0xff]  ;;  %v1510_v13 = vld [vmem:[#allocation3 + $0x328] sm:$0xff] }
  0x66   : >> { %536 = vmatpush.msra.mxu0 %v1456_v3  ;;  %606 = vmatpush.msra.mxu3 %v1058_v10  ;;  %v1498_v10 = vld [vmem:[#allocation3 + $0x358] sm:$0xff] }
  0x67   : >> { %568 = vmatpush.msra.mxu1 %v1076_v16  ;;  %588 = vmatpush.msra.mxu2 %v1078_v17  ;;  %v1789_v16 = vld [vmem:[#allocation7_spill] sm:$0xff] }
  0x68   : >> { %537 = vmatpush.msra.mxu0 %v1462_v2  ;;  %607 = vmatpush.msra.mxu3 %v1070_v14  ;;  %v1516_v14 = vld [vmem:[#allocation3 + $0x310] sm:$0xff]  ;;  %v1790_v17 = vld [vmem:[#allocation23_spill] sm:$0xff] }
  0x69   : >> { %569 = vmatpush.msra.mxu1 %v1088_v20  ;;  %589 = vmatpush.msra.mxu2 %v1090_v21  ;;  %v1793_v20 = vld [vmem:[#allocation8_spill] sm:$0xff]  ;;  %v1794_v21 = vld [vmem:[#allocation27_spill] sm:$0xff] }
  0x6a   : >> { %538 = vmatpush.msra.mxu0 %v1468_v4  ;;  %608 = vmatpush.msra.mxu3 %v1082_v18  ;;  %v1791_v18 = vld [vmem:[#allocation19_spill] sm:$0xff] }
  0x6b   : >> { %570 = vmatpush.msra.mxu1 %v1100_v24  ;;  %590 = vmatpush.msra.mxu2 %v1102_v25  ;;  %v1797_v24 = vld [vmem:[#allocation9_spill] sm:$0xff]  ;;  %v1798_v25 = vld [vmem:[#allocation31_spill] sm:$0xff] }
  0x6c   : >> { %539 = vmatpush.msra.mxu0 %v1474_v5  ;;  %609 = vmatpush.msra.mxu3 %v1094_v22  ;;  %v1795_v22 = vld [vmem:[#allocation21_spill] sm:$0xff] }
  0x6d   : >> { %571 = vmatpush.msra.mxu1 %v1112_v28  ;;  %591 = vmatpush.msra.mxu2 %v1114_v29  ;;  %v1800_v28 = vld [vmem:[#allocation32_spill] sm:$0xff]  ;;  %v1801_v29 = vld [vmem:[#allocation10_spill] sm:$0xff] }
  0x6e   : >> { %540 = vmatpush.msra.mxu0 %v1480_v6  ;;  %610 = vmatpush.msra.mxu3 %v1106_v26  ;;  %v1799_v26 = vld [vmem:[#allocation25_spill] sm:$0xff] }
  0x6f   : >> { %572 = vmatpush.msra.mxu1 %v1124_v32  ;;  %592 = vmatpush.msra.mxu2 %v1126_v33  ;;  %v1803_v32 = vld [vmem:[#allocation29_spill] sm:$0xff]  ;;  %v1804_v33 = vld [vmem:[#allocation36_spill] sm:$0xff] }
  0x70   : >> { %541 = vmatpush.msra.mxu0 %v1486_v7  ;;  %611 = vmatpush.msra.mxu3 %v1118_v30  ;;  %v1802_v30 = vld [vmem:[#allocation35_spill] sm:$0xff] }
  0x71   : >> { %573 = vmatpush.msra.mxu1 %v1136_v36  ;;  %593 = vmatpush.msra.mxu2 %v1138_v37  ;;  %v1806_v36 = vld [vmem:[#allocation39_spill] sm:$0xff]  ;;  %v1807_v37 = vld [vmem:[#allocation33_spill] sm:$0xff] }
  0x72   : >> { %542 = vmatpush.msra.mxu0 %v1492_v9  ;;  %612 = vmatpush.msra.mxu3 %v1130_v34  ;;  %v1805_v34 = vld [vmem:[#allocation11_spill] sm:$0xff] }
  0x73   : >> { %574 = vmatpush.msra.mxu1 %v1148_v40  ;;  %594 = vmatpush.msra.mxu2 %v1150_v41  ;;  %v1809_v40 = vld [vmem:[#allocation12_spill] sm:$0xff]  ;;  %v1810_v41 = vld [vmem:[#allocation43_spill] sm:$0xff] }
  0x74   : >> { %543 = vmatpush.msra.mxu0 %v1498_v10  ;;  %613 = vmatpush.msra.mxu3 %v1142_v38  ;;  %v1808_v38 = vld [vmem:[#allocation40_spill] sm:$0xff] }
  0x75   : >> { %575 = vmatpush.msra.mxu1 %v1160_v44  ;;  %595 = vmatpush.msra.mxu2 %v1162_v45  ;;  %v1812_v44 = vld [vmem:[#allocation44_spill] sm:$0xff]  ;;  %v1813_v45 = vld [vmem:[#allocation13_spill] sm:$0xff] }
  0x76   : >> { %544 = vmatpush.msra.mxu0 %v1504_v12  ;;  %614 = vmatpush.msra.mxu3 %v1154_v42  ;;  %v1811_v42 = vld [vmem:[#allocation37_spill] sm:$0xff] }
  0x77   : >> { %576 = vmatpush.msra.mxu1 %v1172_v48  ;;  %596 = vmatpush.msra.mxu2 %v1174_v49  ;;  %v1815_v48 = vld [vmem:[#allocation41_spill] sm:$0xff]  ;;  %v1816_v49 = vld [vmem:[#allocation48_spill] sm:$0xff] }
  0x78   : >> { %545 = vmatpush.msra.mxu0 %v1510_v13  ;;  %615 = vmatpush.msra.mxu3 %v1166_v46  ;;  %v1814_v46 = vld [vmem:[#allocation47_spill] sm:$0xff] }
  0x79   : >> { %577 = vmatpush.msra.mxu1 %v1184_v52  ;;  %597 = vmatpush.msra.mxu2 %v1186_v53  ;;  %v1819_v52 = vld [vmem:[#allocation45_spill] sm:$0xff]  ;;  %v1820_v53 = vld [vmem:[#allocation52_spill] sm:$0xff] }
  0x7a   : >> { %546 = vmatpush.msra.mxu0 %v1516_v14  ;;  %616 = vmatpush.msra.mxu3 %v1178_v50  ;;  %v1817_v50 = vld [vmem:[#allocation14_spill] sm:$0xff] }
  0x7b   : >> { %578 = vmatpush.msra.mxu1 %v1196_v56  ;;  %598 = vmatpush.msra.mxu2 %v1198_v57  ;;  %v1823_v56 = vld [vmem:[#allocation49_spill] sm:$0xff]  ;;  %v1824_v57 = vld [vmem:[#allocation56_spill] sm:$0xff] }
  0x7c   : >> { %547 = vmatmul.f32.vlgmr.msra.gmra.mxu0 %v1434_v43  ;;  %617 = vmatpush.msra.mxu3 %v1190_v54  ;;  %v1821_v54 = vld [vmem:[#allocation15_spill] sm:$0xff] }
  0x7d   : >> { %579 = vmatpush.msra.mxu1 %v1208_v60  ;;  %633 = vmatpush.msrb.mxu0 %v1052_v8  ;;  %v1792_v8 = vld [vmem:[#allocation24_spill] sm:$0xff]  ;;  %v1826_v60 = vld [vmem:[#allocation59_spill] sm:$0xff] }
  0x7e   : >> { %599 = vmatpush.msra.mxu2 %v1210_v61  ;;  %618 = vmatpush.msra.mxu3 %v1202_v58  ;;  %v1825_v58 = vld [vmem:[#allocation16_spill] sm:$0xff]  ;;  %v1827_v61 = vld [vmem:[#allocation53_spill] sm:$0xff] }
  0x7f   : >> { %653 = vmatpush.msrb.mxu1 %v1214_v62  ;;  %634 = vmatpush.msrb.mxu0 %v1060_v11  ;;  %v1796_v11 = vld [vmem:[#allocation28_spill] sm:$0xff] }
  0x80   : >> { %673 = vmatpush.msrb.mxu2 %v1222_v51  ;;  %619 = vmatpush.msra.mxu3 %v1791_v18  ;;  %v1818_v51 = vld [vmem:[#allocation51_spill] sm:$0xff]  ;;  %v1828_v62 = vld [vmem:[#allocation60_spill] sm:$0xff]  ;;  %v1831_v18 = vld [vmem:[#allocation57_spill] sm:$0xff] }
  0x81   : >> { %654 = vmatpush.msrb.mxu1 %v1226_v55  ;;  %635 = vmatpush.msrb.mxu0 %v1789_v16  ;;  %v1822_v55 = vld [vmem:[#allocation55_spill] sm:$0xff]  ;;  %v1829_v16 = vld [vmem:[#allocation17_spill] sm:$0xff] }
  0x82   : >> { %674 = vmatpush.msrb.mxu2 %v1790_v17  ;;  %706 = vmatpush.msrb.mxu3 %v1795_v22  ;;  %v1830_v17 = vld [vmem:[#allocation63_spill] sm:$0xff]  ;;  %v1835_v22 = vld [vmem:[#allocation61_spill] sm:$0xff] }
  0x83   : >> { %655 = vmatpush.msrb.mxu1 %v1792_v8  ;;  %636 = vmatpush.msrb.mxu0 %v1793_v20  ;;  %v1832_v8 = vld [vmem:[#allocation18_spill] sm:$0xff]  ;;  %v1833_v20 = vld [vmem:[#allocation64_spill] sm:$0xff] }
  0x84   : >> { %675 = vmatpush.msrb.mxu2 %v1794_v21  ;;  %707 = vmatpush.msrb.mxu3 %v1799_v26  ;;  %v1834_v21 = vld [vmem:[#allocation68_spill] sm:$0xff]  ;;  %v1839_v26 = vld [vmem:[#allocation65_spill] sm:$0xff] }
  0x85   : >> { %656 = vmatpush.msrb.mxu1 %v1796_v11  ;;  %637 = vmatpush.msrb.mxu0 %v1797_v24  ;;  %v1836_v11 = vld [vmem:[#allocation20_spill] sm:$0xff]  ;;  %v1837_v24 = vld [vmem:[#allocation67_spill] sm:$0xff] }
  0x86   : >> { %676 = vmatpush.msrb.mxu2 %v1798_v25  ;;  %708 = vmatpush.msrb.mxu3 %v1803_v32  ;;  %v1838_v25 = vld [vmem:[#allocation72_spill] sm:$0xff]  ;;  %v1843_v32 = vld [vmem:[#allocation26_spill] sm:$0xff] }
  0x87   : >> { %657 = vmatpush.msrb.mxu1 %v1800_v28  ;;  %638 = vmatpush.msrb.mxu0 %v1801_v29  ;;  %v1840_v28 = vld [vmem:[#allocation22_spill] sm:$0xff]  ;;  %v1841_v29 = vld [vmem:[#allocation71_spill] sm:$0xff] }
  0x88   : >> { %677 = vmatpush.msrb.mxu2 %v1802_v30  ;;  %709 = vmatpush.msrb.mxu3 %v1807_v37  ;;  %v1842_v30 = vld [vmem:[#allocation69_spill] sm:$0xff] }
  0x89   : >> { %658 = vmatpush.msrb.mxu1 %v1804_v33  ;;  %639 = vmatpush.msrb.mxu0 %v1805_v34  ;;  %v1844_v33 = vld [vmem:[#allocation73_spill] sm:$0xff]  ;;  %v1845_v34 = vld [vmem:[#allocation30_spill] sm:$0xff] }
  0x8a   : >> { %678 = vmatpush.msrb.mxu2 %v1806_v36  ;;  %710 = vmatpush.msrb.mxu3 %v1811_v42  ;;  %v1847_v36 = vld [vmem:[#allocation34_spill] sm:$0xff] }
  0x8b   : >> { %659 = vmatpush.msrb.mxu1 %v1808_v38  ;;  %640 = vmatpush.msrb.mxu0 %v1809_v40 }
  0x8c   : >> { %679 = vmatpush.msrb.mxu2 %v1810_v41  ;;  %711 = vmatpush.msrb.mxu3 %v1815_v48 }
  0x8d   : >> { %660 = vmatpush.msrb.mxu1 %v1812_v44  ;;  %641 = vmatpush.msrb.mxu0 %v1813_v45 }
  0x8e   : >> { %680 = vmatpush.msrb.mxu2 %v1814_v46  ;;  %712 = vmatpush.msrb.mxu3 %v1819_v52 }
  0x8f   : >> { %661 = vmatpush.msrb.mxu1 %v1816_v49  ;;  %642 = vmatpush.msrb.mxu0 %v1817_v50 }
  0x90   : >> { %681 = vmatpush.msrb.mxu2 %v1818_v51  ;;  %713 = vmatpush.msrb.mxu3 %v1823_v56 }
  0x91   : >> { %662 = vmatpush.msrb.mxu1 %v1820_v53  ;;  %643 = vmatpush.msrb.mxu0 %v1821_v54 }
  0x92   : >> { %682 = vmatpush.msrb.mxu2 %v1822_v55  ;;  %714 = vmatpush.msrb.mxu3 %v1827_v61 }
  0x93   : >> { %663 = vmatpush.msrb.mxu1 %v1824_v57  ;;  %644 = vmatpush.msrb.mxu0 %v1825_v58 }
  0x94   : >> { %683 = vmatpush.msrb.mxu2 %v1826_v60  ;;  %715 = vmatpush.msrb.mxu3 %v1831_v18 }
  0x95   : >> { %664 = vmatpush.msrb.mxu1 %v1828_v62  ;;  %645 = vmatpush.msrb.mxu0 %v1829_v16 }
  0x96   : >> { %684 = vmatpush.msrb.mxu2 %v1830_v17  ;;  %716 = vmatpush.msrb.mxu3 %v1835_v22 }
  0x97   : >> { %600 = vmatmul.f32.vlgmr.msra.gmra.mxu2 %v1385_v0  ;;  %646 = vmatpush.msrb.mxu0 %v1832_v8 }
  0x98   : >> { %665 = vmatpush.msrb.mxu1 %v1833_v20  ;;  %685 = vmatpush.msrb.mxu2 %v1834_v21 }
  0x99   : >> { %620 = vmatmul.f32.vlgmr.msra.gmra.mxu3 %v1385_v0  ;;  %647 = vmatpush.msrb.mxu0 %v1836_v11 }
  0x9a   : >> { %666 = vmatpush.msrb.mxu1 %v1837_v24  ;;  %686 = vmatpush.msrb.mxu2 %v1838_v25 }
  0x9b   : >> { %717 = vmatpush.msrb.mxu3 %v1839_v26  ;;  %580 = vmatmul.f32.vlgmr.msra.gmra.mxu1 %v1385_v0  ;;  %v1846_v0 = vld [vmem:[#allocation75_spill] sm:$0xff] }
  0x9c   : >> { %648 = vmatpush.msrb.mxu0 %v1840_v28  ;;  %667 = vmatpush.msrb.mxu1 %v1841_v29  ;;  %v1859_v28 = vld [vmem:[#allocation6_spill] sm:$0xff] }
  0x9d   : >> { %687 = vmatpush.msrb.mxu2 %v1404_v19  ;;  %718 = vmatpush.msrb.mxu3 %v1842_v30  ;;  %v893_v19 = vld [vmem:[%s1352_s6 + $0x18] sm:$0x3f]  ;;  %v561_v29 = vperm.slane %v1859_v28, 0 }
  0x9e   : >> { %726 = vmatpush.msra.mxu0 %v1843_v32  ;;  %668 = vmatpush.msrb.mxu1 %v1400_v59  ;;  %v1849_v59 = vld [vmem:[#allocation42_spill] sm:$0xff] }
  0x9f   : >> { %688 = vmatpush.msrb.mxu2 %v1415_v15  ;;  %719 = vmatpush.msrb.mxu3 %v1844_v33  ;;  %v1848_v15 = vld [vmem:[#allocation38_spill] sm:$0xff] }
  0xa0   : >> { %689 = vmatmul.f32.vlgmr.msrb.gmra.mxu2 %v1434_v43  ;;  %727 = vmatpush.msra.mxu0 %v1845_v34 }
  0xa1   : >> { %746 = vmatpush.msra.mxu1 %v1412_v31  ;;  %720 = vmatpush.msrb.mxu3 %v1846_v0  ;;  %v1850_v31 = vld [vmem:[#allocation46_spill] sm:$0xff] }
  0xa2   : >> { %728 = vmatpush.msra.mxu0 %v1847_v36 }
  0xa3   : >> { %747 = vmatpush.msra.mxu1 %v1423_v39  ;;  %721 = vmatpush.msrb.mxu3 %v1417_v23  ;;  %v1851_v39 = vld [vmem:[#allocation50_spill] sm:$0xff] }
  0xa4   : >> { %649 = vmatmul.f32.vlgmr.msrb.gmra.mxu0 %v1434_v43  ;;  %669 = vmatmul.f32.vlgmr.msrb.gmra.mxu1 %v1434_v43  ;;  %v1852_v23 = vld [vmem:[#allocation54_spill] sm:$0xff] }
  0xa5   : >> { %722 = vmatmul.f32.vlgmr.msrb.gmra.mxu3 %v893_v19  ;;  %729 = vmatpush.msra.mxu0 %v1848_v15  ;;  %v1853_v43 = vld [vmem:[#allocation58_spill] sm:$0xff] }
  0xa6   : >> { %748 = vmatpush.msra.mxu1 %v1438_v27  ;;  %v1854_v27 = vld [vmem:[#allocation62_spill] sm:$0xff] }
  0xa7   : >> { %730 = vmatpush.msra.mxu0 %v1849_v59 }
  0xa8   : >> { %749 = vmatpush.msra.mxu1 %v1444_v47  ;;  %v1855_v47 = vld [vmem:[#allocation66_spill] sm:$0xff] }
  0xa9   : >> { %731 = vmatpush.msra.mxu0 %v1850_v31 }
  0xaa   : >> { %750 = vmatpush.msra.mxu1 %v1450_v1  ;;  %v1856_v1 = vld [vmem:[#allocation70_spill] sm:$0xff] }
  0xab   : >> { %732 = vmatpush.msra.mxu0 %v1851_v39 }
  0xac   : >> { %751 = vmatpush.msra.mxu1 %v1456_v3  ;;  %v1857_v3 = vld [vmem:[#allocation74_spill] sm:$0xff] }
  0xad   : >> { %733 = vmatpush.msra.mxu0 %v1852_v23 }
  0xae   : >> { %752 = vmatpush.msra.mxu1 %v1462_v2  ;;  %v1858_v2 = vld [vmem:[#allocation76_spill] sm:$0xff] }
  0xaf   : >> { %734 = vmatpush.msra.mxu0 %v1853_v43 }
  0xb0   : >> { %753 = vmatpush.msra.mxu1 %v1468_v4 }
  0xb1   : >> { %735 = vmatpush.msra.mxu0 %v1854_v27 }
  0xb2   : >> { %754 = vmatpush.msra.mxu1 %v1474_v5 }
  0xb3   : >> { %736 = vmatpush.msra.mxu0 %v1855_v47 }
  0xb4   : >> { %755 = vmatpush.msra.mxu1 %v1480_v6 }
  0xb5   : >> { %737 = vmatpush.msra.mxu0 %v1856_v1 }
  0xb6   : >> { %756 = vmatpush.msra.mxu1 %v1486_v7 }
  0xb7   : >> { %738 = vmatpush.msra.mxu0 %v1857_v3 }
  0xb8   : >> { %757 = vmatpush.msra.mxu1 %v1492_v9 }
  0xb9   : >> { %739 = vmatpush.msra.mxu0 %v1858_v2 }
  0xba   : >> { %758 = vmatpush.msra.mxu1 %v1498_v10 }
  0xbb   : >> { %740 = vmatpush.msra.mxu0 %v1421_v63 }
  0xbc   : >> { %759 = vmatpush.msra.mxu1 %v1504_v12 }
  0xbd   : >> { %741 = vmatpush.msra.mxu0 %v1429_v35 }
  0xbe   : >> { %760 = vmatpush.msra.mxu1 %v1510_v13  ;;  %742 = vmatmul.f32.vlgmr.msra.gmra.mxu0 %v893_v19 }
  0xc0   : >> { %761 = vmatpush.msra.mxu1 %v1516_v14 }
  0xc1   : >> { %762 = vmatmul.f32.vlgmr.msra.gmra.mxu1 %v893_v19 }
  0xcb   : >> { %v264_v6 = vpop.f32.mrf.mxu0 }
  0xcd   : >> { %v284_v4 = vpop.f32.mrf.mxu1 }
  0xce   : >> { %v309_v40 = vrot.slane %v284_v4, 1 }
  0xd0   : >> { %v311_v42 = vadd.f32 %v309_v40, %v264_v6 }
  0xd1   : >> { %v304_v5 = vpop.f32.mrf.mxu2 }
  0xd2   : >> { %v313_v35 = vrot.slane %v304_v5, 2 }
  0xd4   : >> { %v315_v14 = vadd.f32 %v313_v35, %v311_v42 }
  0xd5   : >> { %v386_v7 = vpop.f32.mrf.mxu3  ;;  %v406_v38 = vpop.f32.mrf.mxu0 }
  0xd6   : >> { %v429_v49 = vadd.f32 %v386_v7, %v315_v14  ;;  %v431_v50 = vrot.slane %v406_v38, 1 }
  0xd8   : >> { %v426_v37 = vpop.f32.mrf.mxu1  ;;  %v433_v55 = vadd.f32 %v431_v50, %v429_v49 }
  0xd9   : >> { %v435_v56 = vrot.slane %v426_v37, 2 }
  0xdb   : >> { %v437_v61 = vadd.f32 %v435_v56, %v433_v55 }
  0xe2   : >> { %v508_v9 = vpop.f32.mrf.mxu2 }
  0xe3   : >> { %v528_v10 = vpop.f32.mrf.mxu3  ;;  %v551_v16 = vadd.f32 %v508_v9, %v437_v61 }
  0xe4   : >> { %v553_v17 = vrot.slane %v528_v10, 1 }
  0xe6   : >> { %v555_v11 = vadd.f32 %v553_v17, %v551_v16 }
  0xf9   : >> { %v548_v44 = vpop.f32.mrf.mxu0 }
  0xfa   : >> { %v557_v8 = vrot.slane %v548_v44, 2 }
  0xfc   : >> { %v559_v26 = vadd.f32 %v557_v8, %v555_v11 }
  0xfe   : >> { %v563_v33 = vadd.f32 %v561_v29, %v559_v26 }
 0x118   : >> { %v581_v41 = vpop.f32.mrf.mxu1 }
 0x11a   : >> { %v601_v63 = vpop.f32.mrf.mxu2 }
 0x11b   : >> { %v626_v12 = vrot.slane %v601_v63, 1 }
 0x11c   : >> { %v621_v13 = vpop.f32.mrf.mxu3 }
 0x11d   : >> { %v628_v45 = vadd.f32 %v626_v12, %v581_v41  ;;  %v630_v46 = vrot.slane %v621_v13, 2 }
 0x11f   : >> { %v632_v48 = vadd.f32 %v630_v46, %v628_v45 }
 0x121   : >> { %v650_v51 = vpop.f32.mrf.mxu0  ;;  %v670_v52 = vpop.f32.mrf.mxu1 }
 0x122   : >> { %v693_v53 = vadd.f32 %v650_v51, %v632_v48  ;;  %v695_v54 = vrot.slane %v670_v52, 1 }
 0x123   : >> { %v690_v57 = vpop.f32.mrf.mxu2 }
 0x124   : >> { %v697_v58 = vadd.f32 %v695_v54, %v693_v53  ;;  %v699_v60 = vrot.slane %v690_v57, 2 }
 0x126   : >> { %v701_v62 = vadd.f32 %v699_v60, %v697_v58 }
 0x128   : >> { %v723_v18 = vpop.f32.mrf.mxu3 }
 0x129   : >> { %v766_v21 = vadd.f32 %v723_v18, %v701_v62 }
 0x13b   : >> { %v743_v20 = vpop.f32.mrf.mxu0 }
 0x13c   : >> { %v768_v22 = vrot.slane %v743_v20, 1 }
 0x13e   : >> { %v770_v24 = vadd.f32 %v768_v22, %v766_v21  ;;  %v763_v25 = vpop.f32.mrf.mxu1 }
 0x13f   : >> { %v772_v30 = vrot.slane %v763_v25, 2 }
 0x141   : >> { %v774_v32 = vadd.f32 %v772_v30, %v770_v24 }
 0x143   : >> { %v775_v34 = vadd.f32 %v774_v32, %v561_v29 }
 0x145   : >> { %v776_v0 = vmax.f32 %v563_v33, %v775_v34 }
 0x147   : >> { %v777_v36 = vmax.f32 %v776_v0, 0.0 }
 0x149   : >> { %778 = vst [vmem:[#allocation2] sm:$0xf] %v777_v36 }
 0x14f   : > { %193 = sbr.rel (!%p191_p7) target bundleno = 18 (0x12), region = 82 }
 0x150   : >> { %v779_v19 = vld [vmem:[#allocation2] ss:$2 sm:$0x3]  ;;  %v781_v15 = vld [vmem:[#allocation2 + $0x1] ss:$2 sm:$0x3] }
 0x151   : >> { %v782_v59 = vmax.f32 %v779_v19, %v781_v15 }
 0x153   : >> { %784 = vst [vmem:[%s783_s8] sm:$0x3] %v782_v59 }
 0x154 PF: > { %s14_s12 = sadd.s32 1, %s975_s12  }
 0x155   : > { %p11_p8 = scmp.ge.s32.totalorder %s14_s12, 4  }
 0x157   :  { %13 = sbr.rel (!%p11_p8) target bundleno = 1 (0x1), region = 93 }
 0x15c   :  { %806 = vsyncpa [#allocation4], 1 }
 0x15d   :  { %808 = vsyncpa [#allocation4 + $0x1], 1 }

// kernel: small_conv_forward.3
= control target key start
LH: loop header
LB: loop body
LE: loop exit
PB: predicated region body
PF: predicated region fallthrough
CT: control target
= control target key end

     0   :  { %s1415_s12 = smov 0   ;;  %s1667_s0 = inlined_call_operand.vmem [shape: f32[2,32,32,3], index: 0, kind: input, shape index: {}]   ;;  %s1668_s1 = inlined_call_operand.vmem [shape: f32[3,3,384], index: 1, kind: input, shape index: {}]   ;;  %s1669_s2 = inlined_call_operand.vmem [shape: f32[1,128], index: 2, kind: input, shape index: {}]   ;;  %s1670_s3 = inlined_call_operand.vmem [shape: f32[2,15,15,128], index: 3, kind: output, shape index: {}]  }
   0x1 LB: > { %s1230_s13 = sadd.s32 4294967295, %s1389_s12   ;;  %p1234_p0 = scmp.ge.s32.totalorder %s1389_s12, 1  ;;  %s1389_s12 = sphi %s1415_s12, %s13_s12  }
   0x2   : > { %p137_p1 = scmp.lt.s32.totalorder %s1389_s12, 3 }
   0x4   : > { %p138_p2 = pnand %p1234_p0, %p137_p1 }
   0x5   : > { %p161_p3 = scmp.lt.s32.totalorder (!%p138_p2), %s1230_s13, 1  ;;  %s1438_s24 = smov (!%p138_p2), 0  }
   0x6   : > { %141 = sbr.rel (%p138_p2) target bundleno = 321 (0x141), region = 32 }
   0xb   : > { %v1426_v0 = vld [vmem:[%s1669_s2] sm:$0x1]  ;;  %s1672_s13 = smov (!%p161_p3, %s1230_s13), 1 }
   0xc   : > { %s1355_s16 = sshll.u32 %s1672_s13, 10  ;;  %s1362_s17 = smul.u32 240, %s1672_s13 }
   0xd   : > { %s1431_s20 = scalar_lea.vmem %s1667_s0, %s1355_s16 }
   0xe   : > { %s1436_s23 = scalar_lea.vmem %s1670_s3, %s1362_s17 }
   0xf LB: >> { %v185_v1 = vld [vmem:[%s1668_s1] sm:$0x77]  ;;  %v186_v2 = vld [vmem:[%s1668_s1 + $0x8] sm:$0x7]  ;;  %s1356_s29 = sshll.u32 %s1393_s24, 6  ;;  %vm208_vm0 = vcmask 1042432   ;;  %s1393_s24 = sphi %s1438_s24, %s177_s24  }
  0x10   : >> { %189 = vst [vmem:[#allocation1] ss:$2 sm:$0xff] %v185_v1  ;;  %s1451_s30 = scalar_lea.vmem %s1431_s20, %s1356_s29  ;;  %v1261_v3 = vld [vmem:[%s1668_s1 + $0xc] sm:$0x77]  ;;  %vm195_vm1 = vcmask 23552   ;;  %vm310_vm2 = vcmask 1046528  }
  0x11   : >> { %191 = vst [vmem:[#allocation1 + $0x10] ss:$2 sm:$0xff] %v186_v2  ;;  %v1457_v4 = vld [vmem:[%s1451_s30 + $0x10] sm:$0xff]  ;;  %v181_v5 = vld [vmem:[%s1451_s30] sm:$0xff]  ;;  %v1284_v10 = vld [vmem:[%s1668_s1 + $0x18] sm:$0x77] }
  0x12   : >> { %v1262_v6 = vld [vmem:[%s1668_s1 + $0x14] sm:$0x7]  ;;  %v184_v11 = vld [vmem:[%s1451_s30 + $0x18] sm:$0xff]  ;;  %v182_v12 = vld [vmem:[%s1451_s30 + $0x8] sm:$0xff]  ;;  %vm330_vm3 = vcmask 1045504   ;;  %s1352_s13 = sshll.u32 %s1393_s24, 4 }
  0x13   : >> { %v1285_v13 = vld [vmem:[%s1668_s1 + $0x20] sm:$0x7]  ;;  %v1258_v21 = vld [vmem:[%s1451_s30 + $0x28] sm:$0xff]  ;;  %v1259_v25 = vld [vmem:[%s1451_s30 + $0x30] sm:$0xff]  ;;  %s1151_s14 = scalar_lea.vmem %s1436_s23, %s1352_s13  ;;  %s177_s24 = sadd.s32 1, %s1393_s24  }
  0x14   : >> { %v1490_v17 = vld [vmem:[%s1451_s30 + $0x20] sm:$0xff]  ;;  %v1260_v28 = vld [vmem:[%s1451_s30 + $0x38] sm:$0xff]  ;;  %v1281_v32 = vld [vmem:[%s1451_s30 + $0x48] sm:$0xff]  ;;  %p174_p4 = scmp.ge.s32.totalorder %s177_s24, 15  }
  0x15   : >> { %v1280_v29 = vld [vmem:[%s1451_s30 + $0x40] sm:$0xff]  ;;  %v1282_v35 = vld [vmem:[%s1451_s30 + $0x50] sm:$0xff]  ;;  %v1283_v36 = vld [vmem:[%s1451_s30 + $0x58] sm:$0xff] }
  0x16   : >> { %v1333_v37 = vld [vmem:[%s1451_s30 + $0x60] sm:$0xff]  ;;  %v1334_v38 = vld [vmem:[%s1451_s30 + $0x68] sm:$0xff]  ;;  %v1335_v41 = vld [vmem:[%s1451_s30 + $0x70] sm:$0xff] }
  0x17   : >> { %v192_v7 = vld.sshfl [vmem:[#allocation1] sm:$0xff pattern:$0x75316420]  ;;  %v193_v8 = vld.sshfl [vmem:[#allocation1 + $0x8] sm:$0xff pattern:$0x75316420] }
  0x18   : >> { %1360 = vmatpush.msk.msra.mxu2 %vm208_vm0, %v192_v7  ;;  %1361 = vmatpush.msk.msra.mxu3 %vm208_vm0, %v193_v8  ;;  %358 = vst [vmem:[#allocation1] ss:$2 sm:$0xff] %v1261_v3  ;;  %v194_v9 = vld.sshfl [vmem:[#allocation1 + $0x10] sm:$0xff pattern:$0x75316420]  ;;  %v1336_v49 = vld [vmem:[%s1451_s30 + $0x78] sm:$0xff] }
  0x19   : >> { %1243 = vmatmul.msk.f32.vlgmr.msra.gmra.mxu2 %vm195_vm1, %v1457_v4  ;;  %1245 = vmatpush.msk.msra.mxu1 %vm208_vm0, %v193_v8  ;;  %360 = vst [vmem:[#allocation1 + $0x10] ss:$2 sm:$0xff] %v1262_v6 }
  0x1a   : >> { %1248 = vmatmul.msk.f32.vlgmr.msra.gmra.mxu3 %vm195_vm1, %v1457_v4  ;;  %1246 = vmatmul.msk.f32.vlgmr.msra.gmra.mxu1 %vm195_vm1, %v181_v5 }
  0x1b   : >> { %1250 = vmatpush.msk.msrb.mxu2 %vm208_vm0, %v194_v9  ;;  %1240 = vmatpush.msk.msra.mxu0 %vm208_vm0, %v192_v7 }
  0x1c   : >> { %1241 = vmatmul.msk.f32.vlgmr.msra.gmra.mxu0 %vm195_vm1, %v181_v5 }
  0x1f   : >> { %v361_v14 = vld.sshfl [vmem:[#allocation1] sm:$0xff pattern:$0x75316420]  ;;  %v362_v15 = vld.sshfl [vmem:[#allocation1 + $0x8] sm:$0xff pattern:$0x75316420] }
  0x20   : >> { %1263 = vmatpush.msk.msrb.mxu3 %vm208_vm0, %v361_v14  ;;  %1268 = vmatpush.msk.msrb.mxu0 %vm208_vm0, %v362_v15  ;;  %523 = vst [vmem:[#allocation1] ss:$2 sm:$0xff] %v1284_v10  ;;  %v363_v16 = vld.sshfl [vmem:[#allocation1 + $0x10] sm:$0xff pattern:$0x75316420] }
  0x21   : >> { %1244 = vmatmul.msk.f32.gmra.mxu2 %vm195_vm1, %v184_v11  ;;  %1273 = vmatpush.msk.msrb.mxu1 %vm208_vm0, %v363_v16  ;;  %525 = vst [vmem:[#allocation1 + $0x10] ss:$2 sm:$0xff] %v1285_v13 }
  0x22   : >> { %1249 = vmatmul.msk.f32.gmra.mxu3 %vm195_vm1, %v184_v11  ;;  %1247 = vmatmul.msk.f32.gmra.mxu1 %vm195_vm1, %v182_v12 }
  0x24   : >> { %1242 = vmatmul.msk.f32.gmra.mxu0 %vm195_vm1, %v182_v12 }
  0x27   : >> { %v526_v18 = vld.sshfl [vmem:[#allocation1] sm:$0xff pattern:$0x75316420]  ;;  %v527_v19 = vld.sshfl [vmem:[#allocation1 + $0x8] sm:$0xff pattern:$0x75316420] }
  0x28   : >> { %1286 = vmatpush.msk.msra.mxu2 %vm208_vm0, %v526_v18  ;;  %1291 = vmatpush.msk.msra.mxu3 %vm208_vm0, %v527_v19  ;;  %683 = vst [vmem:[#allocation1] ss:$2 sm:$0xff] %v185_v1  ;;  %v528_v20 = vld.sshfl [vmem:[#allocation1 + $0x10] sm:$0xff pattern:$0x75316420] }
  0x29   : >> { %1251 = vmatmul.msk.f32.vlgmr.msrb.gmra.mxu2 %vm195_vm1, %v181_v5  ;;  %1296 = vmatpush.msk.msra.mxu0 %vm208_vm0, %v528_v20  ;;  %685 = vst [vmem:[#allocation1 + $0x10] ss:$2 sm:$0xff] %v186_v2 }
  0x2a   : >> { %1264 = vmatmul.msk.f32.vlgmr.msrb.gmra.mxu3 %vm195_vm1, %v1490_v17  ;;  %1274 = vmatmul.msk.f32.vlgmr.msrb.gmra.mxu1 %vm195_vm1, %v1490_v17 }
  0x2c   : >> { %1269 = vmatmul.msk.f32.vlgmr.msrb.gmra.mxu0 %vm195_vm1, %v1490_v17 }
  0x2f   : >> { %v686_v22 = vld.sshfl [vmem:[#allocation1] sm:$0xff pattern:$0x75316420]  ;;  %v687_v23 = vld.sshfl [vmem:[#allocation1 + $0x8] sm:$0xff pattern:$0x75316420] }
  0x30   : >> { %1301 = vmatpush.msk.msra.mxu1 %vm208_vm0, %v686_v22  ;;  %1306 = vmatpush.msk.msrb.mxu2 %vm208_vm0, %v687_v23  ;;  %824 = vst [vmem:[#allocation1] ss:$2 sm:$0xff] %v1261_v3  ;;  %v688_v24 = vld.sshfl [vmem:[#allocation1 + $0x10] sm:$0xff pattern:$0x75316420] }
  0x31   : >> { %1252 = vmatmul.msk.f32.gmra.mxu2 %vm195_vm1, %v182_v12  ;;  %1311 = vmatpush.msk.msrb.mxu3 %vm208_vm0, %v688_v24  ;;  %826 = vst [vmem:[#allocation1 + $0x10] ss:$2 sm:$0xff] %v1262_v6 }
  0x32   : >> { %1265 = vmatmul.msk.f32.gmra.mxu3 %vm195_vm1, %v1258_v21  ;;  %1275 = vmatmul.msk.f32.gmra.mxu1 %vm195_vm1, %v1258_v21 }
  0x34   : >> { %1270 = vmatmul.msk.f32.gmra.mxu0 %vm195_vm1, %v1258_v21 }
  0x37   : >> { %v827_v26 = vld.sshfl [vmem:[#allocation1] sm:$0xff pattern:$0x75316420]  ;;  %v828_v27 = vld.sshfl [vmem:[#allocation1 + $0x8] sm:$0xff pattern:$0x75316420] }
  0x38   : >> { %1316 = vmatpush.msk.msrb.mxu0 %vm208_vm0, %v827_v26  ;;  %1321 = vmatpush.msk.msrb.mxu1 %vm208_vm0, %v828_v27  ;;  %972 = vst [vmem:[#allocation1] ss:$2 sm:$0xff] %v1284_v10  ;;  %v829_v30 = vld.sshfl [vmem:[#allocation1 + $0x10] sm:$0xff pattern:$0x75316420] }
  0x39   : >> { %1253 = vmatmul.msk.f32.gmra.mxu2 %vm195_vm1, %v1457_v4  ;;  %974 = vst [vmem:[#allocation1 + $0x10] ss:$2 sm:$0xff] %v1285_v13 }
  0x3a   : >> { %1266 = vmatmul.msk.f32.gmra.mxu3 %vm195_vm1, %v1259_v25  ;;  %1276 = vmatmul.msk.f32.gmra.mxu1 %vm195_vm1, %v1259_v25 }
  0x3c   : >> { %1271 = vmatmul.msk.f32.gmra.mxu0 %vm195_vm1, %v1259_v25 }
  0x3f   : >> { %v975_v31 = vld.sshfl [vmem:[#allocation1] sm:$0xff pattern:$0x75316420]  ;;  %v976_v33 = vld.sshfl [vmem:[#allocation1 + $0x8] sm:$0xff pattern:$0x75316420] }
  0x40   : >> { %v977_v34 = vld.sshfl [vmem:[#allocation1 + $0x10] sm:$0xff pattern:$0x75316420] }
  0x41   : >> { %1254 = vmatmul.msk.f32.gmra.mxu2 %vm195_vm1, %v184_v11 }
  0x42   : >> { %1267 = vmatmul.msk.f32.gmra.mxu3 %vm195_vm1, %v1260_v28  ;;  %1277 = vmatmul.msk.f32.gmra.mxu1 %vm195_vm1, %v1260_v28 }
  0x44   : >> { %1272 = vmatmul.msk.f32.gmra.mxu0 %vm195_vm1, %v1260_v28 }
  0x49   : >> { %1287 = vmatmul.msk.f32.vlgmr.msra.gmra.mxu2 %vm195_vm1, %v1280_v29 }
  0x4a   : >> { %1292 = vmatmul.msk.f32.vlgmr.msra.gmra.mxu3 %vm195_vm1, %v1280_v29  ;;  %1302 = vmatmul.msk.f32.vlgmr.msra.gmra.mxu1 %vm195_vm1, %v1490_v17 }
  0x4b   : >> { %1326 = vmatpush.msk.msra.mxu2 %vm208_vm0, %v829_v30  ;;  %1337 = vmatpush.msk.msra.mxu3 %vm208_vm0, %v975_v31 }
  0x4c   : >> { %1297 = vmatmul.msk.f32.vlgmr.msra.gmra.mxu0 %vm195_vm1, %v1280_v29  ;;  %1347 = vmatpush.msk.msra.mxu1 %vm208_vm0, %v977_v34 }
  0x4d   : >> { %1342 = vmatpush.msk.msra.mxu0 %vm208_vm0, %v976_v33 }
  0x51   : >> { %1288 = vmatmul.msk.f32.gmra.mxu2 %vm195_vm1, %v1281_v32 }
  0x52   : >> { %1293 = vmatmul.msk.f32.gmra.mxu3 %vm195_vm1, %v1281_v32  ;;  %1303 = vmatmul.msk.f32.gmra.mxu1 %vm195_vm1, %v1258_v21 }
  0x54   : >> { %1298 = vmatmul.msk.f32.gmra.mxu0 %vm195_vm1, %v1281_v32 }
  0x59   : >> { %1289 = vmatmul.msk.f32.gmra.mxu2 %vm195_vm1, %v1282_v35 }
  0x5a   : >> { %1294 = vmatmul.msk.f32.gmra.mxu3 %vm195_vm1, %v1282_v35  ;;  %1304 = vmatmul.msk.f32.gmra.mxu1 %vm195_vm1, %v1259_v25 }
  0x5c   : >> { %1299 = vmatmul.msk.f32.gmra.mxu0 %vm195_vm1, %v1282_v35 }
  0x61   : >> { %1290 = vmatmul.msk.f32.gmra.mxu2 %vm195_vm1, %v1283_v36 }
  0x62   : >> { %1295 = vmatmul.msk.f32.gmra.mxu3 %vm195_vm1, %v1283_v36  ;;  %1305 = vmatmul.msk.f32.gmra.mxu1 %vm195_vm1, %v1260_v28 }
  0x64   : >> { %1300 = vmatmul.msk.f32.gmra.mxu0 %vm195_vm1, %v1283_v36 }
  0x69   : >> { %1307 = vmatmul.msk.f32.vlgmr.msrb.gmra.mxu2 %vm195_vm1, %v1490_v17 }
  0x6a   : >> { %1312 = vmatmul.msk.f32.vlgmr.msrb.gmra.mxu3 %vm195_vm1, %v1490_v17  ;;  %1322 = vmatmul.msk.f32.vlgmr.msrb.gmra.mxu1 %vm195_vm1, %v1280_v29 }
  0x6c   : >> { %1317 = vmatmul.msk.f32.vlgmr.msrb.gmra.mxu0 %vm195_vm1, %v1280_v29 }
  0x71   : >> { %1308 = vmatmul.msk.f32.gmra.mxu2 %vm195_vm1, %v1258_v21 }
  0x72   : >> { %1313 = vmatmul.msk.f32.gmra.mxu3 %vm195_vm1, %v1258_v21  ;;  %1323 = vmatmul.msk.f32.gmra.mxu1 %vm195_vm1, %v1281_v32 }
  0x74   : >> { %1318 = vmatmul.msk.f32.gmra.mxu0 %vm195_vm1, %v1281_v32 }
  0x79   : >> { %1309 = vmatmul.msk.f32.gmra.mxu2 %vm195_vm1, %v1259_v25 }
  0x7a   : >> { %1314 = vmatmul.msk.f32.gmra.mxu3 %vm195_vm1, %v1259_v25  ;;  %1324 = vmatmul.msk.f32.gmra.mxu1 %vm195_vm1, %v1282_v35 }
  0x7c   : >> { %1319 = vmatmul.msk.f32.gmra.mxu0 %vm195_vm1, %v1282_v35 }
  0x81   : >> { %1310 = vmatmul.msk.f32.gmra.mxu2 %vm195_vm1, %v1260_v28 }
  0x82   : >> { %1315 = vmatmul.msk.f32.gmra.mxu3 %vm195_vm1, %v1260_v28  ;;  %1325 = vmatmul.msk.f32.gmra.mxu1 %vm195_vm1, %v1283_v36 }
  0x84   : >> { %1320 = vmatmul.msk.f32.gmra.mxu0 %vm195_vm1, %v1283_v36 }
  0x89   : >> { %1327 = vmatmul.msk.f32.vlgmr.msra.gmra.mxu2 %vm195_vm1, %v1280_v29 }
  0x8a   : >> { %1338 = vmatmul.msk.f32.vlgmr.msra.gmra.mxu3 %vm195_vm1, %v1333_v37  ;;  %1348 = vmatmul.msk.f32.vlgmr.msra.gmra.mxu1 %vm195_vm1, %v1333_v37 }
  0x8c   : >> { %1343 = vmatmul.msk.f32.vlgmr.msra.gmra.mxu0 %vm195_vm1, %v1333_v37 }
  0x91   : >> { %1328 = vmatmul.msk.f32.gmra.mxu2 %vm195_vm1, %v1281_v32 }
  0x92   : >> { %1339 = vmatmul.msk.f32.gmra.mxu3 %vm195_vm1, %v1334_v38  ;;  %1349 = vmatmul.msk.f32.gmra.mxu1 %vm195_vm1, %v1334_v38 }
  0x94   : >> { %1344 = vmatmul.msk.f32.gmra.mxu0 %vm195_vm1, %v1334_v38 }
  0x97   : >> { %v261_v39 = vpop.f32.mrf.mxu1 }
  0x98   : >> { %v311_v44 = vrot.slane %v261_v39, 1 }
  0x99   : >> { %1329 = vmatmul.msk.f32.gmra.mxu2 %vm195_vm1, %v1282_v35  ;;  %v232_v40 = vpop.f32.mrf.mxu0 }
  0x9a   : >> { %1340 = vmatmul.msk.f32.gmra.mxu3 %vm195_vm1, %v1335_v41  ;;  %1350 = vmatmul.msk.f32.gmra.mxu1 %vm195_vm1, %v1335_v41 }
  0x9c   : >> { %v238_v42 = vpop.f32.mrf.mxu2  ;;  %1345 = vmatmul.msk.f32.gmra.mxu0 %vm195_vm1, %v1335_v41 }
  0x9d   : >> { %v267_v43 = vpop.f32.mrf.mxu3 }
  0x9e   : >> { %v314_v45 = vrot.slane %v267_v43, 1 }
  0x9f   : >> { %v264_v46 = vpop.f32.mrf.mxu1 }
  0xa0   : >> { %v312_v47 = vrot.slane %v264_v46, 1 }
  0xa1   : >> { %1330 = vmatmul.msk.f32.gmra.mxu2 %vm195_vm1, %v1283_v36  ;;  %v235_v48 = vpop.f32.mrf.mxu0 }
  0xa2   : >> { %v313_v50 = vsel %vm310_vm2, %v311_v44, %v312_v47  ;;  %v315_v51 = vsel %vm310_vm2, %v312_v47, %v314_v45  ;;  %1341 = vmatmul.msk.f32.gmra.mxu3 %vm195_vm1, %v1336_v49  ;;  %1351 = vmatmul.msk.f32.gmra.mxu1 %vm195_vm1, %v1336_v49 }
  0xa3   : >> { %v322_v52 = vadd.f32 %v313_v50, %v232_v40  ;;  %v323_v53 = vadd.f32 %v315_v51, %v235_v48 }
  0xa4   : >> { %v241_v54 = vpop.f32.mrf.mxu2  ;;  %1346 = vmatmul.msk.f32.gmra.mxu0 %vm195_vm1, %v1336_v49 }
  0xa5   : >> { %v270_v55 = vpop.f32.mrf.mxu3 }
  0xa6   : >> { %v316_v56 = vrot.slane %v270_v55, 1 }
  0xa7   : >> { %v457_v57 = vpop.f32.mrf.mxu1 }
  0xa8   : >> { %v317_v58 = vsel %vm310_vm2, %v314_v45, %v316_v56  ;;  %v325_v59 = vadd.f32 %v316_v56, %v241_v54  ;;  %v496_v1 = vrot.slane %v457_v57, 2 }
  0xa9   : >> { %v324_v60 = vadd.f32 %v317_v58, %v238_v42  ;;  %v428_v61 = vpop.f32.mrf.mxu0 }
  0xaa   : >> { %v477_v3 = vrot.slane %v428_v61, 1 }
  0xac   : >> { %v290_v62 = vpop.f32.mrf.mxu2 }
  0xad   : >> { %v399_v63 = vpop.f32.mrf.mxu3  ;;  %v331_v10 = vrot.slane %v290_v62, 2 }
  0xaf   : >> { %v460_v2 = vpop.f32.mrf.mxu1 }
  0xb0   : >> { %v497_v4 = vrot.slane %v460_v2, 2 }
  0xb1   : >> { %v431_v5 = vpop.f32.mrf.mxu0 }
  0xb2   : >> { %v478_v6 = vrot.slane %v431_v5, 1  ;;  %v498_v7 = vsel %vm330_vm3, %v496_v1, %v497_v4 }
  0xb4   : >> { %v479_v8 = vsel %vm310_vm2, %v477_v3, %v478_v6  ;;  %v293_v9 = vpop.f32.mrf.mxu2 }
  0xb5   : >> { %v332_v11 = vrot.slane %v293_v9, 2  ;;  %v402_v12 = vpop.f32.mrf.mxu3 }
  0xb7   : >> { %v333_v13 = vsel %vm330_vm3, %v331_v10, %v332_v11  ;;  %v463_v14 = vpop.f32.mrf.mxu1 }
  0xb8   : >> { %v342_v15 = vadd.f32 %v333_v13, %v322_v52  ;;  %v499_v16 = vrot.slane %v463_v14, 2 }
  0xb9   : >> { %v434_v17 = vpop.f32.mrf.mxu0 }
  0xba   : >> { %v480_v18 = vrot.slane %v434_v17, 1  ;;  %v469_v19 = vadd.f32 %v399_v63, %v342_v15  ;;  %v500_v20 = vsel %vm330_vm3, %v497_v4, %v499_v16 }
  0xbc   : >> { %v481_v21 = vsel %vm310_vm2, %v478_v6, %v480_v18  ;;  %v296_v22 = vpop.f32.mrf.mxu2  ;;  %v488_v23 = vadd.f32 %v479_v8, %v469_v19 }
  0xbd   : >> { %v334_v24 = vrot.slane %v296_v22, 2  ;;  %v405_v25 = vpop.f32.mrf.mxu3 }
  0xbe   : >> { %v507_v26 = vadd.f32 %v498_v7, %v488_v23 }
  0xbf   : >> { %v335_v27 = vsel %vm330_vm3, %v332_v11, %v334_v24  ;;  %v466_v28 = vpop.f32.mrf.mxu1 }
  0xc0   : >> { %v343_v29 = vadd.f32 %v335_v27, %v323_v53  ;;  %v501_v30 = vrot.slane %v466_v28, 2 }
  0xc1   : >> { %v437_v31 = vpop.f32.mrf.mxu0 }
  0xc2   : >> { %v482_v32 = vrot.slane %v437_v31, 1  ;;  %v470_v33 = vadd.f32 %v402_v12, %v343_v29  ;;  %v502_v34 = vsel %vm330_vm3, %v499_v16, %v501_v30 }
  0xc4   : >> { %v483_v35 = vsel %vm310_vm2, %v480_v18, %v482_v32  ;;  %v299_v36 = vpop.f32.mrf.mxu2  ;;  %v489_v37 = vadd.f32 %v481_v21, %v470_v33 }
  0xc5   : >> { %v336_v38 = vrot.slane %v299_v36, 2  ;;  %v408_v39 = vpop.f32.mrf.mxu3 }
  0xc6   : >> { %v508_v40 = vadd.f32 %v500_v20, %v489_v37 }
  0xc7   : >> { %v337_v41 = vsel %vm330_vm3, %v334_v24, %v336_v38  ;;  %v345_v42 = vadd.f32 %v336_v38, %v325_v59  ;;  %v1598_v43 = vpop.f32.mrf.mxu1 }
  0xc8   : >> { %v344_v44 = vadd.f32 %v337_v41, %v324_v60 }
  0xc9   : >> { %v472_v45 = vadd.f32 %v408_v39, %v345_v42  ;;  %v622_v46 = vpop.f32.mrf.mxu0 }
  0xca   : >> { %v471_v47 = vadd.f32 %v405_v25, %v344_v44  ;;  %v661_v56 = vrot.slane %v622_v46, 2 }
  0xcb   : >> { %v491_v48 = vadd.f32 %v482_v32, %v472_v45 }
  0xcc   : >> { %v564_v49 = vpop.f32.mrf.mxu2  ;;  %v490_v50 = vadd.f32 %v483_v35, %v471_v47 }
  0xcd   : >> { %v634_v51 = vadd.f32 %v564_v49, %v507_v26  ;;  %v593_v52 = vpop.f32.mrf.mxu3  ;;  %v510_v53 = vadd.f32 %v501_v30, %v491_v48 }
  0xce   : >> { %v509_v54 = vadd.f32 %v502_v34, %v490_v50  ;;  %v642_v63 = vrot.slane %v593_v52, 1 }
  0xcf   : >> { %v1600_v55 = vpop.f32.mrf.mxu1 }
  0xd1   : >> { %v625_v57 = vpop.f32.mrf.mxu0 }
  0xd2   : >> { %v662_v58 = vrot.slane %v625_v57, 2 }
  0xd4   : >> { %v663_v59 = vsel %vm330_vm3, %v661_v56, %v662_v58  ;;  %v567_v61 = vpop.f32.mrf.mxu2 }
  0xd5   : >> { %v635_v62 = vadd.f32 %v567_v61, %v508_v40  ;;  %v596_v60 = vpop.f32.mrf.mxu3 }
  0xd6   : >> { %v643_v1 = vrot.slane %v596_v60, 1 }
  0xd7   : >> { %v1603_v2 = vpop.f32.mrf.mxu1 }
  0xd8   : >> { %v644_v3 = vsel %vm310_vm2, %v642_v63, %v643_v1 }
  0xd9   : >> { %v653_v4 = vadd.f32 %v644_v3, %v634_v51  ;;  %v628_v5 = vpop.f32.mrf.mxu0 }
  0xda   : >> { %v664_v6 = vrot.slane %v628_v5, 2 }
  0xdb   : >> { %v1606_v7 = vadd.f32 %v663_v59, %v653_v4 }
  0xdc   : >> { %v665_v8 = vsel %vm330_vm3, %v662_v58, %v664_v6  ;;  %v570_v9 = vpop.f32.mrf.mxu2 }
  0xdd   : >> { %v636_v10 = vadd.f32 %v570_v9, %v509_v54  ;;  %v599_v11 = vpop.f32.mrf.mxu3 }
  0xde   : >> { %v645_v12 = vrot.slane %v599_v11, 1 }
  0xdf   : >> { %v1609_v13 = vpop.f32.mrf.mxu1 }
  0xe0   : >> { %v646_v14 = vsel %vm310_vm2, %v643_v1, %v645_v12 }
  0xe1   : >> { %v654_v15 = vadd.f32 %v646_v14, %v635_v62  ;;  %v631_v16 = vpop.f32.mrf.mxu0 }
  0xe2   : >> { %v666_v17 = vrot.slane %v631_v16, 2 }
  0xe3   : >> { %v1612_v18 = vadd.f32 %v665_v8, %v654_v15 }
  0xe4   : >> { %v667_v19 = vsel %vm330_vm3, %v664_v6, %v666_v17  ;;  %v573_v20 = vpop.f32.mrf.mxu2 }
  0xe5   : >> { %v637_v21 = vadd.f32 %v573_v20, %v510_v53  ;;  %v602_v22 = vpop.f32.mrf.mxu3 }
  0xe6   : >> { %v647_v23 = vrot.slane %v602_v22, 1 }
  0xe7   : >> { %v882_v24 = vpop.f32.mrf.mxu1 }
  0xe8   : >> { %v648_v25 = vsel %vm310_vm2, %v645_v12, %v647_v23  ;;  %v656_v26 = vadd.f32 %v647_v23, %v637_v21  ;;  %v931_v62 = vrot.slane %v882_v24, 1 }
  0xe9   : >> { %v655_v27 = vadd.f32 %v648_v25, %v636_v10  ;;  %v853_v28 = vpop.f32.mrf.mxu0 }
  0xea   : >> { %v1616_v29 = vadd.f32 %v666_v17, %v656_v26 }
  0xeb   : >> { %v1618_v30 = vadd.f32 %v667_v19, %v655_v27 }
  0xec   : >> { %v741_v31 = vpop.f32.mrf.mxu2 }
  0xed   : >> { %v770_v32 = vpop.f32.mrf.mxu3  ;;  %v790_v46 = vrot.slane %v741_v31, 1 }
  0xee   : >> { %v809_v53 = vrot.slane %v770_v32, 2 }
  0xef   : >> { %v885_v33 = vpop.f32.mrf.mxu1 }
  0xf0   : >> { %v932_v60 = vrot.slane %v885_v33, 1  ;;  %v677_v33 = vperm.slane %v1426_v0, 0 }
  0xf1   : >> { %v856_v34 = vpop.f32.mrf.mxu0 }
  0xf4   : >> { %v744_v35 = vpop.f32.mrf.mxu2 }
  0xf5   : >> { %v773_v36 = vpop.f32.mrf.mxu3  ;;  %v791_v44 = vrot.slane %v744_v35, 1 }
  0xf6   : >> { %v810_v50 = vrot.slane %v773_v36, 2 }
  0xf7   : >> { %v1620_v37 = vpop.f32.mrf.mxu1  ;;  %v792_v48 = vsel %vm310_vm2, %v790_v46, %v791_v44 }
  0xf8   : >> { %v801_v52 = vadd.f32 %v792_v48, %v1598_v43  ;;  %v811_v57 = vsel %vm330_vm3, %v809_v53, %v810_v50  ;;  %v933_v43 = vsel %vm310_vm2, %v931_v62, %v932_v60 }
  0xf9   : >> { %v1622_v38 = vpop.f32.mrf.mxu0 }
  0xfa   : >> { %v820_v59 = vadd.f32 %v811_v57, %v801_v52 }
  0xfc   : >> { %v747_v39 = vpop.f32.mrf.mxu2  ;;  %v923_v3 = vadd.f32 %v853_v28, %v820_v59 }
  0xfd   : >> { %v776_v40 = vpop.f32.mrf.mxu3  ;;  %v793_v54 = vrot.slane %v747_v39, 1 }
  0xfe   : >> { %v812_v63 = vrot.slane %v776_v40, 2  ;;  %v942_v14 = vadd.f32 %v933_v43, %v923_v3 }
  0xff   : >> { %v1624_v41 = vpop.f32.mrf.mxu1  ;;  %v794_v61 = vsel %vm310_vm2, %v791_v44, %v793_v54 }
 0x100   : >> { %v802_v4 = vadd.f32 %v794_v61, %v1600_v55  ;;  %v813_v9 = vsel %vm330_vm3, %v810_v50, %v812_v63  ;;  %v934_v55 = vrot.slane %v1620_v37, 1  ;;  %v679_v50 = vadd.f32 %v677_v33, %v1606_v7 }
 0x101   : >> { %v1626_v42 = vpop.f32.mrf.mxu0 }
 0x102   : >> { %v821_v15 = vadd.f32 %v813_v9, %v802_v4  ;;  %v935_v35 = vsel %vm310_vm2, %v932_v60, %v934_v55 }
 0x104   : >> { %v750_v45 = vpop.f32.mrf.mxu2  ;;  %v924_v26 = vadd.f32 %v856_v34, %v821_v15 }
 0x105   : >> { %v779_v47 = vpop.f32.mrf.mxu3  ;;  %v795_v6 = vrot.slane %v750_v45, 1 }
 0x106   : >> { %v814_v23 = vrot.slane %v779_v47, 2  ;;  %v943_v46 = vadd.f32 %v935_v35, %v924_v26  ;;  %v681_v26 = vadd.f32 %v677_v33, %v1618_v30 }
 0x107   : >> { %v1071_v49 = vpop.f32.mrf.mxu1  ;;  %v796_v16 = vsel %vm310_vm2, %v793_v54, %v795_v6  ;;  %v804_v22 = vadd.f32 %v795_v6, %v1609_v13  ;;  %v936_v54 = vrot.slane %v1624_v41, 1 }
 0x108   : >> { %v1110_v24 = vrot.slane %v1071_v49, 2  ;;  %v803_v27 = vadd.f32 %v796_v16, %v1603_v2  ;;  %v815_v40 = vsel %vm330_vm3, %v812_v63, %v814_v23 }
 0x109   : >> { %v1042_v51 = vpop.f32.mrf.mxu0  ;;  %v823_v13 = vadd.f32 %v814_v23, %v804_v22  ;;  %v937_v3 = vsel %vm310_vm2, %v934_v55, %v936_v54 }
 0x10a   : >> { %v1091_v17 = vrot.slane %v1042_v51, 1  ;;  %v822_v2 = vadd.f32 %v815_v40, %v803_v27 }
 0x10b   : >> { %v926_v53 = vadd.f32 %v1626_v42, %v823_v13 }
 0x10c   : >> { %v911_v56 = vpop.f32.mrf.mxu2  ;;  %v925_v57 = vadd.f32 %v1622_v38, %v822_v2 }
 0x10d   : >> { %v1013_v58 = vpop.f32.mrf.mxu3  ;;  %v950_v10 = vrot.slane %v911_v56, 2  ;;  %v945_v7 = vadd.f32 %v936_v54, %v926_v53 }
 0x10e   : >> { %v944_v42 = vadd.f32 %v937_v3, %v925_v57 }
 0x10f   : >> { %v1074_v5 = vpop.f32.mrf.mxu1 }
 0x110   : >> { %v1111_v25 = vrot.slane %v1074_v5, 2 }
 0x111   : >> { %v1045_v1 = vpop.f32.mrf.mxu0 }
 0x112   : >> { %v1092_v19 = vrot.slane %v1045_v1, 1  ;;  %v1112_v44 = vsel %vm330_vm3, %v1110_v24, %v1111_v25 }
 0x114   : >> { %v914_v8 = vpop.f32.mrf.mxu2  ;;  %v1093_v32 = vsel %vm310_vm2, %v1091_v17, %v1092_v19 }
 0x115   : >> { %v951_v11 = vrot.slane %v914_v8, 2  ;;  %v1016_v12 = vpop.f32.mrf.mxu3 }
 0x117   : >> { %v952_v20 = vsel %vm330_vm3, %v950_v10, %v951_v11  ;;  %v1077_v37 = vpop.f32.mrf.mxu1  ;;  %v680_v10 = vadd.f32 %v677_v33, %v1612_v18  ;;  %v682_v18 = vadd.f32 %v677_v33, %v1616_v29 }
 0x118   : >> { %v961_v21 = vadd.f32 %v952_v20, %v942_v14  ;;  %v1113_v56 = vrot.slane %v1077_v37, 2 }
 0x119   : >> { %v1048_v31 = vpop.f32.mrf.mxu0 }
 0x11a   : >> { %v1083_v28 = vadd.f32 %v1013_v58, %v961_v21  ;;  %v1094_v48 = vrot.slane %v1048_v31, 1  ;;  %v1114_v4 = vsel %vm330_vm3, %v1111_v25, %v1113_v56 }
 0x11c   : >> { %v1102_v36 = vadd.f32 %v1093_v32, %v1083_v28  ;;  %v917_v39 = vpop.f32.mrf.mxu2  ;;  %v1095_v61 = vsel %vm310_vm2, %v1092_v19, %v1094_v48 }
 0x11d   : >> { %v953_v45 = vrot.slane %v917_v39, 2  ;;  %v1019_v34 = vpop.f32.mrf.mxu3 }
 0x11e   : >> { %v1121_v47 = vadd.f32 %v1112_v44, %v1102_v36 }
 0x11f   : >> { %v954_v49 = vsel %vm330_vm3, %v951_v11, %v953_v45  ;;  %v1080_v6 = vpop.f32.mrf.mxu1 }
 0x120   : >> { %v1125_v51 = vadd.f32 %v1121_v47, %v677_v33  ;;  %v962_v52 = vadd.f32 %v954_v49, %v943_v46  ;;  %v1115_v14 = vrot.slane %v1080_v6, 2 }
 0x121   : >> { %v1051_v63 = vpop.f32.mrf.mxu0 }
 0x122   : >> { %v1129_v58 = vmax.f32 %v679_v50, %v1125_v51  ;;  %v1084_v59 = vadd.f32 %v1016_v12, %v962_v52  ;;  %v1096_v38 = vrot.slane %v1051_v63, 1  ;;  %v1116_v22 = vsel %vm330_vm3, %v1113_v56, %v1115_v14 }
 0x124   : >> { %v1133_v62 = vmax.f32 %v1129_v58, 0.0  ;;  %v1103_v60 = vadd.f32 %v1095_v61, %v1084_v59  ;;  %v920_v1 = vpop.f32.mrf.mxu2  ;;  %v1097_v19 = vsel %vm310_vm2, %v1094_v48, %v1096_v38 }
 0x125   : >> { %v955_v5 = vrot.slane %v920_v1, 2  ;;  %v1022_v8 = vpop.f32.mrf.mxu3 }
 0x126   : >> { %1137 = vst [vmem:[#allocation2] sm:$0xff] %v1133_v62  ;;  %v1122_v41 = vadd.f32 %v1114_v4, %v1103_v60 }
 0x127   : >> { %v956_v43 = vsel %vm330_vm3, %v953_v45, %v955_v5  ;;  %v964_v9 = vadd.f32 %v955_v5, %v945_v7 }
 0x128   : >> { %v1126_v11 = vadd.f32 %v1122_v41, %v677_v33  ;;  %v963_v12 = vadd.f32 %v956_v43, %v944_v42 }
 0x129   : >> { %v1086_v15 = vadd.f32 %v1022_v8, %v964_v9 }
 0x12a   : >> { %v1130_v16 = vmax.f32 %v680_v10, %v1126_v11  ;;  %v1085_v17 = vadd.f32 %v1019_v34, %v963_v12 }
 0x12b   : >> { %v1105_v20 = vadd.f32 %v1096_v38, %v1086_v15 }
 0x12c   : >> { %v1134_v55 = vmax.f32 %v1130_v16, 0.0  ;;  %v1104_v21 = vadd.f32 %v1097_v19, %v1085_v17 }
 0x12d   : >> { %v1124_v23 = vadd.f32 %v1115_v14, %v1105_v20 }
 0x12e   : >> { %1138 = vst [vmem:[#allocation2 + $0x8] sm:$0xff] %v1134_v55  ;;  %v1123_v24 = vadd.f32 %v1116_v22, %v1104_v21 }
 0x12f   : >> { %v1128_v25 = vadd.f32 %v1124_v23, %v677_v33 }
 0x130   : >> { %v1127_v27 = vadd.f32 %v1123_v24, %v677_v33 }
 0x131   : >> { %v1132_v28 = vmax.f32 %v682_v18, %v1128_v25 }
 0x132   : >> { %v1131_v31 = vmax.f32 %v681_v26, %v1127_v27 }
 0x133   : >> { %v1136_v32 = vmax.f32 %v1132_v28, 0.0 }
 0x134   : >> { %v1135_v35 = vmax.f32 %v1131_v31, 0.0 }
 0x135   : >> { %v1141_v36 = vld [vmem:[#allocation2] ss:$2 sm:$0xff]  ;;  %v1145_v39 = vld [vmem:[#allocation2 + $0x1] ss:$2 sm:$0xff]  ;;  %1140 = vst [vmem:[#allocation2 + $0x18] sm:$0x3f] %v1136_v32 }
 0x136   : >> { %v1148_v37 = vmax.f32 %v1141_v36, %v1145_v39  ;;  %1139 = vst [vmem:[#allocation2 + $0x10] sm:$0xff] %v1135_v35 }
 0x138   : >> { %1152 = vst [vmem:[%s1151_s14] sm:$0xff] %v1148_v37 }
 0x13c   : > { %176 = sbr.rel (!%p174_p4) target bundleno = 15 (0xf), region = 85 }
 0x13d   : >> { %v1143_v40 = vld [vmem:[#allocation2 + $0x10] ss:$2 sm:$0x7f]  ;;  %v1147_v13 = vld [vmem:[#allocation2 + $0x11] ss:$2 sm:$0x7f] }
 0x13e   : >> { %v1149_v44 = vmax.f32 %v1143_v40, %v1147_v13 }
 0x140   : >> { %1153 = vst [vmem:[%s1151_s14 + $0x8] sm:$0x7f] %v1149_v44 }
 0x141 PF: > { %s13_s12 = sadd.s32 1, %s1389_s12  }
 0x142   : > { %p10_p5 = scmp.ge.s32.totalorder %s13_s12, 4  }
 0x144   :  { %12 = sbr.rel (!%p10_p5) target bundleno = 1 (0x1), region = 96 }

</bundles_post_ra>
